<compile_context>
chip_gen: v5e
topology: v5e:2x2
jax: 0.10.0
libtpu: 0.0.40
codegen_flags: <defaults>
</compile_context>

<pallas_src>
import math
import functools

import jax
import jax.numpy as jnp
from jax import lax
from jax.experimental import pallas as pl
from jax.experimental.pallas import tpu as pltpu


# ----------------------------- fused block kernel -----------------------------

def _fused_block_kernel(
        xt_ref,        # (T, D, 2)     input hash tables  (x[t, 2d+c] == xt[t, d, c])
        r_ref,         # (T, N, D)     one-hot bilinear retrieve weights
        rt_ref,        # (T, D, N)     transposed retrieve weights (for recon)
        icnt_ref,      # (T, D, 1)     1 / max(sum_n R, 1e-8)
        ksty_ref,      # (1, ch)       k_mapping style
        kwT_ref,       # (ch, hidden)  k_mapping weight, pre-transposed
        kb_ref,        # (1, hidden)
        osty_ref,      # (1, hidden)   o_mapping style
        owT_ref,       # (hidden, ch)  o_mapping weight, pre-transposed
        ob_ref,        # (1, ch)
        twsty_ref,     # (D, 2)        token-wise style in table view
        tww_ref,       # (T*2*2, D, D) token-wise weights, blocks (t, c_out, c_in)
        twb_ref,       # (T, D, 2)     token-wise bias in table view
        out_ref,       # (T, D, 2)
        feats_scr,     # (N, ch)
        k_scr,         # (N, hidden)
        attn_scr,      # (N, hidden)
        tok_scr,       # (N, ch)
        x1_scr,        # (T, D, 2)
        *, head_num):
    f32 = jnp.float32
    T, D, _ = xt_ref.shape
    N = r_ref.shape[1]
    hidden = kwT_ref.shape[1]
    hd = hidden // head_num
    feat_dim = 2 * D
    inv_f = 1.0 / feat_dim
    eps_demod = 1e-8
    eps_ln = 1e-5
    ones_row = jnp.ones((1, D), f32)

    # ---- 1) hash retrieve: feats[:, 2t:2t+2] = R[t] @ tables[t]   (MXU) ----
    for t in range(T):
        feats_scr[:, 2 * t:2 * t + 2] = jnp.dot(
            r_ref[t], xt_ref[t], preferred_element_type=f32)
    feats = feats_scr[...]

    # ---- 2) k_mapping (modulated linear: style on input, demod as col scale) ----
    # TODO(synk): ModulatedLinear source not provided; StyleGAN2-style
    # modulate/demodulate + bias (no activation) assumed.
    ksty = ksty_ref[...]
    kwT = kwT_ref[...]
    dk = lax.rsqrt(jnp.dot(ksty * ksty, kwT * kwT,
                           preferred_element_type=f32) + eps_demod)   # (1, hidden)
    k_scr[...] = (jnp.dot(feats * ksty, kwT, preferred_element_type=f32) * dk
                  + kb_ref[...])

    # ---- 3) multi-head self-attention (reference feeds k_mapping to q, k AND v) ----
    scale = 1.0 / math.sqrt(hd)
    for h in range(head_num):
        kh = k_scr[:, h * hd:(h + 1) * hd]                            # (N, hd)
        s_mat = lax.dot_general(kh, kh, (((1,), (1,)), ((), ())),
                                preferred_element_type=f32) * scale   # (N, N)
        s_mat = s_mat - jnp.max(s_mat, axis=-1, keepdims=True)
        p = jnp.exp(s_mat)
        p = p * pl.reciprocal(jnp.sum(p, axis=-1, keepdims=True), approx=True)
        attn_scr[:, h * hd:(h + 1) * hd] = jnp.dot(
            p, kh, preferred_element_type=f32)

    # ---- 4) o_mapping ----
    osty = osty_ref[...]
    owT = owT_ref[...]
    do = lax.rsqrt(jnp.dot(osty * osty, owT * owT,
                           preferred_element_type=f32) + eps_demod)   # (1, ch)
    o_out = (jnp.dot(attn_scr[...] * osty, owT, preferred_element_type=f32) * do
             + ob_ref[...])

    # ---- 5) residual + LayerNorm over ch (token LN inside HashAttention) ----
    z = o_out + feats
    mu = jnp.mean(z, axis=-1, keepdims=True)
    zc = z - mu
    var = jnp.mean(zc * zc, axis=-1, keepdims=True)
    tok_scr[...] = zc * lax.rsqrt(var + eps_ln)

    # ---- 6) hash recon (one-hot matmul) + residual + LN over feat_dim ----
    for t in range(T):
        tok_t = tok_scr[:, 2 * t:2 * t + 2]                           # (N, 2)
        recon = jnp.dot(rt_ref[t], tok_t,
                        preferred_element_type=f32) * icnt_ref[t]     # (D, 2)
        z_t = recon + xt_ref[t]
        mu_t = jnp.sum(jnp.dot(ones_row, z_t, preferred_element_type=f32),
                       axis=-1, keepdims=True) * inv_f                # (1, 1)
        zc_t = z_t - mu_t
        var_t = jnp.sum(jnp.dot(ones_row, zc_t * zc_t, preferred_element_type=f32),
                        axis=-1, keepdims=True) * inv_f
        x1_scr[t] = zc_t * lax.rsqrt(var_t + eps_ln)

    # ---- 7) token-wise modulated linear (+ReLU) + residual + LN over feat_dim ----
    # TODO(synk): TokenWiseModulatedLinear source not provided; per-token
    # StyleGAN2-style modulated linear with (T, Fout, Fin) weights + ReLU assumed.
    for t in range(T):
        xm = [x1_scr[t, :, c:c + 1] * twsty_ref[:, c:c + 1] for c in range(2)]
        ss = [twsty_ref[:, c:c + 1] * twsty_ref[:, c:c + 1] for c in range(2)]
        z_cols = []
        for c in range(2):                                            # output component
            w0 = tww_ref[(t * 2 + c) * 2 + 0]                         # (D, D) c_in = 0
            w1 = tww_ref[(t * 2 + c) * 2 + 1]                         # (D, D) c_in = 1
            ylin = (jnp.dot(w0, xm[0], preferred_element_type=f32)
                    + jnp.dot(w1, xm[1], preferred_element_type=f32))  # (D, 1)
            dsq = (jnp.dot(w0 * w0, ss[0], preferred_element_type=f32)
                   + jnp.dot(w1 * w1, ss[1], preferred_element_type=f32))
            y = jnp.maximum(ylin * lax.rsqrt(dsq + eps_demod)
                            + twb_ref[t, :, c:c + 1], 0.0)
            z_cols.append(y + x1_scr[t, :, c:c + 1])
        tot = (jnp.dot(ones_row, z_cols[0], preferred_element_type=f32)
               + jnp.dot(ones_row, z_cols[1], preferred_element_type=f32))
        mu_t = tot * inv_f
        zc0 = z_cols[0] - mu_t
        zc1 = z_cols[1] - mu_t
        vtot = (jnp.dot(ones_row, zc0 * zc0, preferred_element_type=f32)
                + jnp.dot(ones_row, zc1 * zc1, preferred_element_type=f32))
        inv_std = lax.rsqrt(vtot * inv_f + eps_ln)
        out_ref[t, :, 0:1] = zc0 * inv_std
        out_ref[t, :, 1:2] = zc1 * inv_std


# ----------------------------- block wrapper -----------------------------

def fused_transformer_block(x, s, blk, hashmats, head_num):
    B, T, F = x.shape
    D = F // 2
    ch = 2 * T
    kp, omap, tw = blk["k_map"], blk["o_map"], blk["twl"]
    hidden = kp["w"].shape[0]
    N = hashmats["R"].shape[1]

    xt = x.reshape(B, T, D, 2)
    # tiny style affines stay in XLA
    k_style = (s @ kp["aff_w"].T + kp["aff_b"])[:, None, :]           # (B, 1, ch)
    o_style = (s @ omap["aff_w"].T + omap["aff_b"])[:, None, :]       # (B, 1, hidden)
    tw_style = (s @ tw["aff_w"].T + tw["aff_b"]).reshape(B, D, 2)     # (B, D, 2)

    k_wT = kp["w"].T                                                  # (ch, hidden)
    k_b = kp["b"].reshape(1, hidden)
    o_wT = omap["w"].T                                                # (hidden, ch)
    o_b = omap["b"].reshape(1, ch)
    # (T, Fout, Fin) -> (T*2*2, D, D) blocks, block index = (t*2 + c_out)*2 + c_in
    tw_w = (tw["w"].reshape(T, D, 2, D, 2)
            .transpose(0, 2, 4, 1, 3).reshape(T * 4, D, D))
    tw_b = tw["b"].reshape(T, D, 2)

    kernel = functools.partial(_fused_block_kernel, head_num=head_num)
    full = lambda shape: pl.BlockSpec(shape, lambda i: (0,) * len(shape))
    batched = lambda shape: pl.BlockSpec((None,) + shape,
                                         lambda i: (i,) + (0,) * len(shape))

    out = pl.pallas_call(
        kernel,
        out_shape=jax.ShapeDtypeStruct((B, T, D, 2), jnp.float32),
        grid=(B,),
        in_specs=[
            batched((T, D, 2)),        # xt
            full((T, N, D)),           # R
            full((T, D, N)),           # R^T
            full((T, D, 1)),           # 1/cnt
            batched((1, ch)),          # k style
            full((ch, hidden)),        # k weight^T
            full((1, hidden)),         # k bias
            batched((1, hidden)),      # o style
            full((hidden, ch)),        # o weight^T
            full((1, ch)),             # o bias
            batched((D, 2)),           # token-wise style (table view)
            full((T * 4, D, D)),       # token-wise weights
            full((T, D, 2)),           # token-wise bias (table view)
        ],
        out_specs=batched((T, D, 2)),
        scratch_shapes=[
            pltpu.VMEM((N, ch), jnp.float32),       # retrieved feats
            pltpu.VMEM((N, hidden), jnp.float32),   # k (= q = v)
            pltpu.VMEM((N, hidden), jnp.float32),   # attention out (heads concat)
            pltpu.VMEM((N, ch), jnp.float32),       # tokens after LN
            pltpu.VMEM((T, D, 2), jnp.float32),     # x after first block LN
        ],
        compiler_params=pltpu.CompilerParams(
            dimension_semantics=("parallel",)),
    )(xt, hashmats["R"], hashmats["RT"], hashmats["icnt"],
      k_style, k_wT, k_b, o_style, o_wT, o_b, tw_style, tw_w, tw_b)
    return out.reshape(B, T, F)


def stylelized_transformer_block(x, s, params, head_num):
    # NB: faithful to the reference forward, which feeds the k_mapping output to
    # q, k and v (q_mapping / v_mapping parameters exist but are unused).
    for blk in params["blocks"]:
        x = fused_transformer_block(x, s, blk, params["hash"], head_num)
    return x


# -------------------- hash one-hot matrices (precomputed) --------------------
# TODO(synk): HashTableRetrieve / HashTableRecon / sample_coords custom ops are
# not provided; multi-resolution bilinear hash gather / weight-normalized
# scatter on a deterministic coordinate grid assumed.  Since coords are a fixed
# buffer, the gather/scatter collapse to data-independent one-hot matrices.

_HASH_PRIME = 2654435761


def _level_resolutions(table_num, res_min, res_max):
    if table_num == 1:
        return [int(res_max)]
    g = math.exp((math.log(res_max) - math.log(res_min)) / (table_num - 1))
    return [int(math.floor(res_min * (g ** i))) for i in range(table_num)]


def _hash2d(ix, iy, table_dim):
    h = ix.astype(jnp.uint32) ^ (iy.astype(jnp.uint32) * jnp.uint32(_HASH_PRIME))
    return (h % jnp.uint32(table_dim)).astype(jnp.int32)


def _corner_data(coords, res):
    pos = coords * float(max(res - 1, 1))
    p0 = jnp.floor(pos)
    frac = pos - p0
    p0 = p0.astype(jnp.int32)
    p1 = jnp.minimum(p0 + 1, res - 1)
    xs = (p0[..., 0], p1[..., 0])
    ys = (p0[..., 1], p1[..., 1])
    wx = (1.0 - frac[..., 0], frac[..., 0])
    wy = (1.0 - frac[..., 1], frac[..., 1])
    return xs, ys, wx, wy


def sample_coords(res_max, sample_size):
    lin = (jnp.arange(sample_size, dtype=jnp.float32) + 0.5) / sample_size
    yy, xx = jnp.meshgrid(lin, lin, indexing="ij")
    return jnp.stack([xx.reshape(-1), yy.reshape(-1)], axis=-1)[None]  # (1, S*S, 2)


def build_hash_matrices(coords, table_num, table_dim, res_min, res_max):
    c = coords[0]                                    # (N, 2)
    D = table_dim
    mats = []
    for res in _level_resolutions(table_num, res_min, res_max):
        xs, ys, wx, wy = _corner_data(c, res)
        w_lvl = jnp.zeros((c.shape[0], D), jnp.float32)
        for i in range(2):
            for j in range(2):
                idx = _hash2d(xs[i], ys[j], D)                          # (N,)
                onehot = (idx[:, None] == jnp.arange(D)[None, :]).astype(jnp.float32)
                w_lvl = w_lvl + (wx[i] * wy[j])[:, None] * onehot
        mats.append(w_lvl)
    R = jnp.stack(mats, axis=0)                                         # (T, N, D)
    cnt = jnp.sum(R, axis=1)                                            # (T, D)
    icnt = (1.0 / jnp.maximum(cnt, 1e-8))[..., None]                    # (T, D, 1)
    return dict(R=R, RT=jnp.transpose(R, (0, 2, 1)), icnt=icnt)


# ----------------------------- parameter init -----------------------------

def init_modulated_linear(key, in_dim, out_dim, s_dim):
    k1, k2 = jax.random.split(key)
    return dict(
        w=jax.random.normal(k1, (out_dim, in_dim), jnp.float32) / math.sqrt(in_dim),
        b=jnp.zeros((out_dim,), jnp.float32),
        aff_w=jax.random.normal(k2, (in_dim, s_dim), jnp.float32) / math.sqrt(s_dim),
        aff_b=jnp.ones((in_dim,), jnp.float32),
    )


def init_block(key, cfg):
    ch = cfg["table_num"] * 2
    hidden = ch * cfg["head_num"]
    F = cfg["feat_dim"]
    T = cfg["table_num"]
    k = jax.random.split(key, 4)
    twl = dict(
        w=jax.random.normal(k[2], (T, F, F), jnp.float32) / math.sqrt(F),
        b=jnp.zeros((T, F), jnp.float32),
        aff_w=jax.random.normal(k[3], (F, cfg["s_dim"]), jnp.float32)
              / math.sqrt(cfg["s_dim"]),
        aff_b=jnp.ones((F,), jnp.float32),
    )
    return dict(
        k_map=init_modulated_linear(k[0], ch, hidden, cfg["s_dim"]),
        o_map=init_modulated_linear(k[1], hidden, ch, cfg["s_dim"]),
        twl=twl,
    )


# ----------------------------------- main -----------------------------------

if __name__ == "__main__":
    cfg = dict(feat_dim=32, head_num=2, table_num=4, s_dim=8,
               res_min=2, res_max=8, block_num=1, sample_size=8)

    key = jax.random.PRNGKey(0)
    kx, ks, kp = jax.random.split(key, 3)
    B = 2
    x = jax.random.normal(kx, (B, cfg["table_num"], cfg["feat_dim"]), jnp.float32)
    s = jax.random.normal(ks, (B, cfg["s_dim"]), jnp.float32)

    blocks = [init_block(k, cfg) for k in jax.random.split(kp, cfg["block_num"])]
    coords = sample_coords(cfg["res_max"], cfg["sample_size"])
    hashmats = build_hash_matrices(coords, cfg["table_num"], cfg["feat_dim"] // 2,
                                   cfg["res_min"], cfg["res_max"])
    params = dict(blocks=blocks, hash=hashmats)

    fwd = jax.jit(functools.partial(stylelized_transformer_block,
                                    head_num=cfg["head_num"]))
    out = fwd(x, s, params)
    jax.block_until_ready(out)
    assert out.shape == (B, cfg["table_num"], cfg["feat_dim"])
    assert bool(jnp.all(jnp.isfinite(out)))
    print("KERNEL_OK")
</pallas_src>

<mosaic_0001>
module attributes {stable_mosaic.version = 11 : i64} {
  func.func @_fused_block_kernel(%arg0: i32, %arg1: memref<1x4x16x2xf32, #tpu.memory_space<vmem>>, %arg2: memref<4x64x16xf32, #tpu.memory_space<vmem>>, %arg3: memref<4x16x64xf32, #tpu.memory_space<vmem>>, %arg4: memref<4x16x1xf32, #tpu.memory_space<vmem>>, %arg5: memref<1x1x8xf32, #tpu.memory_space<vmem>>, %arg6: memref<8x16xf32, #tpu.memory_space<vmem>>, %arg7: memref<1x16xf32, #tpu.memory_space<vmem>>, %arg8: memref<1x1x16xf32, #tpu.memory_space<vmem>>, %arg9: memref<16x8xf32, #tpu.memory_space<vmem>>, %arg10: memref<1x8xf32, #tpu.memory_space<vmem>>, %arg11: memref<1x16x2xf32, #tpu.memory_space<vmem>>, %arg12: memref<16x16x16xf32, #tpu.memory_space<vmem>>, %arg13: memref<4x16x2xf32, #tpu.memory_space<vmem>>, %arg14: memref<1x4x16x2xf32, #tpu.memory_space<vmem>>, %arg15: memref<64x8xf32, #tpu.memory_space<vmem>>, %arg16: memref<64x16xf32, #tpu.memory_space<vmem>>, %arg17: memref<64x16xf32, #tpu.memory_space<vmem>>, %arg18: memref<64x8xf32, #tpu.memory_space<vmem>>, %arg19: memref<4x16x2xf32, #tpu.memory_space<vmem>>) attributes {dimension_semantics = [#tpu.dimension_semantics<parallel>], iteration_bounds = array<i64: 2>, scalar_prefetch = 0 : i64, scratch_operands = 5 : i64, tpu.core_type = #tpu.core_type<tc>, window_params = [{transform_indices = @transform_0, window_bounds = array<i64: 1, 4, 16, 2>}, {pipeline_mode = #tpu.pipeline_mode<synchronous>, transform_indices = @transform_1, window_bounds = array<i64: 4, 64, 16>}, {pipeline_mode = #tpu.pipeline_mode<synchronous>, transform_indices = @transform_2, window_bounds = array<i64: 4, 16, 64>}, {pipeline_mode = #tpu.pipeline_mode<synchronous>, transform_indices = @transform_3, window_bounds = array<i64: 4, 16, 1>}, {transform_indices = @transform_4, window_bounds = array<i64: 1, 1, 8>}, {pipeline_mode = #tpu.pipeline_mode<synchronous>, transform_indices = @transform_5, window_bounds = array<i64: 8, 16>}, {pipeline_mode = #tpu.pipeline_mode<synchronous>, transform_indices = @transform_6, window_bounds = array<i64: 1, 16>}, {transform_indices = @transform_7, window_bounds = array<i64: 1, 1, 16>}, {pipeline_mode = #tpu.pipeline_mode<synchronous>, transform_indices = @transform_8, window_bounds = array<i64: 16, 8>}, {pipeline_mode = #tpu.pipeline_mode<synchronous>, transform_indices = @transform_9, window_bounds = array<i64: 1, 8>}, {transform_indices = @transform_10, window_bounds = array<i64: 1, 16, 2>}, {pipeline_mode = #tpu.pipeline_mode<synchronous>, transform_indices = @transform_11, window_bounds = array<i64: 16, 16, 16>}, {pipeline_mode = #tpu.pipeline_mode<synchronous>, transform_indices = @transform_12, window_bounds = array<i64: 4, 16, 2>}, {transform_indices = @transform_13, window_bounds = array<i64: 1, 4, 16, 2>}]} {
    %cst = arith.constant 1.000000e+00 : f32
    %0 = vector.broadcast %cst : f32 to vector<1x16xf32>
    %c0 = arith.constant 0 : index
    %c0_0 = arith.constant 0 : index
    %c0_1 = arith.constant 0 : index
    %1 = vector.load %arg2[%c0, %c0_0, %c0_1] : memref<4x64x16xf32, #tpu.memory_space<vmem>>, vector<1x64x16xf32>
    %2 = vector.shape_cast %1 : vector<1x64x16xf32> to vector<64x16xf32>
    %c0_2 = arith.constant 0 : index
    %c0_3 = arith.constant 0 : index
    %c0_4 = arith.constant 0 : index
    %c0_5 = arith.constant 0 : index
    %3 = vector.load %arg1[%c0_2, %c0_3, %c0_4, %c0_5] : memref<1x4x16x2xf32, #tpu.memory_space<vmem>>, vector<1x1x16x2xf32>
    %4 = vector.shape_cast %3 : vector<1x1x16x2xf32> to vector<16x2xf32>
    %cst_6 = arith.constant dense<0.000000e+00> : vector<64x2xf32>
    %5 = tpu.matmul %2, %4, %cst_6 {dimension_numbers = #tpu.dot_dimension_numbers<[1], [0], [0], [1], [0, 0, 1, 1], [], []>} : vector<64x16xf32>, vector<16x2xf32>, vector<64x2xf32> -> vector<64x2xf32>
    %c0_7 = arith.constant 0 : index
    %c0_8 = arith.constant 0 : index
    %6 = vector.load %arg15[%c0_7, %c0_8] : memref<64x8xf32, #tpu.memory_space<vmem>>, vector<64x2xf32>
    tpu.vector_store %arg15[%c0_7, %c0_8], %5 {strides = array<i32>} : memref<64x8xf32, #tpu.memory_space<vmem>>, vector<64x2xf32>,
    %c1 = arith.constant 1 : index
    %c0_9 = arith.constant 0 : index
    %c0_10 = arith.constant 0 : index
    %7 = vector.load %arg2[%c1, %c0_9, %c0_10] : memref<4x64x16xf32, #tpu.memory_space<vmem>>, vector<1x64x16xf32>
    %8 = vector.shape_cast %7 : vector<1x64x16xf32> to vector<64x16xf32>
    %c0_11 = arith.constant 0 : index
    %c1_12 = arith.constant 1 : index
    %c0_13 = arith.constant 0 : index
    %c0_14 = arith.constant 0 : index
    %9 = vector.load %arg1[%c0_11, %c1_12, %c0_13, %c0_14] : memref<1x4x16x2xf32, #tpu.memory_space<vmem>>, vector<1x1x16x2xf32>
    %10 = vector.shape_cast %9 : vector<1x1x16x2xf32> to vector<16x2xf32>
    %cst_15 = arith.constant dense<0.000000e+00> : vector<64x2xf32>
    %11 = tpu.matmul %8, %10, %cst_15 {dimension_numbers = #tpu.dot_dimension_numbers<[1], [0], [0], [1], [0, 0, 1, 1], [], []>} : vector<64x16xf32>, vector<16x2xf32>, vector<64x2xf32> -> vector<64x2xf32>
    %c0_16 = arith.constant 0 : index
    %c2 = arith.constant 2 : index
    %12 = vector.load %arg15[%c0_16, %c2] : memref<64x8xf32, #tpu.memory_space<vmem>>, vector<64x2xf32>
    tpu.vector_store %arg15[%c0_16, %c2], %11 {strides = array<i32>} : memref<64x8xf32, #tpu.memory_space<vmem>>, vector<64x2xf32>,
    %c2_17 = arith.constant 2 : index
    %c0_18 = arith.constant 0 : index
    %c0_19 = arith.constant 0 : index
    %13 = vector.load %arg2[%c2_17, %c0_18, %c0_19] : memref<4x64x16xf32, #tpu.memory_space<vmem>>, vector<1x64x16xf32>
    %14 = vector.shape_cast %13 : vector<1x64x16xf32> to vector<64x16xf32>
    %c0_20 = arith.constant 0 : index
    %c2_21 = arith.constant 2 : index
    %c0_22 = arith.constant 0 : index
    %c0_23 = arith.constant 0 : index
    %15 = vector.load %arg1[%c0_20, %c2_21, %c0_22, %c0_23] : memref<1x4x16x2xf32, #tpu.memory_space<vmem>>, vector<1x1x16x2xf32>
    %16 = vector.shape_cast %15 : vector<1x1x16x2xf32> to vector<16x2xf32>
    %cst_24 = arith.constant dense<0.000000e+00> : vector<64x2xf32>
    %17 = tpu.matmul %14, %16, %cst_24 {dimension_numbers = #tpu.dot_dimension_numbers<[1], [0], [0], [1], [0, 0, 1, 1], [], []>} : vector<64x16xf32>, vector<16x2xf32>, vector<64x2xf32> -> vector<64x2xf32>
    %c0_25 = arith.constant 0 : index
    %c4 = arith.constant 4 : index
    %18 = vector.load %arg15[%c0_25, %c4] : memref<64x8xf32, #tpu.memory_space<vmem>>, vector<64x2xf32>
    tpu.vector_store %arg15[%c0_25, %c4], %17 {strides = array<i32>} : memref<64x8xf32, #tpu.memory_space<vmem>>, vector<64x2xf32>,
    %c3 = arith.constant 3 : index
    %c0_26 = arith.constant 0 : index
    %c0_27 = arith.constant 0 : index
    %19 = vector.load %arg2[%c3, %c0_26, %c0_27] : memref<4x64x16xf32, #tpu.memory_space<vmem>>, vector<1x64x16xf32>
    %20 = vector.shape_cast %19 : vector<1x64x16xf32> to vector<64x16xf32>
    %c0_28 = arith.constant 0 : index
    %c3_29 = arith.constant 3 : index
    %c0_30 = arith.constant 0 : index
    %c0_31 = arith.constant 0 : index
    %21 = vector.load %arg1[%c0_28, %c3_29, %c0_30, %c0_31] : memref<1x4x16x2xf32, #tpu.memory_space<vmem>>, vector<1x1x16x2xf32>
    %22 = vector.shape_cast %21 : vector<1x1x16x2xf32> to vector<16x2xf32>
    %cst_32 = arith.constant dense<0.000000e+00> : vector<64x2xf32>
    %23 = tpu.matmul %20, %22, %cst_32 {dimension_numbers = #tpu.dot_dimension_numbers<[1], [0], [0], [1], [0, 0, 1, 1], [], []>} : vector<64x16xf32>, vector<16x2xf32>, vector<64x2xf32> -> vector<64x2xf32>
    %c0_33 = arith.constant 0 : index
    %c6 = arith.constant 6 : index
    %24 = vector.load %arg15[%c0_33, %c6] : memref<64x8xf32, #tpu.memory_space<vmem>>, vector<64x2xf32>
    tpu.vector_store %arg15[%c0_33, %c6], %23 {strides = array<i32>} : memref<64x8xf32, #tpu.memory_space<vmem>>, vector<64x2xf32>,
    %c0_34 = arith.constant 0 : index
    %c0_35 = arith.constant 0 : index
    %25 = vector.load %arg15[%c0_34, %c0_35] : memref<64x8xf32, #tpu.memory_space<vmem>>, vector<64x8xf32>
    %c0_36 = arith.constant 0 : index
    %c0_37 = arith.constant 0 : index
    %c0_38 = arith.constant 0 : index
    %26 = vector.load %arg5[%c0_36, %c0_37, %c0_38] : memref<1x1x8xf32, #tpu.memory_space<vmem>>, vector<1x1x8xf32>
    %27 = vector.shape_cast %26 : vector<1x1x8xf32> to vector<1x8xf32>
    %c0_39 = arith.constant 0 : index
    %c0_40 = arith.constant 0 : index
    %28 = vector.load %arg6[%c0_39, %c0_40] : memref<8x16xf32, #tpu.memory_space<vmem>>, vector<8x16xf32>
    %29 = arith.mulf %27, %27 : vector<1x8xf32>
    %30 = arith.mulf %28, %28 : vector<8x16xf32>
    %cst_41 = arith.constant dense<0.000000e+00> : vector<1x16xf32>
    %31 = tpu.matmul %29, %30, %cst_41 {dimension_numbers = #tpu.dot_dimension_numbers<[1], [0], [0], [1], [0, 0, 1, 1], [], []>} : vector<1x8xf32>, vector<8x16xf32>, vector<1x16xf32> -> vector<1x16xf32>
    %cst_42 = arith.constant 9.99999993E-9 : f32
    %32 = vector.broadcast %cst_42 : f32 to vector<1x16xf32>
    %33 = arith.addf %31, %32 : vector<1x16xf32>
    %34 = math.rsqrt %33 : vector<1x16xf32>
    %35 = vector.broadcast %27 : vector<1x8xf32> to vector<64x8xf32>
    %36 = arith.mulf %25, %35 : vector<64x8xf32>
    %cst_43 = arith.constant dense<0.000000e+00> : vector<64x16xf32>
    %37 = tpu.matmul %36, %28, %cst_43 {dimension_numbers = #tpu.dot_dimension_numbers<[1], [0], [0], [1], [0, 0, 1, 1], [], []>} : vector<64x8xf32>, vector<8x16xf32>, vector<64x16xf32> -> vector<64x16xf32>
    %38 = vector.broadcast %34 : vector<1x16xf32> to vector<64x16xf32>
    %39 = arith.mulf %37, %38 : vector<64x16xf32>
    %c0_44 = arith.constant 0 : index
    %c0_45 = arith.constant 0 : index
    %40 = vector.load %arg7[%c0_44, %c0_45] : memref<1x16xf32, #tpu.memory_space<vmem>>, vector<1x16xf32>
    %41 = vector.broadcast %40 : vector<1x16xf32> to vector<64x16xf32>
    %42 = arith.addf %39, %41 : vector<64x16xf32>
    %c0_46 = arith.constant 0 : index
    %c0_47 = arith.constant 0 : index
    %43 = vector.load %arg16[%c0_46, %c0_47] : memref<64x16xf32, #tpu.memory_space<vmem>>, vector<64x16xf32>
    tpu.vector_store %arg16[%c0_46, %c0_47], %42 {strides = array<i32>} : memref<64x16xf32, #tpu.memory_space<vmem>>, vector<64x16xf32>,
    %c0_48 = arith.constant 0 : index
    %c0_49 = arith.constant 0 : index
    %44 = vector.load %arg16[%c0_48, %c0_49] : memref<64x16xf32, #tpu.memory_space<vmem>>, vector<64x8xf32>
    %cst_50 = arith.constant dense<0.000000e+00> : vector<64x64xf32>
    %45 = tpu.matmul %44, %44, %cst_50 {dimension_numbers = #tpu.dot_dimension_numbers<[1], [1], [0], [0], [0, 0, 1, 0], [], []>} : vector<64x8xf32>, vector<64x8xf32>, vector<64x64xf32> -> vector<64x64xf32>
    %cst_51 = arith.constant 0.353553385 : f32
    %46 = vector.broadcast %cst_51 : f32 to vector<64x64xf32>
    %47 = arith.mulf %45, %46 : vector<64x64xf32>
    %cst_52 = arith.constant dense<0xFF800000> : vector<64xf32>
    %48 = vector.multi_reduction <maximumf>, %47, %cst_52 [1] : vector<64x64xf32> to vector<64xf32>
    %49 = vector.shape_cast %48 : vector<64xf32> to vector<64x1xf32>
    %50 = vector.broadcast %49 : vector<64x1xf32> to vector<64x64xf32>
    %51 = arith.subf %47, %50 : vector<64x64xf32>
    %52 = math.exp %51 : vector<64x64xf32>
    %cst_53 = arith.constant dense<0.000000e+00> : vector<64xf32>
    %53 = vector.multi_reduction <add>, %52, %cst_53 [1] : vector<64x64xf32> to vector<64xf32>
    %54 = vector.shape_cast %53 : vector<64xf32> to vector<64x1xf32>
    %55 = tpu.reciprocal %54 {approx = true} : vector<64x1xf32> -> vector<64x1xf32>
    %56 = vector.broadcast %55 : vector<64x1xf32> to vector<64x64xf32>
    %57 = arith.mulf %52, %56 : vector<64x64xf32>
    %cst_54 = arith.constant dense<0.000000e+00> : vector<64x8xf32>
    %58 = tpu.matmul %57, %44, %cst_54 {dimension_numbers = #tpu.dot_dimension_numbers<[1], [0], [0], [1], [0, 0, 1, 1], [], []>} : vector<64x64xf32>, vector<64x8xf32>, vector<64x8xf32> -> vector<64x8xf32>
    %c0_55 = arith.constant 0 : index
    %c0_56 = arith.constant 0 : index
    %59 = vector.load %arg17[%c0_55, %c0_56] : memref<64x16xf32, #tpu.memory_space<vmem>>, vector<64x8xf32>
    tpu.vector_store %arg17[%c0_55, %c0_56], %58 {strides = array<i32>} : memref<64x16xf32, #tpu.memory_space<vmem>>, vector<64x8xf32>,
    %c0_57 = arith.constant 0 : index
    %c8 = arith.constant 8 : index
    %60 = vector.load %arg16[%c0_57, %c8] : memref<64x16xf32, #tpu.memory_space<vmem>>, vector<64x8xf32>
    %cst_58 = arith.constant dense<0.000000e+00> : vector<64x64xf32>
    %61 = tpu.matmul %60, %60, %cst_58 {dimension_numbers = #tpu.dot_dimension_numbers<[1], [1], [0], [0], [0, 0, 1, 0], [], []>} : vector<64x8xf32>, vector<64x8xf32>, vector<64x64xf32> -> vector<64x64xf32>
    %cst_59 = arith.constant 0.353553385 : f32
    %62 = vector.broadcast %cst_59 : f32 to vector<64x64xf32>
    %63 = arith.mulf %61, %62 : vector<64x64xf32>
    %cst_60 = arith.constant dense<0xFF800000> : vector<64xf32>
    %64 = vector.multi_reduction <maximumf>, %63, %cst_60 [1] : vector<64x64xf32> to vector<64xf32>
    %65 = vector.shape_cast %64 : vector<64xf32> to vector<64x1xf32>
    %66 = vector.broadcast %65 : vector<64x1xf32> to vector<64x64xf32>
    %67 = arith.subf %63, %66 : vector<64x64xf32>
    %68 = math.exp %67 : vector<64x64xf32>
    %cst_61 = arith.constant dense<0.000000e+00> : vector<64xf32>
    %69 = vector.multi_reduction <add>, %68, %cst_61 [1] : vector<64x64xf32> to vector<64xf32>
    %70 = vector.shape_cast %69 : vector<64xf32> to vector<64x1xf32>
    %71 = tpu.reciprocal %70 {approx = true} : vector<64x1xf32> -> vector<64x1xf32>
    %72 = vector.broadcast %71 : vector<64x1xf32> to vector<64x64xf32>
    %73 = arith.mulf %68, %72 : vector<64x64xf32>
    %cst_62 = arith.constant dense<0.000000e+00> : vector<64x8xf32>
    %74 = tpu.matmul %73, %60, %cst_62 {dimension_numbers = #tpu.dot_dimension_numbers<[1], [0], [0], [1], [0, 0, 1, 1], [], []>} : vector<64x64xf32>, vector<64x8xf32>, vector<64x8xf32> -> vector<64x8xf32>
    %c0_63 = arith.constant 0 : index
    %c8_64 = arith.constant 8 : index
    %75 = vector.load %arg17[%c0_63, %c8_64] : memref<64x16xf32, #tpu.memory_space<vmem>>, vector<64x8xf32>
    tpu.vector_store %arg17[%c0_63, %c8_64], %74 {strides = array<i32>} : memref<64x16xf32, #tpu.memory_space<vmem>>, vector<64x8xf32>,
    %c0_65 = arith.constant 0 : index
    %c0_66 = arith.constant 0 : index
    %c0_67 = arith.constant 0 : index
    %76 = vector.load %arg8[%c0_65, %c0_66, %c0_67] : memref<1x1x16xf32, #tpu.memory_space<vmem>>, vector<1x1x16xf32>
    %77 = vector.shape_cast %76 : vector<1x1x16xf32> to vector<1x16xf32>
    %c0_68 = arith.constant 0 : index
    %c0_69 = arith.constant 0 : index
    %78 = vector.load %arg9[%c0_68, %c0_69] : memref<16x8xf32, #tpu.memory_space<vmem>>, vector<16x8xf32>
    %79 = arith.mulf %77, %77 : vector<1x16xf32>
    %80 = arith.mulf %78, %78 : vector<16x8xf32>
    %cst_70 = arith.constant dense<0.000000e+00> : vector<1x8xf32>
    %81 = tpu.matmul %79, %80, %cst_70 {dimension_numbers = #tpu.dot_dimension_numbers<[1], [0], [0], [1], [0, 0, 1, 1], [], []>} : vector<1x16xf32>, vector<16x8xf32>, vector<1x8xf32> -> vector<1x8xf32>
    %cst_71 = arith.constant 9.99999993E-9 : f32
    %82 = vector.broadcast %cst_71 : f32 to vector<1x8xf32>
    %83 = arith.addf %81, %82 : vector<1x8xf32>
    %84 = math.rsqrt %83 : vector<1x8xf32>
    %c0_72 = arith.constant 0 : index
    %c0_73 = arith.constant 0 : index
    %85 = vector.load %arg17[%c0_72, %c0_73] : memref<64x16xf32, #tpu.memory_space<vmem>>, vector<64x16xf32>
    %86 = vector.broadcast %77 : vector<1x16xf32> to vector<64x16xf32>
    %87 = arith.mulf %85, %86 : vector<64x16xf32>
    %cst_74 = arith.constant dense<0.000000e+00> : vector<64x8xf32>
    %88 = tpu.matmul %87, %78, %cst_74 {dimension_numbers = #tpu.dot_dimension_numbers<[1], [0], [0], [1], [0, 0, 1, 1], [], []>} : vector<64x16xf32>, vector<16x8xf32>, vector<64x8xf32> -> vector<64x8xf32>
    %89 = vector.broadcast %84 : vector<1x8xf32> to vector<64x8xf32>
    %90 = arith.mulf %88, %89 : vector<64x8xf32>
    %c0_75 = arith.constant 0 : index
    %c0_76 = arith.constant 0 : index
    %91 = vector.load %arg10[%c0_75, %c0_76] : memref<1x8xf32, #tpu.memory_space<vmem>>, vector<1x8xf32>
    %92 = vector.broadcast %91 : vector<1x8xf32> to vector<64x8xf32>
    %93 = arith.addf %90, %92 : vector<64x8xf32>
    %94 = arith.addf %93, %25 : vector<64x8xf32>
    %cst_77 = arith.constant dense<0.000000e+00> : vector<64xf32>
    %95 = vector.multi_reduction <add>, %94, %cst_77 [1] : vector<64x8xf32> to vector<64xf32>
    %96 = vector.shape_cast %95 : vector<64xf32> to vector<64x1xf32>
    %cst_78 = arith.constant 8.000000e+00 : f32
    %97 = vector.broadcast %cst_78 : f32 to vector<64x1xf32>
    %98 = arith.divf %96, %97 : vector<64x1xf32>
    %99 = vector.broadcast %98 : vector<64x1xf32> to vector<64x8xf32>
    %100 = arith.subf %94, %99 : vector<64x8xf32>
    %101 = arith.mulf %100, %100 : vector<64x8xf32>
    %cst_79 = arith.constant dense<0.000000e+00> : vector<64xf32>
    %102 = vector.multi_reduction <add>, %101, %cst_79 [1] : vector<64x8xf32> to vector<64xf32>
    %103 = vector.shape_cast %102 : vector<64xf32> to vector<64x1xf32>
    %cst_80 = arith.constant 8.000000e+00 : f32
    %104 = vector.broadcast %cst_80 : f32 to vector<64x1xf32>
    %105 = arith.divf %103, %104 : vector<64x1xf32>
    %cst_81 = arith.constant 9.99999974E-6 : f32
    %106 = vector.broadcast %cst_81 : f32 to vector<64x1xf32>
    %107 = arith.addf %105, %106 : vector<64x1xf32>
    %108 = math.rsqrt %107 : vector<64x1xf32>
    %109 = vector.broadcast %108 : vector<64x1xf32> to vector<64x8xf32>
    %110 = arith.mulf %100, %109 : vector<64x8xf32>
    %c0_82 = arith.constant 0 : index
    %c0_83 = arith.constant 0 : index
    %111 = vector.load %arg18[%c0_82, %c0_83] : memref<64x8xf32, #tpu.memory_space<vmem>>, vector<64x8xf32>
    tpu.vector_store %arg18[%c0_82, %c0_83], %110 {strides = array<i32>} : memref<64x8xf32, #tpu.memory_space<vmem>>, vector<64x8xf32>,
    %c0_84 = arith.constant 0 : index
    %c0_85 = arith.constant 0 : index
    %112 = vector.load %arg18[%c0_84, %c0_85] : memref<64x8xf32, #tpu.memory_space<vmem>>, vector<64x2xf32>
    %c0_86 = arith.constant 0 : index
    %c0_87 = arith.constant 0 : index
    %c0_88 = arith.constant 0 : index
    %113 = vector.load %arg3[%c0_86, %c0_87, %c0_88] : memref<4x16x64xf32, #tpu.memory_space<vmem>>, vector<1x16x64xf32>
    %114 = vector.shape_cast %113 : vector<1x16x64xf32> to vector<16x64xf32>
    %cst_89 = arith.constant dense<0.000000e+00> : vector<16x2xf32>
    %115 = tpu.matmul %114, %112, %cst_89 {dimension_numbers = #tpu.dot_dimension_numbers<[1], [0], [0], [1], [0, 0, 1, 1], [], []>} : vector<16x64xf32>, vector<64x2xf32>, vector<16x2xf32> -> vector<16x2xf32>
    %c0_90 = arith.constant 0 : index
    %c0_91 = arith.constant 0 : index
    %c0_92 = arith.constant 0 : index
    %116 = vector.load %arg4[%c0_90, %c0_91, %c0_92] : memref<4x16x1xf32, #tpu.memory_space<vmem>>, vector<1x16x1xf32>
    %117 = vector.shape_cast %116 : vector<1x16x1xf32> to vector<16x1xf32>
    %118 = vector.broadcast %117 : vector<16x1xf32> to vector<16x2xf32>
    %119 = arith.mulf %115, %118 : vector<16x2xf32>
    %c0_93 = arith.constant 0 : index
    %c0_94 = arith.constant 0 : index
    %c0_95 = arith.constant 0 : index
    %c0_96 = arith.constant 0 : index
    %120 = vector.load %arg1[%c0_93, %c0_94, %c0_95, %c0_96] : memref<1x4x16x2xf32, #tpu.memory_space<vmem>>, vector<1x1x16x2xf32>
    %121 = vector.shape_cast %120 : vector<1x1x16x2xf32> to vector<16x2xf32>
    %122 = arith.addf %119, %121 : vector<16x2xf32>
    %cst_97 = arith.constant dense<0.000000e+00> : vector<1x2xf32>
    %123 = tpu.matmul %0, %122, %cst_97 {dimension_numbers = #tpu.dot_dimension_numbers<[1], [0], [0], [1], [0, 0, 1, 1], [], []>} : vector<1x16xf32>, vector<16x2xf32>, vector<1x2xf32> -> vector<1x2xf32>
    %cst_98 = arith.constant dense<0.000000e+00> : vector<1xf32>
    %124 = vector.multi_reduction <add>, %123, %cst_98 [1] : vector<1x2xf32> to vector<1xf32>
    %125 = vector.shape_cast %124 : vector<1xf32> to vector<1x1xf32>
    %cst_99 = arith.constant 3.125000e-02 : f32
    %126 = vector.broadcast %cst_99 : f32 to vector<1x1xf32>
    %127 = arith.mulf %125, %126 : vector<1x1xf32>
    %128 = vector.broadcast %127 : vector<1x1xf32> to vector<16x2xf32>
    %129 = arith.subf %122, %128 : vector<16x2xf32>
    %130 = arith.mulf %129, %129 : vector<16x2xf32>
    %cst_100 = arith.constant dense<0.000000e+00> : vector<1x2xf32>
    %131 = tpu.matmul %0, %130, %cst_100 {dimension_numbers = #tpu.dot_dimension_numbers<[1], [0], [0], [1], [0, 0, 1, 1], [], []>} : vector<1x16xf32>, vector<16x2xf32>, vector<1x2xf32> -> vector<1x2xf32>
    %cst_101 = arith.constant dense<0.000000e+00> : vector<1xf32>
    %132 = vector.multi_reduction <add>, %131, %cst_101 [1] : vector<1x2xf32> to vector<1xf32>
    %133 = vector.shape_cast %132 : vector<1xf32> to vector<1x1xf32>
    %cst_102 = arith.constant 3.125000e-02 : f32
    %134 = vector.broadcast %cst_102 : f32 to vector<1x1xf32>
    %135 = arith.mulf %133, %134 : vector<1x1xf32>
    %cst_103 = arith.constant 9.99999974E-6 : f32
    %136 = vector.broadcast %cst_103 : f32 to vector<1x1xf32>
    %137 = arith.addf %135, %136 : vector<1x1xf32>
    %138 = math.rsqrt %137 : vector<1x1xf32>
    %139 = vector.broadcast %138 : vector<1x1xf32> to vector<16x2xf32>
    %140 = arith.mulf %129, %139 : vector<16x2xf32>
    %c0_104 = arith.constant 0 : index
    %c0_105 = arith.constant 0 : index
    %c0_106 = arith.constant 0 : index
    %141 = vector.load %arg19[%c0_104, %c0_105, %c0_106] : memref<4x16x2xf32, #tpu.memory_space<vmem>>, vector<1x16x2xf32>
    %142 = vector.shape_cast %141 : vector<1x16x2xf32> to vector<16x2xf32>
    %143 = vector.shape_cast %140 : vector<16x2xf32> to vector<1x16x2xf32>
    tpu.vector_store %arg19[%c0_104, %c0_105, %c0_106], %143 {strides = array<i32>} : memref<4x16x2xf32, #tpu.memory_space<vmem>>, vector<1x16x2xf32>,
    %c0_107 = arith.constant 0 : index
    %c2_108 = arith.constant 2 : index
    %144 = vector.load %arg18[%c0_107, %c2_108] : memref<64x8xf32, #tpu.memory_space<vmem>>, vector<64x2xf32>
    %c1_109 = arith.constant 1 : index
    %c0_110 = arith.constant 0 : index
    %c0_111 = arith.constant 0 : index
    %145 = vector.load %arg3[%c1_109, %c0_110, %c0_111] : memref<4x16x64xf32, #tpu.memory_space<vmem>>, vector<1x16x64xf32>
    %146 = vector.shape_cast %145 : vector<1x16x64xf32> to vector<16x64xf32>
    %cst_112 = arith.constant dense<0.000000e+00> : vector<16x2xf32>
    %147 = tpu.matmul %146, %144, %cst_112 {dimension_numbers = #tpu.dot_dimension_numbers<[1], [0], [0], [1], [0, 0, 1, 1], [], []>} : vector<16x64xf32>, vector<64x2xf32>, vector<16x2xf32> -> vector<16x2xf32>
    %c1_113 = arith.constant 1 : index
    %c0_114 = arith.constant 0 : index
    %c0_115 = arith.constant 0 : index
    %148 = vector.load %arg4[%c1_113, %c0_114, %c0_115] : memref<4x16x1xf32, #tpu.memory_space<vmem>>, vector<1x16x1xf32>
    %149 = vector.shape_cast %148 : vector<1x16x1xf32> to vector<16x1xf32>
    %150 = vector.broadcast %149 : vector<16x1xf32> to vector<16x2xf32>
    %151 = arith.mulf %147, %150 : vector<16x2xf32>
    %c0_116 = arith.constant 0 : index
    %c1_117 = arith.constant 1 : index
    %c0_118 = arith.constant 0 : index
    %c0_119 = arith.constant 0 : index
    %152 = vector.load %arg1[%c0_116, %c1_117, %c0_118, %c0_119] : memref<1x4x16x2xf32, #tpu.memory_space<vmem>>, vector<1x1x16x2xf32>
    %153 = vector.shape_cast %152 : vector<1x1x16x2xf32> to vector<16x2xf32>
    %154 = arith.addf %151, %153 : vector<16x2xf32>
    %cst_120 = arith.constant dense<0.000000e+00> : vector<1x2xf32>
    %155 = tpu.matmul %0, %154, %cst_120 {dimension_numbers = #tpu.dot_dimension_numbers<[1], [0], [0], [1], [0, 0, 1, 1], [], []>} : vector<1x16xf32>, vector<16x2xf32>, vector<1x2xf32> -> vector<1x2xf32>
    %cst_121 = arith.constant dense<0.000000e+00> : vector<1xf32>
    %156 = vector.multi_reduction <add>, %155, %cst_121 [1] : vector<1x2xf32> to vector<1xf32>
    %157 = vector.shape_cast %156 : vector<1xf32> to vector<1x1xf32>
    %cst_122 = arith.constant 3.125000e-02 : f32
    %158 = vector.broadcast %cst_122 : f32 to vector<1x1xf32>
    %159 = arith.mulf %157, %158 : vector<1x1xf32>
    %160 = vector.broadcast %159 : vector<1x1xf32> to vector<16x2xf32>
    %161 = arith.subf %154, %160 : vector<16x2xf32>
    %162 = arith.mulf %161, %161 : vector<16x2xf32>
    %cst_123 = arith.constant dense<0.000000e+00> : vector<1x2xf32>
    %163 = tpu.matmul %0, %162, %cst_123 {dimension_numbers = #tpu.dot_dimension_numbers<[1], [0], [0], [1], [0, 0, 1, 1], [], []>} : vector<1x16xf32>, vector<16x2xf32>, vector<1x2xf32> -> vector<1x2xf32>
    %cst_124 = arith.constant dense<0.000000e+00> : vector<1xf32>
    %164 = vector.multi_reduction <add>, %163, %cst_124 [1] : vector<1x2xf32> to vector<1xf32>
    %165 = vector.shape_cast %164 : vector<1xf32> to vector<1x1xf32>
    %cst_125 = arith.constant 3.125000e-02 : f32
    %166 = vector.broadcast %cst_125 : f32 to vector<1x1xf32>
    %167 = arith.mulf %165, %166 : vector<1x1xf32>
    %cst_126 = arith.constant 9.99999974E-6 : f32
    %168 = vector.broadcast %cst_126 : f32 to vector<1x1xf32>
    %169 = arith.addf %167, %168 : vector<1x1xf32>
    %170 = math.rsqrt %169 : vector<1x1xf32>
    %171 = vector.broadcast %170 : vector<1x1xf32> to vector<16x2xf32>
    %172 = arith.mulf %161, %171 : vector<16x2xf32>
    %c1_127 = arith.constant 1 : index
    %c0_128 = arith.constant 0 : index
    %c0_129 = arith.constant 0 : index
    %173 = vector.load %arg19[%c1_127, %c0_128, %c0_129] : memref<4x16x2xf32, #tpu.memory_space<vmem>>, vector<1x16x2xf32>
    %174 = vector.shape_cast %173 : vector<1x16x2xf32> to vector<16x2xf32>
    %175 = vector.shape_cast %172 : vector<16x2xf32> to vector<1x16x2xf32>
    tpu.vector_store %arg19[%c1_127, %c0_128, %c0_129], %175 {strides = array<i32>} : memref<4x16x2xf32, #tpu.memory_space<vmem>>, vector<1x16x2xf32>,
    %c0_130 = arith.constant 0 : index
    %c4_131 = arith.constant 4 : index
    %176 = vector.load %arg18[%c0_130, %c4_131] : memref<64x8xf32, #tpu.memory_space<vmem>>, vector<64x2xf32>
    %c2_132 = arith.constant 2 : index
    %c0_133 = arith.constant 0 : index
    %c0_134 = arith.constant 0 : index
    %177 = vector.load %arg3[%c2_132, %c0_133, %c0_134] : memref<4x16x64xf32, #tpu.memory_space<vmem>>, vector<1x16x64xf32>
    %178 = vector.shape_cast %177 : vector<1x16x64xf32> to vector<16x64xf32>
    %cst_135 = arith.constant dense<0.000000e+00> : vector<16x2xf32>
    %179 = tpu.matmul %178, %176, %cst_135 {dimension_numbers = #tpu.dot_dimension_numbers<[1], [0], [0], [1], [0, 0, 1, 1], [], []>} : vector<16x64xf32>, vector<64x2xf32>, vector<16x2xf32> -> vector<16x2xf32>
    %c2_136 = arith.constant 2 : index
    %c0_137 = arith.constant 0 : index
    %c0_138 = arith.constant 0 : index
    %180 = vector.load %arg4[%c2_136, %c0_137, %c0_138] : memref<4x16x1xf32, #tpu.memory_space<vmem>>, vector<1x16x1xf32>
    %181 = vector.shape_cast %180 : vector<1x16x1xf32> to vector<16x1xf32>
    %182 = vector.broadcast %181 : vector<16x1xf32> to vector<16x2xf32>
    %183 = arith.mulf %179, %182 : vector<16x2xf32>
    %c0_139 = arith.constant 0 : index
    %c2_140 = arith.constant 2 : index
    %c0_141 = arith.constant 0 : index
    %c0_142 = arith.constant 0 : index
    %184 = vector.load %arg1[%c0_139, %c2_140, %c0_141, %c0_142] : memref<1x4x16x2xf32, #tpu.memory_space<vmem>>, vector<1x1x16x2xf32>
    %185 = vector.shape_cast %184 : vector<1x1x16x2xf32> to vector<16x2xf32>
    %186 = arith.addf %183, %185 : vector<16x2xf32>
    %cst_143 = arith.constant dense<0.000000e+00> : vector<1x2xf32>
    %187 = tpu.matmul %0, %186, %cst_143 {dimension_numbers = #tpu.dot_dimension_numbers<[1], [0], [0], [1], [0, 0, 1, 1], [], []>} : vector<1x16xf32>, vector<16x2xf32>, vector<1x2xf32> -> vector<1x2xf32>
    %cst_144 = arith.constant dense<0.000000e+00> : vector<1xf32>
    %188 = vector.multi_reduction <add>, %187, %cst_144 [1] : vector<1x2xf32> to vector<1xf32>
    %189 = vector.shape_cast %188 : vector<1xf32> to vector<1x1xf32>
    %cst_145 = arith.constant 3.125000e-02 : f32
    %190 = vector.broadcast %cst_145 : f32 to vector<1x1xf32>
    %191 = arith.mulf %189, %190 : vector<1x1xf32>
    %192 = vector.broadcast %191 : vector<1x1xf32> to vector<16x2xf32>
    %193 = arith.subf %186, %192 : vector<16x2xf32>
    %194 = arith.mulf %193, %193 : vector<16x2xf32>
    %cst_146 = arith.constant dense<0.000000e+00> : vector<1x2xf32>
    %195 = tpu.matmul %0, %194, %cst_146 {dimension_numbers = #tpu.dot_dimension_numbers<[1], [0], [0], [1], [0, 0, 1, 1], [], []>} : vector<1x16xf32>, vector<16x2xf32>, vector<1x2xf32> -> vector<1x2xf32>
    %cst_147 = arith.constant dense<0.000000e+00> : vector<1xf32>
    %196 = vector.multi_reduction <add>, %195, %cst_147 [1] : vector<1x2xf32> to vector<1xf32>
    %197 = vector.shape_cast %196 : vector<1xf32> to vector<1x1xf32>
    %cst_148 = arith.constant 3.125000e-02 : f32
    %198 = vector.broadcast %cst_148 : f32 to vector<1x1xf32>
    %199 = arith.mulf %197, %198 : vector<1x1xf32>
    %cst_149 = arith.constant 9.99999974E-6 : f32
    %200 = vector.broadcast %cst_149 : f32 to vector<1x1xf32>
    %201 = arith.addf %199, %200 : vector<1x1xf32>
    %202 = math.rsqrt %201 : vector<1x1xf32>
    %203 = vector.broadcast %202 : vector<1x1xf32> to vector<16x2xf32>
    %204 = arith.mulf %193, %203 : vector<16x2xf32>
    %c2_150 = arith.constant 2 : index
    %c0_151 = arith.constant 0 : index
    %c0_152 = arith.constant 0 : index
    %205 = vector.load %arg19[%c2_150, %c0_151, %c0_152] : memref<4x16x2xf32, #tpu.memory_space<vmem>>, vector<1x16x2xf32>
    %206 = vector.shape_cast %205 : vector<1x16x2xf32> to vector<16x2xf32>
    %207 = vector.shape_cast %204 : vector<16x2xf32> to vector<1x16x2xf32>
    tpu.vector_store %arg19[%c2_150, %c0_151, %c0_152], %207 {strides = array<i32>} : memref<4x16x2xf32, #tpu.memory_space<vmem>>, vector<1x16x2xf32>,
    %c0_153 = arith.constant 0 : index
    %c6_154 = arith.constant 6 : index
    %208 = vector.load %arg18[%c0_153, %c6_154] : memref<64x8xf32, #tpu.memory_space<vmem>>, vector<64x2xf32>
    %c3_155 = arith.constant 3 : index
    %c0_156 = arith.constant 0 : index
    %c0_157 = arith.constant 0 : index
    %209 = vector.load %arg3[%c3_155, %c0_156, %c0_157] : memref<4x16x64xf32, #tpu.memory_space<vmem>>, vector<1x16x64xf32>
    %210 = vector.shape_cast %209 : vector<1x16x64xf32> to vector<16x64xf32>
    %cst_158 = arith.constant dense<0.000000e+00> : vector<16x2xf32>
    %211 = tpu.matmul %210, %208, %cst_158 {dimension_numbers = #tpu.dot_dimension_numbers<[1], [0], [0], [1], [0, 0, 1, 1], [], []>} : vector<16x64xf32>, vector<64x2xf32>, vector<16x2xf32> -> vector<16x2xf32>
    %c3_159 = arith.constant 3 : index
    %c0_160 = arith.constant 0 : index
    %c0_161 = arith.constant 0 : index
    %212 = vector.load %arg4[%c3_159, %c0_160, %c0_161] : memref<4x16x1xf32, #tpu.memory_space<vmem>>, vector<1x16x1xf32>
    %213 = vector.shape_cast %212 : vector<1x16x1xf32> to vector<16x1xf32>
    %214 = vector.broadcast %213 : vector<16x1xf32> to vector<16x2xf32>
    %215 = arith.mulf %211, %214 : vector<16x2xf32>
    %c0_162 = arith.constant 0 : index
    %c3_163 = arith.constant 3 : index
    %c0_164 = arith.constant 0 : index
    %c0_165 = arith.constant 0 : index
    %216 = vector.load %arg1[%c0_162, %c3_163, %c0_164, %c0_165] : memref<1x4x16x2xf32, #tpu.memory_space<vmem>>, vector<1x1x16x2xf32>
    %217 = vector.shape_cast %216 : vector<1x1x16x2xf32> to vector<16x2xf32>
    %218 = arith.addf %215, %217 : vector<16x2xf32>
    %cst_166 = arith.constant dense<0.000000e+00> : vector<1x2xf32>
    %219 = tpu.matmul %0, %218, %cst_166 {dimension_numbers = #tpu.dot_dimension_numbers<[1], [0], [0], [1], [0, 0, 1, 1], [], []>} : vector<1x16xf32>, vector<16x2xf32>, vector<1x2xf32> -> vector<1x2xf32>
    %cst_167 = arith.constant dense<0.000000e+00> : vector<1xf32>
    %220 = vector.multi_reduction <add>, %219, %cst_167 [1] : vector<1x2xf32> to vector<1xf32>
    %221 = vector.shape_cast %220 : vector<1xf32> to vector<1x1xf32>
    %cst_168 = arith.constant 3.125000e-02 : f32
    %222 = vector.broadcast %cst_168 : f32 to vector<1x1xf32>
    %223 = arith.mulf %221, %222 : vector<1x1xf32>
    %224 = vector.broadcast %223 : vector<1x1xf32> to vector<16x2xf32>
    %225 = arith.subf %218, %224 : vector<16x2xf32>
    %226 = arith.mulf %225, %225 : vector<16x2xf32>
    %cst_169 = arith.constant dense<0.000000e+00> : vector<1x2xf32>
    %227 = tpu.matmul %0, %226, %cst_169 {dimension_numbers = #tpu.dot_dimension_numbers<[1], [0], [0], [1], [0, 0, 1, 1], [], []>} : vector<1x16xf32>, vector<16x2xf32>, vector<1x2xf32> -> vector<1x2xf32>
    %cst_170 = arith.constant dense<0.000000e+00> : vector<1xf32>
    %228 = vector.multi_reduction <add>, %227, %cst_170 [1] : vector<1x2xf32> to vector<1xf32>
    %229 = vector.shape_cast %228 : vector<1xf32> to vector<1x1xf32>
    %cst_171 = arith.constant 3.125000e-02 : f32
    %230 = vector.broadcast %cst_171 : f32 to vector<1x1xf32>
    %231 = arith.mulf %229, %230 : vector<1x1xf32>
    %cst_172 = arith.constant 9.99999974E-6 : f32
    %232 = vector.broadcast %cst_172 : f32 to vector<1x1xf32>
    %233 = arith.addf %231, %232 : vector<1x1xf32>
    %234 = math.rsqrt %233 : vector<1x1xf32>
    %235 = vector.broadcast %234 : vector<1x1xf32> to vector<16x2xf32>
    %236 = arith.mulf %225, %235 : vector<16x2xf32>
    %c3_173 = arith.constant 3 : index
    %c0_174 = arith.constant 0 : index
    %c0_175 = arith.constant 0 : index
    %237 = vector.load %arg19[%c3_173, %c0_174, %c0_175] : memref<4x16x2xf32, #tpu.memory_space<vmem>>, vector<1x16x2xf32>
    %238 = vector.shape_cast %237 : vector<1x16x2xf32> to vector<16x2xf32>
    %239 = vector.shape_cast %236 : vector<16x2xf32> to vector<1x16x2xf32>
    tpu.vector_store %arg19[%c3_173, %c0_174, %c0_175], %239 {strides = array<i32>} : memref<4x16x2xf32, #tpu.memory_space<vmem>>, vector<1x16x2xf32>,
    %c0_176 = arith.constant 0 : index
    %c0_177 = arith.constant 0 : index
    %c0_178 = arith.constant 0 : index
    %240 = vector.load %arg19[%c0_176, %c0_177, %c0_178] : memref<4x16x2xf32, #tpu.memory_space<vmem>>, vector<1x16x1xf32>
    %241 = vector.shape_cast %240 : vector<1x16x1xf32> to vector<16x1xf32>
    %c0_179 = arith.constant 0 : index
    %c0_180 = arith.constant 0 : index
    %c0_181 = arith.constant 0 : index
    %242 = vector.load %arg11[%c0_179, %c0_180, %c0_181] : memref<1x16x2xf32, #tpu.memory_space<vmem>>, vector<1x16x1xf32>
    %243 = vector.shape_cast %242 : vector<1x16x1xf32> to vector<16x1xf32>
    %244 = arith.mulf %241, %243 : vector<16x1xf32>
    %c0_182 = arith.constant 0 : index
    %c0_183 = arith.constant 0 : index
    %c1_184 = arith.constant 1 : index
    %245 = vector.load %arg19[%c0_182, %c0_183, %c1_184] : memref<4x16x2xf32, #tpu.memory_space<vmem>>, vector<1x16x1xf32>
    %246 = vector.shape_cast %245 : vector<1x16x1xf32> to vector<16x1xf32>
    %c0_185 = arith.constant 0 : index
    %c0_186 = arith.constant 0 : index
    %c1_187 = arith.constant 1 : index
    %247 = vector.load %arg11[%c0_185, %c0_186, %c1_187] : memref<1x16x2xf32, #tpu.memory_space<vmem>>, vector<1x16x1xf32>
    %248 = vector.shape_cast %247 : vector<1x16x1xf32> to vector<16x1xf32>
    %249 = arith.mulf %246, %248 : vector<16x1xf32>
    %c0_188 = arith.constant 0 : index
    %c0_189 = arith.constant 0 : index
    %c0_190 = arith.constant 0 : index
    %250 = vector.load %arg11[%c0_188, %c0_189, %c0_190] : memref<1x16x2xf32, #tpu.memory_space<vmem>>, vector<1x16x1xf32>
    %251 = vector.shape_cast %250 : vector<1x16x1xf32> to vector<16x1xf32>
    %c0_191 = arith.constant 0 : index
    %c0_192 = arith.constant 0 : index
    %c0_193 = arith.constant 0 : index
    %252 = vector.load %arg11[%c0_191, %c0_192, %c0_193] : memref<1x16x2xf32, #tpu.memory_space<vmem>>, vector<1x16x1xf32>
    %253 = vector.shape_cast %252 : vector<1x16x1xf32> to vector<16x1xf32>
    %254 = arith.mulf %251, %253 : vector<16x1xf32>
    %c0_194 = arith.constant 0 : index
    %c0_195 = arith.constant 0 : index
    %c1_196 = arith.constant 1 : index
    %255 = vector.load %arg11[%c0_194, %c0_195, %c1_196] : memref<1x16x2xf32, #tpu.memory_space<vmem>>, vector<1x16x1xf32>
    %256 = vector.shape_cast %255 : vector<1x16x1xf32> to vector<16x1xf32>
    %c0_197 = arith.constant 0 : index
    %c0_198 = arith.constant 0 : index
    %c1_199 = arith.constant 1 : index
    %257 = vector.load %arg11[%c0_197, %c0_198, %c1_199] : memref<1x16x2xf32, #tpu.memory_space<vmem>>, vector<1x16x1xf32>
    %258 = vector.shape_cast %257 : vector<1x16x1xf32> to vector<16x1xf32>
    %259 = arith.mulf %256, %258 : vector<16x1xf32>
    %c0_200 = arith.constant 0 : index
    %c0_201 = arith.constant 0 : index
    %c0_202 = arith.constant 0 : index
    %260 = vector.load %arg12[%c0_200, %c0_201, %c0_202] : memref<16x16x16xf32, #tpu.memory_space<vmem>>, vector<1x16x16xf32>
    %261 = vector.shape_cast %260 : vector<1x16x16xf32> to vector<16x16xf32>
    %c1_203 = arith.constant 1 : index
    %c0_204 = arith.constant 0 : index
    %c0_205 = arith.constant 0 : index
    %262 = vector.load %arg12[%c1_203, %c0_204, %c0_205] : memref<16x16x16xf32, #tpu.memory_space<vmem>>, vector<1x16x16xf32>
    %263 = vector.shape_cast %262 : vector<1x16x16xf32> to vector<16x16xf32>
    %cst_206 = arith.constant dense<0.000000e+00> : vector<16x1xf32>
    %264 = tpu.matmul %261, %244, %cst_206 {dimension_numbers = #tpu.dot_dimension_numbers<[1], [0], [0], [1], [0, 0, 1, 1], [], []>} : vector<16x16xf32>, vector<16x1xf32>, vector<16x1xf32> -> vector<16x1xf32>
    %cst_207 = arith.constant dense<0.000000e+00> : vector<16x1xf32>
    %265 = tpu.matmul %263, %249, %cst_207 {dimension_numbers = #tpu.dot_dimension_numbers<[1], [0], [0], [1], [0, 0, 1, 1], [], []>} : vector<16x16xf32>, vector<16x1xf32>, vector<16x1xf32> -> vector<16x1xf32>
    %266 = arith.addf %264, %265 : vector<16x1xf32>
    %267 = arith.mulf %261, %261 : vector<16x16xf32>
    %cst_208 = arith.constant dense<0.000000e+00> : vector<16x1xf32>
    %268 = tpu.matmul %267, %254, %cst_208 {dimension_numbers = #tpu.dot_dimension_numbers<[1], [0], [0], [1], [0, 0, 1, 1], [], []>} : vector<16x16xf32>, vector<16x1xf32>, vector<16x1xf32> -> vector<16x1xf32>
    %269 = arith.mulf %263, %263 : vector<16x16xf32>
    %cst_209 = arith.constant dense<0.000000e+00> : vector<16x1xf32>
    %270 = tpu.matmul %269, %259, %cst_209 {dimension_numbers = #tpu.dot_dimension_numbers<[1], [0], [0], [1], [0, 0, 1, 1], [], []>} : vector<16x16xf32>, vector<16x1xf32>, vector<16x1xf32> -> vector<16x1xf32>
    %271 = arith.addf %268, %270 : vector<16x1xf32>
    %cst_210 = arith.constant 9.99999993E-9 : f32
    %272 = vector.broadcast %cst_210 : f32 to vector<16x1xf32>
    %273 = arith.addf %271, %272 : vector<16x1xf32>
    %274 = math.rsqrt %273 : vector<16x1xf32>
    %275 = arith.mulf %266, %274 : vector<16x1xf32>
    %c0_211 = arith.constant 0 : index
    %c0_212 = arith.constant 0 : index
    %c0_213 = arith.constant 0 : index
    %276 = vector.load %arg13[%c0_211, %c0_212, %c0_213] : memref<4x16x2xf32, #tpu.memory_space<vmem>>, vector<1x16x1xf32>
    %277 = vector.shape_cast %276 : vector<1x16x1xf32> to vector<16x1xf32>
    %278 = arith.addf %275, %277 : vector<16x1xf32>
    %cst_214 = arith.constant 0.000000e+00 : f32
    %279 = vector.broadcast %cst_214 : f32 to vector<16x1xf32>
    %280 = arith.maximumf %278, %279 : vector<16x1xf32>
    %c0_215 = arith.constant 0 : index
    %c0_216 = arith.constant 0 : index
    %c0_217 = arith.constant 0 : index
    %281 = vector.load %arg19[%c0_215, %c0_216, %c0_217] : memref<4x16x2xf32, #tpu.memory_space<vmem>>, vector<1x16x1xf32>
    %282 = vector.shape_cast %281 : vector<1x16x1xf32> to vector<16x1xf32>
    %283 = arith.addf %280, %282 : vector<16x1xf32>
    %c2_218 = arith.constant 2 : index
    %c0_219 = arith.constant 0 : index
    %c0_220 = arith.constant 0 : index
    %284 = vector.load %arg12[%c2_218, %c0_219, %c0_220] : memref<16x16x16xf32, #tpu.memory_space<vmem>>, vector<1x16x16xf32>
    %285 = vector.shape_cast %284 : vector<1x16x16xf32> to vector<16x16xf32>
    %c3_221 = arith.constant 3 : index
    %c0_222 = arith.constant 0 : index
    %c0_223 = arith.constant 0 : index
    %286 = vector.load %arg12[%c3_221, %c0_222, %c0_223] : memref<16x16x16xf32, #tpu.memory_space<vmem>>, vector<1x16x16xf32>
    %287 = vector.shape_cast %286 : vector<1x16x16xf32> to vector<16x16xf32>
    %cst_224 = arith.constant dense<0.000000e+00> : vector<16x1xf32>
    %288 = tpu.matmul %285, %244, %cst_224 {dimension_numbers = #tpu.dot_dimension_numbers<[1], [0], [0], [1], [0, 0, 1, 1], [], []>} : vector<16x16xf32>, vector<16x1xf32>, vector<16x1xf32> -> vector<16x1xf32>
    %cst_225 = arith.constant dense<0.000000e+00> : vector<16x1xf32>
    %289 = tpu.matmul %287, %249, %cst_225 {dimension_numbers = #tpu.dot_dimension_numbers<[1], [0], [0], [1], [0, 0, 1, 1], [], []>} : vector<16x16xf32>, vector<16x1xf32>, vector<16x1xf32> -> vector<16x1xf32>
    %290 = arith.addf %288, %289 : vector<16x1xf32>
    %291 = arith.mulf %285, %285 : vector<16x16xf32>
    %cst_226 = arith.constant dense<0.000000e+00> : vector<16x1xf32>
    %292 = tpu.matmul %291, %254, %cst_226 {dimension_numbers = #tpu.dot_dimension_numbers<[1], [0], [0], [1], [0, 0, 1, 1], [], []>} : vector<16x16xf32>, vector<16x1xf32>, vector<16x1xf32> -> vector<16x1xf32>
    %293 = arith.mulf %287, %287 : vector<16x16xf32>
    %cst_227 = arith.constant dense<0.000000e+00> : vector<16x1xf32>
    %294 = tpu.matmul %293, %259, %cst_227 {dimension_numbers = #tpu.dot_dimension_numbers<[1], [0], [0], [1], [0, 0, 1, 1], [], []>} : vector<16x16xf32>, vector<16x1xf32>, vector<16x1xf32> -> vector<16x1xf32>
    %295 = arith.addf %292, %294 : vector<16x1xf32>
    %cst_228 = arith.constant 9.99999993E-9 : f32
    %296 = vector.broadcast %cst_228 : f32 to vector<16x1xf32>
    %297 = arith.addf %295, %296 : vector<16x1xf32>
    %298 = math.rsqrt %297 : vector<16x1xf32>
    %299 = arith.mulf %290, %298 : vector<16x1xf32>
    %c0_229 = arith.constant 0 : index
    %c0_230 = arith.constant 0 : index
    %c1_231 = arith.constant 1 : index
    %300 = vector.load %arg13[%c0_229, %c0_230, %c1_231] : memref<4x16x2xf32, #tpu.memory_space<vmem>>, vector<1x16x1xf32>
    %301 = vector.shape_cast %300 : vector<1x16x1xf32> to vector<16x1xf32>
    %302 = arith.addf %299, %301 : vector<16x1xf32>
    %cst_232 = arith.constant 0.000000e+00 : f32
    %303 = vector.broadcast %cst_232 : f32 to vector<16x1xf32>
    %304 = arith.maximumf %302, %303 : vector<16x1xf32>
    %c0_233 = arith.constant 0 : index
    %c0_234 = arith.constant 0 : index
    %c1_235 = arith.constant 1 : index
    %305 = vector.load %arg19[%c0_233, %c0_234, %c1_235] : memref<4x16x2xf32, #tpu.memory_space<vmem>>, vector<1x16x1xf32>
    %306 = vector.shape_cast %305 : vector<1x16x1xf32> to vector<16x1xf32>
    %307 = arith.addf %304, %306 : vector<16x1xf32>
    %cst_236 = arith.constant dense<0.000000e+00> : vector<1x1xf32>
    %308 = tpu.matmul %0, %283, %cst_236 {dimension_numbers = #tpu.dot_dimension_numbers<[1], [0], [0], [1], [0, 0, 1, 1], [], []>} : vector<1x16xf32>, vector<16x1xf32>, vector<1x1xf32> -> vector<1x1xf32>
    %cst_237 = arith.constant dense<0.000000e+00> : vector<1x1xf32>
    %309 = tpu.matmul %0, %307, %cst_237 {dimension_numbers = #tpu.dot_dimension_numbers<[1], [0], [0], [1], [0, 0, 1, 1], [], []>} : vector<1x16xf32>, vector<16x1xf32>, vector<1x1xf32> -> vector<1x1xf32>
    %310 = arith.addf %308, %309 : vector<1x1xf32>
    %cst_238 = arith.constant 3.125000e-02 : f32
    %311 = vector.broadcast %cst_238 : f32 to vector<1x1xf32>
    %312 = arith.mulf %310, %311 : vector<1x1xf32>
    %313 = vector.broadcast %312 : vector<1x1xf32> to vector<16x1xf32>
    %314 = arith.subf %283, %313 : vector<16x1xf32>
    %315 = vector.broadcast %312 : vector<1x1xf32> to vector<16x1xf32>
    %316 = arith.subf %307, %315 : vector<16x1xf32>
    %317 = arith.mulf %314, %314 : vector<16x1xf32>
    %cst_239 = arith.constant dense<0.000000e+00> : vector<1x1xf32>
    %318 = tpu.matmul %0, %317, %cst_239 {dimension_numbers = #tpu.dot_dimension_numbers<[1], [0], [0], [1], [0, 0, 1, 1], [], []>} : vector<1x16xf32>, vector<16x1xf32>, vector<1x1xf32> -> vector<1x1xf32>
    %319 = arith.mulf %316, %316 : vector<16x1xf32>
    %cst_240 = arith.constant dense<0.000000e+00> : vector<1x1xf32>
    %320 = tpu.matmul %0, %319, %cst_240 {dimension_numbers = #tpu.dot_dimension_numbers<[1], [0], [0], [1], [0, 0, 1, 1], [], []>} : vector<1x16xf32>, vector<16x1xf32>, vector<1x1xf32> -> vector<1x1xf32>
    %321 = arith.addf %318, %320 : vector<1x1xf32>
    %cst_241 = arith.constant 3.125000e-02 : f32
    %322 = vector.broadcast %cst_241 : f32 to vector<1x1xf32>
    %323 = arith.mulf %321, %322 : vector<1x1xf32>
    %cst_242 = arith.constant 9.99999974E-6 : f32
    %324 = vector.broadcast %cst_242 : f32 to vector<1x1xf32>
    %325 = arith.addf %323, %324 : vector<1x1xf32>
    %326 = math.rsqrt %325 : vector<1x1xf32>
    %327 = vector.broadcast %326 : vector<1x1xf32> to vector<16x1xf32>
    %328 = arith.mulf %314, %327 : vector<16x1xf32>
    %c0_243 = arith.constant 0 : index
    %c0_244 = arith.constant 0 : index
    %c0_245 = arith.constant 0 : index
    %c0_246 = arith.constant 0 : index
    %329 = vector.load %arg14[%c0_243, %c0_244, %c0_245, %c0_246] : memref<1x4x16x2xf32, #tpu.memory_space<vmem>>, vector<1x1x16x1xf32>
    %330 = vector.shape_cast %329 : vector<1x1x16x1xf32> to vector<16x1xf32>
    %331 = vector.shape_cast %328 : vector<16x1xf32> to vector<1x1x16x1xf32>
    tpu.vector_store %arg14[%c0_243, %c0_244, %c0_245, %c0_246], %331 {strides = array<i32>} : memref<1x4x16x2xf32, #tpu.memory_space<vmem>>, vector<1x1x16x1xf32>,
    %332 = vector.broadcast %326 : vector<1x1xf32> to vector<16x1xf32>
    %333 = arith.mulf %316, %332 : vector<16x1xf32>
    %c0_247 = arith.constant 0 : index
    %c0_248 = arith.constant 0 : index
    %c0_249 = arith.constant 0 : index
    %c1_250 = arith.constant 1 : index
    %334 = vector.load %arg14[%c0_247, %c0_248, %c0_249, %c1_250] : memref<1x4x16x2xf32, #tpu.memory_space<vmem>>, vector<1x1x16x1xf32>
    %335 = vector.shape_cast %334 : vector<1x1x16x1xf32> to vector<16x1xf32>
    %336 = vector.shape_cast %333 : vector<16x1xf32> to vector<1x1x16x1xf32>
    tpu.vector_store %arg14[%c0_247, %c0_248, %c0_249, %c1_250], %336 {strides = array<i32>} : memref<1x4x16x2xf32, #tpu.memory_space<vmem>>, vector<1x1x16x1xf32>,
    %c1_251 = arith.constant 1 : index
    %c0_252 = arith.constant 0 : index
    %c0_253 = arith.constant 0 : index
    %337 = vector.load %arg19[%c1_251, %c0_252, %c0_253] : memref<4x16x2xf32, #tpu.memory_space<vmem>>, vector<1x16x1xf32>
    %338 = vector.shape_cast %337 : vector<1x16x1xf32> to vector<16x1xf32>
    %c0_254 = arith.constant 0 : index
    %c0_255 = arith.constant 0 : index
    %c0_256 = arith.constant 0 : index
    %339 = vector.load %arg11[%c0_254, %c0_255, %c0_256] : memref<1x16x2xf32, #tpu.memory_space<vmem>>, vector<1x16x1xf32>
    %340 = vector.shape_cast %339 : vector<1x16x1xf32> to vector<16x1xf32>
    %341 = arith.mulf %338, %340 : vector<16x1xf32>
    %c1_257 = arith.constant 1 : index
    %c0_258 = arith.constant 0 : index
    %c1_259 = arith.constant 1 : index
    %342 = vector.load %arg19[%c1_257, %c0_258, %c1_259] : memref<4x16x2xf32, #tpu.memory_space<vmem>>, vector<1x16x1xf32>
    %343 = vector.shape_cast %342 : vector<1x16x1xf32> to vector<16x1xf32>
    %c0_260 = arith.constant 0 : index
    %c0_261 = arith.constant 0 : index
    %c1_262 = arith.constant 1 : index
    %344 = vector.load %arg11[%c0_260, %c0_261, %c1_262] : memref<1x16x2xf32, #tpu.memory_space<vmem>>, vector<1x16x1xf32>
    %345 = vector.shape_cast %344 : vector<1x16x1xf32> to vector<16x1xf32>
    %346 = arith.mulf %343, %345 : vector<16x1xf32>
    %c0_263 = arith.constant 0 : index
    %c0_264 = arith.constant 0 : index
    %c0_265 = arith.constant 0 : index
    %347 = vector.load %arg11[%c0_263, %c0_264, %c0_265] : memref<1x16x2xf32, #tpu.memory_space<vmem>>, vector<1x16x1xf32>
    %348 = vector.shape_cast %347 : vector<1x16x1xf32> to vector<16x1xf32>
    %c0_266 = arith.constant 0 : index
    %c0_267 = arith.constant 0 : index
    %c0_268 = arith.constant 0 : index
    %349 = vector.load %arg11[%c0_266, %c0_267, %c0_268] : memref<1x16x2xf32, #tpu.memory_space<vmem>>, vector<1x16x1xf32>
    %350 = vector.shape_cast %349 : vector<1x16x1xf32> to vector<16x1xf32>
    %351 = arith.mulf %348, %350 : vector<16x1xf32>
    %c0_269 = arith.constant 0 : index
    %c0_270 = arith.constant 0 : index
    %c1_271 = arith.constant 1 : index
    %352 = vector.load %arg11[%c0_269, %c0_270, %c1_271] : memref<1x16x2xf32, #tpu.memory_space<vmem>>, vector<1x16x1xf32>
    %353 = vector.shape_cast %352 : vector<1x16x1xf32> to vector<16x1xf32>
    %c0_272 = arith.constant 0 : index
    %c0_273 = arith.constant 0 : index
    %c1_274 = arith.constant 1 : index
    %354 = vector.load %arg11[%c0_272, %c0_273, %c1_274] : memref<1x16x2xf32, #tpu.memory_space<vmem>>, vector<1x16x1xf32>
    %355 = vector.shape_cast %354 : vector<1x16x1xf32> to vector<16x1xf32>
    %356 = arith.mulf %353, %355 : vector<16x1xf32>
    %c4_275 = arith.constant 4 : index
    %c0_276 = arith.constant 0 : index
    %c0_277 = arith.constant 0 : index
    %357 = vector.load %arg12[%c4_275, %c0_276, %c0_277] : memref<16x16x16xf32, #tpu.memory_space<vmem>>, vector<1x16x16xf32>
    %358 = vector.shape_cast %357 : vector<1x16x16xf32> to vector<16x16xf32>
    %c5 = arith.constant 5 : index
    %c0_278 = arith.constant 0 : index
    %c0_279 = arith.constant 0 : index
    %359 = vector.load %arg12[%c5, %c0_278, %c0_279] : memref<16x16x16xf32, #tpu.memory_space<vmem>>, vector<1x16x16xf32>
    %360 = vector.shape_cast %359 : vector<1x16x16xf32> to vector<16x16xf32>
    %cst_280 = arith.constant dense<0.000000e+00> : vector<16x1xf32>
    %361 = tpu.matmul %358, %341, %cst_280 {dimension_numbers = #tpu.dot_dimension_numbers<[1], [0], [0], [1], [0, 0, 1, 1], [], []>} : vector<16x16xf32>, vector<16x1xf32>, vector<16x1xf32> -> vector<16x1xf32>
    %cst_281 = arith.constant dense<0.000000e+00> : vector<16x1xf32>
    %362 = tpu.matmul %360, %346, %cst_281 {dimension_numbers = #tpu.dot_dimension_numbers<[1], [0], [0], [1], [0, 0, 1, 1], [], []>} : vector<16x16xf32>, vector<16x1xf32>, vector<16x1xf32> -> vector<16x1xf32>
    %363 = arith.addf %361, %362 : vector<16x1xf32>
    %364 = arith.mulf %358, %358 : vector<16x16xf32>
    %cst_282 = arith.constant dense<0.000000e+00> : vector<16x1xf32>
    %365 = tpu.matmul %364, %351, %cst_282 {dimension_numbers = #tpu.dot_dimension_numbers<[1], [0], [0], [1], [0, 0, 1, 1], [], []>} : vector<16x16xf32>, vector<16x1xf32>, vector<16x1xf32> -> vector<16x1xf32>
    %366 = arith.mulf %360, %360 : vector<16x16xf32>
    %cst_283 = arith.constant dense<0.000000e+00> : vector<16x1xf32>
    %367 = tpu.matmul %366, %356, %cst_283 {dimension_numbers = #tpu.dot_dimension_numbers<[1], [0], [0], [1], [0, 0, 1, 1], [], []>} : vector<16x16xf32>, vector<16x1xf32>, vector<16x1xf32> -> vector<16x1xf32>
    %368 = arith.addf %365, %367 : vector<16x1xf32>
    %cst_284 = arith.constant 9.99999993E-9 : f32
    %369 = vector.broadcast %cst_284 : f32 to vector<16x1xf32>
    %370 = arith.addf %368, %369 : vector<16x1xf32>
    %371 = math.rsqrt %370 : vector<16x1xf32>
    %372 = arith.mulf %363, %371 : vector<16x1xf32>
    %c1_285 = arith.constant 1 : index
    %c0_286 = arith.constant 0 : index
    %c0_287 = arith.constant 0 : index
    %373 = vector.load %arg13[%c1_285, %c0_286, %c0_287] : memref<4x16x2xf32, #tpu.memory_space<vmem>>, vector<1x16x1xf32>
    %374 = vector.shape_cast %373 : vector<1x16x1xf32> to vector<16x1xf32>
    %375 = arith.addf %372, %374 : vector<16x1xf32>
    %cst_288 = arith.constant 0.000000e+00 : f32
    %376 = vector.broadcast %cst_288 : f32 to vector<16x1xf32>
    %377 = arith.maximumf %375, %376 : vector<16x1xf32>
    %c1_289 = arith.constant 1 : index
    %c0_290 = arith.constant 0 : index
    %c0_291 = arith.constant 0 : index
    %378 = vector.load %arg19[%c1_289, %c0_290, %c0_291] : memref<4x16x2xf32, #tpu.memory_space<vmem>>, vector<1x16x1xf32>
    %379 = vector.shape_cast %378 : vector<1x16x1xf32> to vector<16x1xf32>
    %380 = arith.addf %377, %379 : vector<16x1xf32>
    %c6_292 = arith.constant 6 : index
    %c0_293 = arith.constant 0 : index
    %c0_294 = arith.constant 0 : index
    %381 = vector.load %arg12[%c6_292, %c0_293, %c0_294] : memref<16x16x16xf32, #tpu.memory_space<vmem>>, vector<1x16x16xf32>
    %382 = vector.shape_cast %381 : vector<1x16x16xf32> to vector<16x16xf32>
    %c7 = arith.constant 7 : index
    %c0_295 = arith.constant 0 : index
    %c0_296 = arith.constant 0 : index
    %383 = vector.load %arg12[%c7, %c0_295, %c0_296] : memref<16x16x16xf32, #tpu.memory_space<vmem>>, vector<1x16x16xf32>
    %384 = vector.shape_cast %383 : vector<1x16x16xf32> to vector<16x16xf32>
    %cst_297 = arith.constant dense<0.000000e+00> : vector<16x1xf32>
    %385 = tpu.matmul %382, %341, %cst_297 {dimension_numbers = #tpu.dot_dimension_numbers<[1], [0], [0], [1], [0, 0, 1, 1], [], []>} : vector<16x16xf32>, vector<16x1xf32>, vector<16x1xf32> -> vector<16x1xf32>
    %cst_298 = arith.constant dense<0.000000e+00> : vector<16x1xf32>
    %386 = tpu.matmul %384, %346, %cst_298 {dimension_numbers = #tpu.dot_dimension_numbers<[1], [0], [0], [1], [0, 0, 1, 1], [], []>} : vector<16x16xf32>, vector<16x1xf32>, vector<16x1xf32> -> vector<16x1xf32>
    %387 = arith.addf %385, %386 : vector<16x1xf32>
    %388 = arith.mulf %382, %382 : vector<16x16xf32>
    %cst_299 = arith.constant dense<0.000000e+00> : vector<16x1xf32>
    %389 = tpu.matmul %388, %351, %cst_299 {dimension_numbers = #tpu.dot_dimension_numbers<[1], [0], [0], [1], [0, 0, 1, 1], [], []>} : vector<16x16xf32>, vector<16x1xf32>, vector<16x1xf32> -> vector<16x1xf32>
    %390 = arith.mulf %384, %384 : vector<16x16xf32>
    %cst_300 = arith.constant dense<0.000000e+00> : vector<16x1xf32>
    %391 = tpu.matmul %390, %356, %cst_300 {dimension_numbers = #tpu.dot_dimension_numbers<[1], [0], [0], [1], [0, 0, 1, 1], [], []>} : vector<16x16xf32>, vector<16x1xf32>, vector<16x1xf32> -> vector<16x1xf32>
    %392 = arith.addf %389, %391 : vector<16x1xf32>
    %cst_301 = arith.constant 9.99999993E-9 : f32
    %393 = vector.broadcast %cst_301 : f32 to vector<16x1xf32>
    %394 = arith.addf %392, %393 : vector<16x1xf32>
    %395 = math.rsqrt %394 : vector<16x1xf32>
    %396 = arith.mulf %387, %395 : vector<16x1xf32>
    %c1_302 = arith.constant 1 : index
    %c0_303 = arith.constant 0 : index
    %c1_304 = arith.constant 1 : index
    %397 = vector.load %arg13[%c1_302, %c0_303, %c1_304] : memref<4x16x2xf32, #tpu.memory_space<vmem>>, vector<1x16x1xf32>
    %398 = vector.shape_cast %397 : vector<1x16x1xf32> to vector<16x1xf32>
    %399 = arith.addf %396, %398 : vector<16x1xf32>
    %cst_305 = arith.constant 0.000000e+00 : f32
    %400 = vector.broadcast %cst_305 : f32 to vector<16x1xf32>
    %401 = arith.maximumf %399, %400 : vector<16x1xf32>
    %c1_306 = arith.constant 1 : index
    %c0_307 = arith.constant 0 : index
    %c1_308 = arith.constant 1 : index
    %402 = vector.load %arg19[%c1_306, %c0_307, %c1_308] : memref<4x16x2xf32, #tpu.memory_space<vmem>>, vector<1x16x1xf32>
    %403 = vector.shape_cast %402 : vector<1x16x1xf32> to vector<16x1xf32>
    %404 = arith.addf %401, %403 : vector<16x1xf32>
    %cst_309 = arith.constant dense<0.000000e+00> : vector<1x1xf32>
    %405 = tpu.matmul %0, %380, %cst_309 {dimension_numbers = #tpu.dot_dimension_numbers<[1], [0], [0], [1], [0, 0, 1, 1], [], []>} : vector<1x16xf32>, vector<16x1xf32>, vector<1x1xf32> -> vector<1x1xf32>
    %cst_310 = arith.constant dense<0.000000e+00> : vector<1x1xf32>
    %406 = tpu.matmul %0, %404, %cst_310 {dimension_numbers = #tpu.dot_dimension_numbers<[1], [0], [0], [1], [0, 0, 1, 1], [], []>} : vector<1x16xf32>, vector<16x1xf32>, vector<1x1xf32> -> vector<1x1xf32>
    %407 = arith.addf %405, %406 : vector<1x1xf32>
    %cst_311 = arith.constant 3.125000e-02 : f32
    %408 = vector.broadcast %cst_311 : f32 to vector<1x1xf32>
    %409 = arith.mulf %407, %408 : vector<1x1xf32>
    %410 = vector.broadcast %409 : vector<1x1xf32> to vector<16x1xf32>
    %411 = arith.subf %380, %410 : vector<16x1xf32>
    %412 = vector.broadcast %409 : vector<1x1xf32> to vector<16x1xf32>
    %413 = arith.subf %404, %412 : vector<16x1xf32>
    %414 = arith.mulf %411, %411 : vector<16x1xf32>
    %cst_312 = arith.constant dense<0.000000e+00> : vector<1x1xf32>
    %415 = tpu.matmul %0, %414, %cst_312 {dimension_numbers = #tpu.dot_dimension_numbers<[1], [0], [0], [1], [0, 0, 1, 1], [], []>} : vector<1x16xf32>, vector<16x1xf32>, vector<1x1xf32> -> vector<1x1xf32>
    %416 = arith.mulf %413, %413 : vector<16x1xf32>
    %cst_313 = arith.constant dense<0.000000e+00> : vector<1x1xf32>
    %417 = tpu.matmul %0, %416, %cst_313 {dimension_numbers = #tpu.dot_dimension_numbers<[1], [0], [0], [1], [0, 0, 1, 1], [], []>} : vector<1x16xf32>, vector<16x1xf32>, vector<1x1xf32> -> vector<1x1xf32>
    %418 = arith.addf %415, %417 : vector<1x1xf32>
    %cst_314 = arith.constant 3.125000e-02 : f32
    %419 = vector.broadcast %cst_314 : f32 to vector<1x1xf32>
    %420 = arith.mulf %418, %419 : vector<1x1xf32>
    %cst_315 = arith.constant 9.99999974E-6 : f32
    %421 = vector.broadcast %cst_315 : f32 to vector<1x1xf32>
    %422 = arith.addf %420, %421 : vector<1x1xf32>
    %423 = math.rsqrt %422 : vector<1x1xf32>
    %424 = vector.broadcast %423 : vector<1x1xf32> to vector<16x1xf32>
    %425 = arith.mulf %411, %424 : vector<16x1xf32>
    %c0_316 = arith.constant 0 : index
    %c1_317 = arith.constant 1 : index
    %c0_318 = arith.constant 0 : index
    %c0_319 = arith.constant 0 : index
    %426 = vector.load %arg14[%c0_316, %c1_317, %c0_318, %c0_319] : memref<1x4x16x2xf32, #tpu.memory_space<vmem>>, vector<1x1x16x1xf32>
    %427 = vector.shape_cast %426 : vector<1x1x16x1xf32> to vector<16x1xf32>
    %428 = vector.shape_cast %425 : vector<16x1xf32> to vector<1x1x16x1xf32>
    tpu.vector_store %arg14[%c0_316, %c1_317, %c0_318, %c0_319], %428 {strides = array<i32>} : memref<1x4x16x2xf32, #tpu.memory_space<vmem>>, vector<1x1x16x1xf32>,
    %429 = vector.broadcast %423 : vector<1x1xf32> to vector<16x1xf32>
    %430 = arith.mulf %413, %429 : vector<16x1xf32>
    %c0_320 = arith.constant 0 : index
    %c1_321 = arith.constant 1 : index
    %c0_322 = arith.constant 0 : index
    %c1_323 = arith.constant 1 : index
    %431 = vector.load %arg14[%c0_320, %c1_321, %c0_322, %c1_323] : memref<1x4x16x2xf32, #tpu.memory_space<vmem>>, vector<1x1x16x1xf32>
    %432 = vector.shape_cast %431 : vector<1x1x16x1xf32> to vector<16x1xf32>
    %433 = vector.shape_cast %430 : vector<16x1xf32> to vector<1x1x16x1xf32>
    tpu.vector_store %arg14[%c0_320, %c1_321, %c0_322, %c1_323], %433 {strides = array<i32>} : memref<1x4x16x2xf32, #tpu.memory_space<vmem>>, vector<1x1x16x1xf32>,
    %c2_324 = arith.constant 2 : index
    %c0_325 = arith.constant 0 : index
    %c0_326 = arith.constant 0 : index
    %434 = vector.load %arg19[%c2_324, %c0_325, %c0_326] : memref<4x16x2xf32, #tpu.memory_space<vmem>>, vector<1x16x1xf32>
    %435 = vector.shape_cast %434 : vector<1x16x1xf32> to vector<16x1xf32>
    %c0_327 = arith.constant 0 : index
    %c0_328 = arith.constant 0 : index
    %c0_329 = arith.constant 0 : index
    %436 = vector.load %arg11[%c0_327, %c0_328, %c0_329] : memref<1x16x2xf32, #tpu.memory_space<vmem>>, vector<1x16x1xf32>
    %437 = vector.shape_cast %436 : vector<1x16x1xf32> to vector<16x1xf32>
    %438 = arith.mulf %435, %437 : vector<16x1xf32>
    %c2_330 = arith.constant 2 : index
    %c0_331 = arith.constant 0 : index
    %c1_332 = arith.constant 1 : index
    %439 = vector.load %arg19[%c2_330, %c0_331, %c1_332] : memref<4x16x2xf32, #tpu.memory_space<vmem>>, vector<1x16x1xf32>
    %440 = vector.shape_cast %439 : vector<1x16x1xf32> to vector<16x1xf32>
    %c0_333 = arith.constant 0 : index
    %c0_334 = arith.constant 0 : index
    %c1_335 = arith.constant 1 : index
    %441 = vector.load %arg11[%c0_333, %c0_334, %c1_335] : memref<1x16x2xf32, #tpu.memory_space<vmem>>, vector<1x16x1xf32>
    %442 = vector.shape_cast %441 : vector<1x16x1xf32> to vector<16x1xf32>
    %443 = arith.mulf %440, %442 : vector<16x1xf32>
    %c0_336 = arith.constant 0 : index
    %c0_337 = arith.constant 0 : index
    %c0_338 = arith.constant 0 : index
    %444 = vector.load %arg11[%c0_336, %c0_337, %c0_338] : memref<1x16x2xf32, #tpu.memory_space<vmem>>, vector<1x16x1xf32>
    %445 = vector.shape_cast %444 : vector<1x16x1xf32> to vector<16x1xf32>
    %c0_339 = arith.constant 0 : index
    %c0_340 = arith.constant 0 : index
    %c0_341 = arith.constant 0 : index
    %446 = vector.load %arg11[%c0_339, %c0_340, %c0_341] : memref<1x16x2xf32, #tpu.memory_space<vmem>>, vector<1x16x1xf32>
    %447 = vector.shape_cast %446 : vector<1x16x1xf32> to vector<16x1xf32>
    %448 = arith.mulf %445, %447 : vector<16x1xf32>
    %c0_342 = arith.constant 0 : index
    %c0_343 = arith.constant 0 : index
    %c1_344 = arith.constant 1 : index
    %449 = vector.load %arg11[%c0_342, %c0_343, %c1_344] : memref<1x16x2xf32, #tpu.memory_space<vmem>>, vector<1x16x1xf32>
    %450 = vector.shape_cast %449 : vector<1x16x1xf32> to vector<16x1xf32>
    %c0_345 = arith.constant 0 : index
    %c0_346 = arith.constant 0 : index
    %c1_347 = arith.constant 1 : index
    %451 = vector.load %arg11[%c0_345, %c0_346, %c1_347] : memref<1x16x2xf32, #tpu.memory_space<vmem>>, vector<1x16x1xf32>
    %452 = vector.shape_cast %451 : vector<1x16x1xf32> to vector<16x1xf32>
    %453 = arith.mulf %450, %452 : vector<16x1xf32>
    %c8_348 = arith.constant 8 : index
    %c0_349 = arith.constant 0 : index
    %c0_350 = arith.constant 0 : index
    %454 = vector.load %arg12[%c8_348, %c0_349, %c0_350] : memref<16x16x16xf32, #tpu.memory_space<vmem>>, vector<1x16x16xf32>
    %455 = vector.shape_cast %454 : vector<1x16x16xf32> to vector<16x16xf32>
    %c9 = arith.constant 9 : index
    %c0_351 = arith.constant 0 : index
    %c0_352 = arith.constant 0 : index
    %456 = vector.load %arg12[%c9, %c0_351, %c0_352] : memref<16x16x16xf32, #tpu.memory_space<vmem>>, vector<1x16x16xf32>
    %457 = vector.shape_cast %456 : vector<1x16x16xf32> to vector<16x16xf32>
    %cst_353 = arith.constant dense<0.000000e+00> : vector<16x1xf32>
    %458 = tpu.matmul %455, %438, %cst_353 {dimension_numbers = #tpu.dot_dimension_numbers<[1], [0], [0], [1], [0, 0, 1, 1], [], []>} : vector<16x16xf32>, vector<16x1xf32>, vector<16x1xf32> -> vector<16x1xf32>
    %cst_354 = arith.constant dense<0.000000e+00> : vector<16x1xf32>
    %459 = tpu.matmul %457, %443, %cst_354 {dimension_numbers = #tpu.dot_dimension_numbers<[1], [0], [0], [1], [0, 0, 1, 1], [], []>} : vector<16x16xf32>, vector<16x1xf32>, vector<16x1xf32> -> vector<16x1xf32>
    %460 = arith.addf %458, %459 : vector<16x1xf32>
    %461 = arith.mulf %455, %455 : vector<16x16xf32>
    %cst_355 = arith.constant dense<0.000000e+00> : vector<16x1xf32>
    %462 = tpu.matmul %461, %448, %cst_355 {dimension_numbers = #tpu.dot_dimension_numbers<[1], [0], [0], [1], [0, 0, 1, 1], [], []>} : vector<16x16xf32>, vector<16x1xf32>, vector<16x1xf32> -> vector<16x1xf32>
    %463 = arith.mulf %457, %457 : vector<16x16xf32>
    %cst_356 = arith.constant dense<0.000000e+00> : vector<16x1xf32>
    %464 = tpu.matmul %463, %453, %cst_356 {dimension_numbers = #tpu.dot_dimension_numbers<[1], [0], [0], [1], [0, 0, 1, 1], [], []>} : vector<16x16xf32>, vector<16x1xf32>, vector<16x1xf32> -> vector<16x1xf32>
    %465 = arith.addf %462, %464 : vector<16x1xf32>
    %cst_357 = arith.constant 9.99999993E-9 : f32
    %466 = vector.broadcast %cst_357 : f32 to vector<16x1xf32>
    %467 = arith.addf %465, %466 : vector<16x1xf32>
    %468 = math.rsqrt %467 : vector<16x1xf32>
    %469 = arith.mulf %460, %468 : vector<16x1xf32>
    %c2_358 = arith.constant 2 : index
    %c0_359 = arith.constant 0 : index
    %c0_360 = arith.constant 0 : index
    %470 = vector.load %arg13[%c2_358, %c0_359, %c0_360] : memref<4x16x2xf32, #tpu.memory_space<vmem>>, vector<1x16x1xf32>
    %471 = vector.shape_cast %470 : vector<1x16x1xf32> to vector<16x1xf32>
    %472 = arith.addf %469, %471 : vector<16x1xf32>
    %cst_361 = arith.constant 0.000000e+00 : f32
    %473 = vector.broadcast %cst_361 : f32 to vector<16x1xf32>
    %474 = arith.maximumf %472, %473 : vector<16x1xf32>
    %c2_362 = arith.constant 2 : index
    %c0_363 = arith.constant 0 : index
    %c0_364 = arith.constant 0 : index
    %475 = vector.load %arg19[%c2_362, %c0_363, %c0_364] : memref<4x16x2xf32, #tpu.memory_space<vmem>>, vector<1x16x1xf32>
    %476 = vector.shape_cast %475 : vector<1x16x1xf32> to vector<16x1xf32>
    %477 = arith.addf %474, %476 : vector<16x1xf32>
    %c10 = arith.constant 10 : index
    %c0_365 = arith.constant 0 : index
    %c0_366 = arith.constant 0 : index
    %478 = vector.load %arg12[%c10, %c0_365, %c0_366] : memref<16x16x16xf32, #tpu.memory_space<vmem>>, vector<1x16x16xf32>
    %479 = vector.shape_cast %478 : vector<1x16x16xf32> to vector<16x16xf32>
    %c11 = arith.constant 11 : index
    %c0_367 = arith.constant 0 : index
    %c0_368 = arith.constant 0 : index
    %480 = vector.load %arg12[%c11, %c0_367, %c0_368] : memref<16x16x16xf32, #tpu.memory_space<vmem>>, vector<1x16x16xf32>
    %481 = vector.shape_cast %480 : vector<1x16x16xf32> to vector<16x16xf32>
    %cst_369 = arith.constant dense<0.000000e+00> : vector<16x1xf32>
    %482 = tpu.matmul %479, %438, %cst_369 {dimension_numbers = #tpu.dot_dimension_numbers<[1], [0], [0], [1], [0, 0, 1, 1], [], []>} : vector<16x16xf32>, vector<16x1xf32>, vector<16x1xf32> -> vector<16x1xf32>
    %cst_370 = arith.constant dense<0.000000e+00> : vector<16x1xf32>
    %483 = tpu.matmul %481, %443, %cst_370 {dimension_numbers = #tpu.dot_dimension_numbers<[1], [0], [0], [1], [0, 0, 1, 1], [], []>} : vector<16x16xf32>, vector<16x1xf32>, vector<16x1xf32> -> vector<16x1xf32>
    %484 = arith.addf %482, %483 : vector<16x1xf32>
    %485 = arith.mulf %479, %479 : vector<16x16xf32>
    %cst_371 = arith.constant dense<0.000000e+00> : vector<16x1xf32>
    %486 = tpu.matmul %485, %448, %cst_371 {dimension_numbers = #tpu.dot_dimension_numbers<[1], [0], [0], [1], [0, 0, 1, 1], [], []>} : vector<16x16xf32>, vector<16x1xf32>, vector<16x1xf32> -> vector<16x1xf32>
    %487 = arith.mulf %481, %481 : vector<16x16xf32>
    %cst_372 = arith.constant dense<0.000000e+00> : vector<16x1xf32>
    %488 = tpu.matmul %487, %453, %cst_372 {dimension_numbers = #tpu.dot_dimension_numbers<[1], [0], [0], [1], [0, 0, 1, 1], [], []>} : vector<16x16xf32>, vector<16x1xf32>, vector<16x1xf32> -> vector<16x1xf32>
    %489 = arith.addf %486, %488 : vector<16x1xf32>
    %cst_373 = arith.constant 9.99999993E-9 : f32
    %490 = vector.broadcast %cst_373 : f32 to vector<16x1xf32>
    %491 = arith.addf %489, %490 : vector<16x1xf32>
    %492 = math.rsqrt %491 : vector<16x1xf32>
    %493 = arith.mulf %484, %492 : vector<16x1xf32>
    %c2_374 = arith.constant 2 : index
    %c0_375 = arith.constant 0 : index
    %c1_376 = arith.constant 1 : index
    %494 = vector.load %arg13[%c2_374, %c0_375, %c1_376] : memref<4x16x2xf32, #tpu.memory_space<vmem>>, vector<1x16x1xf32>
    %495 = vector.shape_cast %494 : vector<1x16x1xf32> to vector<16x1xf32>
    %496 = arith.addf %493, %495 : vector<16x1xf32>
    %cst_377 = arith.constant 0.000000e+00 : f32
    %497 = vector.broadcast %cst_377 : f32 to vector<16x1xf32>
    %498 = arith.maximumf %496, %497 : vector<16x1xf32>
    %c2_378 = arith.constant 2 : index
    %c0_379 = arith.constant 0 : index
    %c1_380 = arith.constant 1 : index
    %499 = vector.load %arg19[%c2_378, %c0_379, %c1_380] : memref<4x16x2xf32, #tpu.memory_space<vmem>>, vector<1x16x1xf32>
    %500 = vector.shape_cast %499 : vector<1x16x1xf32> to vector<16x1xf32>
    %501 = arith.addf %498, %500 : vector<16x1xf32>
    %cst_381 = arith.constant dense<0.000000e+00> : vector<1x1xf32>
    %502 = tpu.matmul %0, %477, %cst_381 {dimension_numbers = #tpu.dot_dimension_numbers<[1], [0], [0], [1], [0, 0, 1, 1], [], []>} : vector<1x16xf32>, vector<16x1xf32>, vector<1x1xf32> -> vector<1x1xf32>
    %cst_382 = arith.constant dense<0.000000e+00> : vector<1x1xf32>
    %503 = tpu.matmul %0, %501, %cst_382 {dimension_numbers = #tpu.dot_dimension_numbers<[1], [0], [0], [1], [0, 0, 1, 1], [], []>} : vector<1x16xf32>, vector<16x1xf32>, vector<1x1xf32> -> vector<1x1xf32>
    %504 = arith.addf %502, %503 : vector<1x1xf32>
    %cst_383 = arith.constant 3.125000e-02 : f32
    %505 = vector.broadcast %cst_383 : f32 to vector<1x1xf32>
    %506 = arith.mulf %504, %505 : vector<1x1xf32>
    %507 = vector.broadcast %506 : vector<1x1xf32> to vector<16x1xf32>
    %508 = arith.subf %477, %507 : vector<16x1xf32>
    %509 = vector.broadcast %506 : vector<1x1xf32> to vector<16x1xf32>
    %510 = arith.subf %501, %509 : vector<16x1xf32>
    %511 = arith.mulf %508, %508 : vector<16x1xf32>
    %cst_384 = arith.constant dense<0.000000e+00> : vector<1x1xf32>
    %512 = tpu.matmul %0, %511, %cst_384 {dimension_numbers = #tpu.dot_dimension_numbers<[1], [0], [0], [1], [0, 0, 1, 1], [], []>} : vector<1x16xf32>, vector<16x1xf32>, vector<1x1xf32> -> vector<1x1xf32>
    %513 = arith.mulf %510, %510 : vector<16x1xf32>
    %cst_385 = arith.constant dense<0.000000e+00> : vector<1x1xf32>
    %514 = tpu.matmul %0, %513, %cst_385 {dimension_numbers = #tpu.dot_dimension_numbers<[1], [0], [0], [1], [0, 0, 1, 1], [], []>} : vector<1x16xf32>, vector<16x1xf32>, vector<1x1xf32> -> vector<1x1xf32>
    %515 = arith.addf %512, %514 : vector<1x1xf32>
    %cst_386 = arith.constant 3.125000e-02 : f32
    %516 = vector.broadcast %cst_386 : f32 to vector<1x1xf32>
    %517 = arith.mulf %515, %516 : vector<1x1xf32>
    %cst_387 = arith.constant 9.99999974E-6 : f32
    %518 = vector.broadcast %cst_387 : f32 to vector<1x1xf32>
    %519 = arith.addf %517, %518 : vector<1x1xf32>
    %520 = math.rsqrt %519 : vector<1x1xf32>
    %521 = vector.broadcast %520 : vector<1x1xf32> to vector<16x1xf32>
    %522 = arith.mulf %508, %521 : vector<16x1xf32>
    %c0_388 = arith.constant 0 : index
    %c2_389 = arith.constant 2 : index
    %c0_390 = arith.constant 0 : index
    %c0_391 = arith.constant 0 : index
    %523 = vector.load %arg14[%c0_388, %c2_389, %c0_390, %c0_391] : memref<1x4x16x2xf32, #tpu.memory_space<vmem>>, vector<1x1x16x1xf32>
    %524 = vector.shape_cast %523 : vector<1x1x16x1xf32> to vector<16x1xf32>
    %525 = vector.shape_cast %522 : vector<16x1xf32> to vector<1x1x16x1xf32>
    tpu.vector_store %arg14[%c0_388, %c2_389, %c0_390, %c0_391], %525 {strides = array<i32>} : memref<1x4x16x2xf32, #tpu.memory_space<vmem>>, vector<1x1x16x1xf32>,
    %526 = vector.broadcast %520 : vector<1x1xf32> to vector<16x1xf32>
    %527 = arith.mulf %510, %526 : vector<16x1xf32>
    %c0_392 = arith.constant 0 : index
    %c2_393 = arith.constant 2 : index
    %c0_394 = arith.constant 0 : index
    %c1_395 = arith.constant 1 : index
    %528 = vector.load %arg14[%c0_392, %c2_393, %c0_394, %c1_395] : memref<1x4x16x2xf32, #tpu.memory_space<vmem>>, vector<1x1x16x1xf32>
    %529 = vector.shape_cast %528 : vector<1x1x16x1xf32> to vector<16x1xf32>
    %530 = vector.shape_cast %527 : vector<16x1xf32> to vector<1x1x16x1xf32>
    tpu.vector_store %arg14[%c0_392, %c2_393, %c0_394, %c1_395], %530 {strides = array<i32>} : memref<1x4x16x2xf32, #tpu.memory_space<vmem>>, vector<1x1x16x1xf32>,
    %c3_396 = arith.constant 3 : index
    %c0_397 = arith.constant 0 : index
    %c0_398 = arith.constant 0 : index
    %531 = vector.load %arg19[%c3_396, %c0_397, %c0_398] : memref<4x16x2xf32, #tpu.memory_space<vmem>>, vector<1x16x1xf32>
    %532 = vector.shape_cast %531 : vector<1x16x1xf32> to vector<16x1xf32>
    %c0_399 = arith.constant 0 : index
    %c0_400 = arith.constant 0 : index
    %c0_401 = arith.constant 0 : index
    %533 = vector.load %arg11[%c0_399, %c0_400, %c0_401] : memref<1x16x2xf32, #tpu.memory_space<vmem>>, vector<1x16x1xf32>
    %534 = vector.shape_cast %533 : vector<1x16x1xf32> to vector<16x1xf32>
    %535 = arith.mulf %532, %534 : vector<16x1xf32>
    %c3_402 = arith.constant 3 : index
    %c0_403 = arith.constant 0 : index
    %c1_404 = arith.constant 1 : index
    %536 = vector.load %arg19[%c3_402, %c0_403, %c1_404] : memref<4x16x2xf32, #tpu.memory_space<vmem>>, vector<1x16x1xf32>
    %537 = vector.shape_cast %536 : vector<1x16x1xf32> to vector<16x1xf32>
    %c0_405 = arith.constant 0 : index
    %c0_406 = arith.constant 0 : index
    %c1_407 = arith.constant 1 : index
    %538 = vector.load %arg11[%c0_405, %c0_406, %c1_407] : memref<1x16x2xf32, #tpu.memory_space<vmem>>, vector<1x16x1xf32>
    %539 = vector.shape_cast %538 : vector<1x16x1xf32> to vector<16x1xf32>
    %540 = arith.mulf %537, %539 : vector<16x1xf32>
    %c0_408 = arith.constant 0 : index
    %c0_409 = arith.constant 0 : index
    %c0_410 = arith.constant 0 : index
    %541 = vector.load %arg11[%c0_408, %c0_409, %c0_410] : memref<1x16x2xf32, #tpu.memory_space<vmem>>, vector<1x16x1xf32>
    %542 = vector.shape_cast %541 : vector<1x16x1xf32> to vector<16x1xf32>
    %c0_411 = arith.constant 0 : index
    %c0_412 = arith.constant 0 : index
    %c0_413 = arith.constant 0 : index
    %543 = vector.load %arg11[%c0_411, %c0_412, %c0_413] : memref<1x16x2xf32, #tpu.memory_space<vmem>>, vector<1x16x1xf32>
    %544 = vector.shape_cast %543 : vector<1x16x1xf32> to vector<16x1xf32>
    %545 = arith.mulf %542, %544 : vector<16x1xf32>
    %c0_414 = arith.constant 0 : index
    %c0_415 = arith.constant 0 : index
    %c1_416 = arith.constant 1 : index
    %546 = vector.load %arg11[%c0_414, %c0_415, %c1_416] : memref<1x16x2xf32, #tpu.memory_space<vmem>>, vector<1x16x1xf32>
    %547 = vector.shape_cast %546 : vector<1x16x1xf32> to vector<16x1xf32>
    %c0_417 = arith.constant 0 : index
    %c0_418 = arith.constant 0 : index
    %c1_419 = arith.constant 1 : index
    %548 = vector.load %arg11[%c0_417, %c0_418, %c1_419] : memref<1x16x2xf32, #tpu.memory_space<vmem>>, vector<1x16x1xf32>
    %549 = vector.shape_cast %548 : vector<1x16x1xf32> to vector<16x1xf32>
    %550 = arith.mulf %547, %549 : vector<16x1xf32>
    %c12 = arith.constant 12 : index
    %c0_420 = arith.constant 0 : index
    %c0_421 = arith.constant 0 : index
    %551 = vector.load %arg12[%c12, %c0_420, %c0_421] : memref<16x16x16xf32, #tpu.memory_space<vmem>>, vector<1x16x16xf32>
    %552 = vector.shape_cast %551 : vector<1x16x16xf32> to vector<16x16xf32>
    %c13 = arith.constant 13 : index
    %c0_422 = arith.constant 0 : index
    %c0_423 = arith.constant 0 : index
    %553 = vector.load %arg12[%c13, %c0_422, %c0_423] : memref<16x16x16xf32, #tpu.memory_space<vmem>>, vector<1x16x16xf32>
    %554 = vector.shape_cast %553 : vector<1x16x16xf32> to vector<16x16xf32>
    %cst_424 = arith.constant dense<0.000000e+00> : vector<16x1xf32>
    %555 = tpu.matmul %552, %535, %cst_424 {dimension_numbers = #tpu.dot_dimension_numbers<[1], [0], [0], [1], [0, 0, 1, 1], [], []>} : vector<16x16xf32>, vector<16x1xf32>, vector<16x1xf32> -> vector<16x1xf32>
    %cst_425 = arith.constant dense<0.000000e+00> : vector<16x1xf32>
    %556 = tpu.matmul %554, %540, %cst_425 {dimension_numbers = #tpu.dot_dimension_numbers<[1], [0], [0], [1], [0, 0, 1, 1], [], []>} : vector<16x16xf32>, vector<16x1xf32>, vector<16x1xf32> -> vector<16x1xf32>
    %557 = arith.addf %555, %556 : vector<16x1xf32>
    %558 = arith.mulf %552, %552 : vector<16x16xf32>
    %cst_426 = arith.constant dense<0.000000e+00> : vector<16x1xf32>
    %559 = tpu.matmul %558, %545, %cst_426 {dimension_numbers = #tpu.dot_dimension_numbers<[1], [0], [0], [1], [0, 0, 1, 1], [], []>} : vector<16x16xf32>, vector<16x1xf32>, vector<16x1xf32> -> vector<16x1xf32>
    %560 = arith.mulf %554, %554 : vector<16x16xf32>
    %cst_427 = arith.constant dense<0.000000e+00> : vector<16x1xf32>
    %561 = tpu.matmul %560, %550, %cst_427 {dimension_numbers = #tpu.dot_dimension_numbers<[1], [0], [0], [1], [0, 0, 1, 1], [], []>} : vector<16x16xf32>, vector<16x1xf32>, vector<16x1xf32> -> vector<16x1xf32>
    %562 = arith.addf %559, %561 : vector<16x1xf32>
    %cst_428 = arith.constant 9.99999993E-9 : f32
    %563 = vector.broadcast %cst_428 : f32 to vector<16x1xf32>
    %564 = arith.addf %562, %563 : vector<16x1xf32>
    %565 = math.rsqrt %564 : vector<16x1xf32>
    %566 = arith.mulf %557, %565 : vector<16x1xf32>
    %c3_429 = arith.constant 3 : index
    %c0_430 = arith.constant 0 : index
    %c0_431 = arith.constant 0 : index
    %567 = vector.load %arg13[%c3_429, %c0_430, %c0_431] : memref<4x16x2xf32, #tpu.memory_space<vmem>>, vector<1x16x1xf32>
    %568 = vector.shape_cast %567 : vector<1x16x1xf32> to vector<16x1xf32>
    %569 = arith.addf %566, %568 : vector<16x1xf32>
    %cst_432 = arith.constant 0.000000e+00 : f32
    %570 = vector.broadcast %cst_432 : f32 to vector<16x1xf32>
    %571 = arith.maximumf %569, %570 : vector<16x1xf32>
    %c3_433 = arith.constant 3 : index
    %c0_434 = arith.constant 0 : index
    %c0_435 = arith.constant 0 : index
    %572 = vector.load %arg19[%c3_433, %c0_434, %c0_435] : memref<4x16x2xf32, #tpu.memory_space<vmem>>, vector<1x16x1xf32>
    %573 = vector.shape_cast %572 : vector<1x16x1xf32> to vector<16x1xf32>
    %574 = arith.addf %571, %573 : vector<16x1xf32>
    %c14 = arith.constant 14 : index
    %c0_436 = arith.constant 0 : index
    %c0_437 = arith.constant 0 : index
    %575 = vector.load %arg12[%c14, %c0_436, %c0_437] : memref<16x16x16xf32, #tpu.memory_space<vmem>>, vector<1x16x16xf32>
    %576 = vector.shape_cast %575 : vector<1x16x16xf32> to vector<16x16xf32>
    %c15 = arith.constant 15 : index
    %c0_438 = arith.constant 0 : index
    %c0_439 = arith.constant 0 : index
    %577 = vector.load %arg12[%c15, %c0_438, %c0_439] : memref<16x16x16xf32, #tpu.memory_space<vmem>>, vector<1x16x16xf32>
    %578 = vector.shape_cast %577 : vector<1x16x16xf32> to vector<16x16xf32>
    %cst_440 = arith.constant dense<0.000000e+00> : vector<16x1xf32>
    %579 = tpu.matmul %576, %535, %cst_440 {dimension_numbers = #tpu.dot_dimension_numbers<[1], [0], [0], [1], [0, 0, 1, 1], [], []>} : vector<16x16xf32>, vector<16x1xf32>, vector<16x1xf32> -> vector<16x1xf32>
    %cst_441 = arith.constant dense<0.000000e+00> : vector<16x1xf32>
    %580 = tpu.matmul %578, %540, %cst_441 {dimension_numbers = #tpu.dot_dimension_numbers<[1], [0], [0], [1], [0, 0, 1, 1], [], []>} : vector<16x16xf32>, vector<16x1xf32>, vector<16x1xf32> -> vector<16x1xf32>
    %581 = arith.addf %579, %580 : vector<16x1xf32>
    %582 = arith.mulf %576, %576 : vector<16x16xf32>
    %cst_442 = arith.constant dense<0.000000e+00> : vector<16x1xf32>
    %583 = tpu.matmul %582, %545, %cst_442 {dimension_numbers = #tpu.dot_dimension_numbers<[1], [0], [0], [1], [0, 0, 1, 1], [], []>} : vector<16x16xf32>, vector<16x1xf32>, vector<16x1xf32> -> vector<16x1xf32>
    %584 = arith.mulf %578, %578 : vector<16x16xf32>
    %cst_443 = arith.constant dense<0.000000e+00> : vector<16x1xf32>
    %585 = tpu.matmul %584, %550, %cst_443 {dimension_numbers = #tpu.dot_dimension_numbers<[1], [0], [0], [1], [0, 0, 1, 1], [], []>} : vector<16x16xf32>, vector<16x1xf32>, vector<16x1xf32> -> vector<16x1xf32>
    %586 = arith.addf %583, %585 : vector<16x1xf32>
    %cst_444 = arith.constant 9.99999993E-9 : f32
    %587 = vector.broadcast %cst_444 : f32 to vector<16x1xf32>
    %588 = arith.addf %586, %587 : vector<16x1xf32>
    %589 = math.rsqrt %588 : vector<16x1xf32>
    %590 = arith.mulf %581, %589 : vector<16x1xf32>
    %c3_445 = arith.constant 3 : index
    %c0_446 = arith.constant 0 : index
    %c1_447 = arith.constant 1 : index
    %591 = vector.load %arg13[%c3_445, %c0_446, %c1_447] : memref<4x16x2xf32, #tpu.memory_space<vmem>>, vector<1x16x1xf32>
    %592 = vector.shape_cast %591 : vector<1x16x1xf32> to vector<16x1xf32>
    %593 = arith.addf %590, %592 : vector<16x1xf32>
    %cst_448 = arith.constant 0.000000e+00 : f32
    %594 = vector.broadcast %cst_448 : f32 to vector<16x1xf32>
    %595 = arith.maximumf %593, %594 : vector<16x1xf32>
    %c3_449 = arith.constant 3 : index
    %c0_450 = arith.constant 0 : index
    %c1_451 = arith.constant 1 : index
    %596 = vector.load %arg19[%c3_449, %c0_450, %c1_451] : memref<4x16x2xf32, #tpu.memory_space<vmem>>, vector<1x16x1xf32>
    %597 = vector.shape_cast %596 : vector<1x16x1xf32> to vector<16x1xf32>
    %598 = arith.addf %595, %597 : vector<16x1xf32>
    %cst_452 = arith.constant dense<0.000000e+00> : vector<1x1xf32>
    %599 = tpu.matmul %0, %574, %cst_452 {dimension_numbers = #tpu.dot_dimension_numbers<[1], [0], [0], [1], [0, 0, 1, 1], [], []>} : vector<1x16xf32>, vector<16x1xf32>, vector<1x1xf32> -> vector<1x1xf32>
    %cst_453 = arith.constant dense<0.000000e+00> : vector<1x1xf32>
    %600 = tpu.matmul %0, %598, %cst_453 {dimension_numbers = #tpu.dot_dimension_numbers<[1], [0], [0], [1], [0, 0, 1, 1], [], []>} : vector<1x16xf32>, vector<16x1xf32>, vector<1x1xf32> -> vector<1x1xf32>
    %601 = arith.addf %599, %600 : vector<1x1xf32>
    %cst_454 = arith.constant 3.125000e-02 : f32
    %602 = vector.broadcast %cst_454 : f32 to vector<1x1xf32>
    %603 = arith.mulf %601, %602 : vector<1x1xf32>
    %604 = vector.broadcast %603 : vector<1x1xf32> to vector<16x1xf32>
    %605 = arith.subf %574, %604 : vector<16x1xf32>
    %606 = vector.broadcast %603 : vector<1x1xf32> to vector<16x1xf32>
    %607 = arith.subf %598, %606 : vector<16x1xf32>
    %608 = arith.mulf %605, %605 : vector<16x1xf32>
    %cst_455 = arith.constant dense<0.000000e+00> : vector<1x1xf32>
    %609 = tpu.matmul %0, %608, %cst_455 {dimension_numbers = #tpu.dot_dimension_numbers<[1], [0], [0], [1], [0, 0, 1, 1], [], []>} : vector<1x16xf32>, vector<16x1xf32>, vector<1x1xf32> -> vector<1x1xf32>
    %610 = arith.mulf %607, %607 : vector<16x1xf32>
    %cst_456 = arith.constant dense<0.000000e+00> : vector<1x1xf32>
    %611 = tpu.matmul %0, %610, %cst_456 {dimension_numbers = #tpu.dot_dimension_numbers<[1], [0], [0], [1], [0, 0, 1, 1], [], []>} : vector<1x16xf32>, vector<16x1xf32>, vector<1x1xf32> -> vector<1x1xf32>
    %612 = arith.addf %609, %611 : vector<1x1xf32>
    %cst_457 = arith.constant 3.125000e-02 : f32
    %613 = vector.broadcast %cst_457 : f32 to vector<1x1xf32>
    %614 = arith.mulf %612, %613 : vector<1x1xf32>
    %cst_458 = arith.constant 9.99999974E-6 : f32
    %615 = vector.broadcast %cst_458 : f32 to vector<1x1xf32>
    %616 = arith.addf %614, %615 : vector<1x1xf32>
    %617 = math.rsqrt %616 : vector<1x1xf32>
    %618 = vector.broadcast %617 : vector<1x1xf32> to vector<16x1xf32>
    %619 = arith.mulf %605, %618 : vector<16x1xf32>
    %c0_459 = arith.constant 0 : index
    %c3_460 = arith.constant 3 : index
    %c0_461 = arith.constant 0 : index
    %c0_462 = arith.constant 0 : index
    %620 = vector.load %arg14[%c0_459, %c3_460, %c0_461, %c0_462] : memref<1x4x16x2xf32, #tpu.memory_space<vmem>>, vector<1x1x16x1xf32>
    %621 = vector.shape_cast %620 : vector<1x1x16x1xf32> to vector<16x1xf32>
    %622 = vector.shape_cast %619 : vector<16x1xf32> to vector<1x1x16x1xf32>
    tpu.vector_store %arg14[%c0_459, %c3_460, %c0_461, %c0_462], %622 {strides = array<i32>} : memref<1x4x16x2xf32, #tpu.memory_space<vmem>>, vector<1x1x16x1xf32>,
    %623 = vector.broadcast %617 : vector<1x1xf32> to vector<16x1xf32>
    %624 = arith.mulf %607, %623 : vector<16x1xf32>
    %c0_463 = arith.constant 0 : index
    %c3_464 = arith.constant 3 : index
    %c0_465 = arith.constant 0 : index
    %c1_466 = arith.constant 1 : index
    %625 = vector.load %arg14[%c0_463, %c3_464, %c0_465, %c1_466] : memref<1x4x16x2xf32, #tpu.memory_space<vmem>>, vector<1x1x16x1xf32>
    %626 = vector.shape_cast %625 : vector<1x1x16x1xf32> to vector<16x1xf32>
    %627 = vector.shape_cast %624 : vector<16x1xf32> to vector<1x1x16x1xf32>
    tpu.vector_store %arg14[%c0_463, %c3_464, %c0_465, %c1_466], %627 {strides = array<i32>} : memref<1x4x16x2xf32, #tpu.memory_space<vmem>>, vector<1x1x16x1xf32>,
    return
  }
  func.func @transform_0(%arg0: i32) -> (i32, i32, i32, i32) {
    %c0_i32 = arith.constant 0 : i32
    %c0_i32_0 = arith.constant 0 : i32
    %c0_i32_1 = arith.constant 0 : i32
    %c0_i32_2 = arith.constant 0 : i32
    return %arg0, %c0_i32, %c0_i32_0, %c0_i32_1 : i32, i32, i32, i32
  }
  func.func @transform_1(%arg0: i32) -> (i32, i32, i32) {
    %c0_i32 = arith.constant 0 : i32
    %c0_i32_0 = arith.constant 0 : i32
    %c0_i32_1 = arith.constant 0 : i32
    %c0_i32_2 = arith.constant 0 : i32
    return %c0_i32, %c0_i32_0, %c0_i32_1 : i32, i32, i32
  }
  func.func @transform_2(%arg0: i32) -> (i32, i32, i32) {
    %c0_i32 = arith.constant 0 : i32
    %c0_i32_0 = arith.constant 0 : i32
    %c0_i32_1 = arith.constant 0 : i32
    %c0_i32_2 = arith.constant 0 : i32
    return %c0_i32, %c0_i32_0, %c0_i32_1 : i32, i32, i32
  }
  func.func @transform_3(%arg0: i32) -> (i32, i32, i32) {
    %c0_i32 = arith.constant 0 : i32
    %c0_i32_0 = arith.constant 0 : i32
    %c0_i32_1 = arith.constant 0 : i32
    %c0_i32_2 = arith.constant 0 : i32
    return %c0_i32, %c0_i32_0, %c0_i32_1 : i32, i32, i32
  }
  func.func @transform_4(%arg0: i32) -> (i32, i32, i32) {
    %c0_i32 = arith.constant 0 : i32
    %c0_i32_0 = arith.constant 0 : i32
    %c0_i32_1 = arith.constant 0 : i32
    return %arg0, %c0_i32, %c0_i32_0 : i32, i32, i32
  }
  func.func @transform_5(%arg0: i32) -> (i32, i32) {
    %c0_i32 = arith.constant 0 : i32
    %c0_i32_0 = arith.constant 0 : i32
    %c0_i32_1 = arith.constant 0 : i32
    return %c0_i32, %c0_i32_0 : i32, i32
  }
  func.func @transform_6(%arg0: i32) -> (i32, i32) {
    %c0_i32 = arith.constant 0 : i32
    %c0_i32_0 = arith.constant 0 : i32
    %c0_i32_1 = arith.constant 0 : i32
    return %c0_i32, %c0_i32_0 : i32, i32
  }
  func.func @transform_7(%arg0: i32) -> (i32, i32, i32) {
    %c0_i32 = arith.constant 0 : i32
    %c0_i32_0 = arith.constant 0 : i32
    %c0_i32_1 = arith.constant 0 : i32
    return %arg0, %c0_i32, %c0_i32_0 : i32, i32, i32
  }
  func.func @transform_8(%arg0: i32) -> (i32, i32) {
    %c0_i32 = arith.constant 0 : i32
    %c0_i32_0 = arith.constant 0 : i32
    %c0_i32_1 = arith.constant 0 : i32
    return %c0_i32, %c0_i32_0 : i32, i32
  }
  func.func @transform_9(%arg0: i32) -> (i32, i32) {
    %c0_i32 = arith.constant 0 : i32
    %c0_i32_0 = arith.constant 0 : i32
    %c0_i32_1 = arith.constant 0 : i32
    return %c0_i32, %c0_i32_0 : i32, i32
  }
  func.func @transform_10(%arg0: i32) -> (i32, i32, i32) {
    %c0_i32 = arith.constant 0 : i32
    %c0_i32_0 = arith.constant 0 : i32
    %c0_i32_1 = arith.constant 0 : i32
    return %arg0, %c0_i32, %c0_i32_0 : i32, i32, i32
  }
  func.func @transform_11(%arg0: i32) -> (i32, i32, i32) {
    %c0_i32 = arith.constant 0 : i32
    %c0_i32_0 = arith.constant 0 : i32
    %c0_i32_1 = arith.constant 0 : i32
    %c0_i32_2 = arith.constant 0 : i32
    return %c0_i32, %c0_i32_0, %c0_i32_1 : i32, i32, i32
  }
  func.func @transform_12(%arg0: i32) -> (i32, i32, i32) {
    %c0_i32 = arith.constant 0 : i32
    %c0_i32_0 = arith.constant 0 : i32
    %c0_i32_1 = arith.constant 0 : i32
    %c0_i32_2 = arith.constant 0 : i32
    return %c0_i32, %c0_i32_0, %c0_i32_1 : i32, i32, i32
  }
  func.func @transform_13(%arg0: i32) -> (i32, i32, i32, i32) {
    %c0_i32 = arith.constant 0 : i32
    %c0_i32_0 = arith.constant 0 : i32
    %c0_i32_1 = arith.constant 0 : i32
    %c0_i32_2 = arith.constant 0 : i32
    return %arg0, %c0_i32, %c0_i32_0, %c0_i32_1 : i32, i32, i32, i32
  }
}

</mosaic_0001>

<bundles_post_ra>
// kernel: stylelized_transformer_block.1
= control target key start
LH: loop header
LB: loop body
LE: loop exit
PB: predicated region body
PF: predicated region fallthrough
CT: control target
= control target key end

     0   :  { %s5229_s25 = smov 0   ;;  %s6559_s0 = inlined_call_operand.vmem [shape: f32[2,4,16,2], index: 0, kind: input, shape index: {}]   ;;  %s6560_s1 = inlined_call_operand.vmem [shape: f32[4,64,16], index: 1, kind: input, shape index: {}]   ;;  %s6561_s2 = inlined_call_operand.vmem [shape: f32[4,16,64], index: 2, kind: input, shape index: {}]   ;;  %s6562_s3 = inlined_call_operand.vmem [shape: f32[4,16,1], index: 3, kind: input, shape index: {}]   ;;  %s6563_s4 = inlined_call_operand.vmem [shape: f32[2,1,8], index: 4, kind: input, shape index: {}]   ;;  %s6564_s5 = inlined_call_operand.vmem [shape: f32[8,16], index: 5, kind: input, shape index: {}]   ;;  %s6565_s6 = inlined_call_operand.vmem [shape: f32[1,16], index: 6, kind: input, shape index: {}]   ;;  %s6566_s7 = inlined_call_operand.vmem [shape: f32[2,1,16], index: 7, kind: input, shape index: {}]   ;;  %s6567_s8 = inlined_call_operand.vmem [shape: f32[16,8], index: 8, kind: input, shape index: {}]   ;;  %s6568_s9 = inlined_call_operand.vmem [shape: f32[1,8], index: 9, kind: input, shape index: {}]   ;;  %s6569_s10 = inlined_call_operand.vmem [shape: f32[2,16,2], index: 10, kind: input, shape index: {}]   ;;  %s6570_s11 = inlined_call_operand.vmem [shape: f32[16,16,16], index: 11, kind: input, shape index: {}]   ;;  %s6571_s12 = inlined_call_operand.vmem [shape: f32[4,16,2], index: 12, kind: input, shape index: {}]   ;;  %s6572_s13 = inlined_call_operand.vmem [shape: f32[2,4,16,2], index: 13, kind: output, shape index: {}]  }
   0x1 LB: > { %s4561_s26 = sadd.s32 4294967295, %s5144_s25   ;;  %p4565_p0 = scmp.ge.s32.totalorder %s5144_s25, 1  ;;  %s5144_s25 = sphi %s5229_s25, %s23_s25  }
   0x2   : > { %p413_p1 = scmp.lt.s32.totalorder %s5144_s25, 3 }
   0x4   : > { %p414_p2 = pnand %p4565_p0, %p413_p1 }
   0x5   : > { %p468_p3 = scmp.lt.s32.totalorder (!%p414_p2), %s4561_s26, 1  ;;  %s5146_s20 = smov (!%p414_p2), 2  }
   0x6   : > { %417 = sbr.rel (%p414_p2) target bundleno = 4327 (0x10e7), region = 72  ;;  %s5147_s23 = smov (!%p414_p2), 6  }
   0x7   : > { %s5148_s24 = smov (!%p414_p2), 4   ;;  %s5153_s28 = smov (!%p414_p2), 126  }
   0x8   : > { %s5155_s22 = smov (!%p414_p2), 124   ;;  %s5157_s21 = smov (!%p414_p2), 127  }
   0xb   : > { %s6574_s26 = smov (!%p468_p3, %s4561_s26), 1  ;;  %v4580_v0 = vld [vmem:[%s6560_s1 + $0x40] sm:$0xff]  ;;  %vm499_vm0 = vcmask 130048   ;;  %v4581_v9 = vld [vmem:[%s6560_s1 + $0x48] sm:$0xff]  ;;  %v4582_v12 = vld [vmem:[%s6560_s1 + $0x50] sm:$0xff]  ;;  %vm940_vm1 = vcmask 64512  }
   0xc   : > { %s4864_s27 = sshll.u32 %s6574_s26, 6  ;;  %v4616_v6 = vld [vmem:[%s6560_s1 + $0xc0] sm:$0xff]  ;;  %v4617_v10 = vld [vmem:[%s6560_s1 + $0xc8] sm:$0xff]  ;;  %v4618_v13 = vld [vmem:[%s6560_s1 + $0xd0] sm:$0xff]  ;;  %s5410_s18 = scalar_lea.vmem %s6563_s4, %s6574_s26  ;;  %vm565_vm2 = vcmask 15360   ;;  %vm683_vm3 = vcmask 31760  }
   0xd   : > { %s5245_s30 = scalar_lea.vmem %s6559_s0, %s4864_s27  ;;  %v4598_v8 = vld [vmem:[%s6560_s1 + $0x80] sm:$0xff]  ;;  %v4599_v11 = vld [vmem:[%s6560_s1 + $0x88] sm:$0xff]  ;;  %v4600_v14 = vld [vmem:[%s6560_s1 + $0x90] sm:$0xff]  ;;  %vm801_vm4 = vcmask 48160   ;;  %vm919_vm5 = vcmask 64560   ;;  %vm1160_vm9 = vcmask 523264   ;;  %s5691_s14 = scalar_lea.vmem %s6566_s7, %s6574_s26 }
   0xe   : > { %v4589_v1 = vld [vmem:[%s5245_s30 + $0x18] sm:$0xff]  ;;  %v4588_v3 = vld [vmem:[%s5245_s30 + $0x10] sm:$0xff]  ;;  %v4607_v4 = vld [vmem:[%s5245_s30 + $0x28] sm:$0xff]  ;;  %vm1612_vm10 = vcmask 130112  }
   0xf   : > { %v4625_v2 = vld [vmem:[%s5245_s30 + $0x38] sm:$0xff]  ;;  %624 = vmatpush.msra.mxu1 %v4589_v1  ;;  %v4624_v5 = vld [vmem:[%s5245_s30 + $0x30] sm:$0xff]  ;;  %742 = vmatpush.msra.mxu2 %v4607_v4  ;;  %v4606_v7 = vld [vmem:[%s5245_s30 + $0x20] sm:$0xff] }
  0x10   : > { %860 = vmatpush.msra.mxu3 %v4625_v2  ;;  %v4583_v15 = vld [vmem:[%s6560_s1 + $0x58] sm:$0xff]  ;;  %v498_v18 = vld [vmem:[%s5245_s30 + $0x8] sm:$0xff]  ;;  %v497_v19 = vld [vmem:[%s5245_s30] sm:$0xff] }
  0x11   : > { %625 = vmatpush.msra.mxu1 %v4588_v3  ;;  %743 = vmatpush.msra.mxu2 %v4606_v7  ;;  %v4619_v16 = vld [vmem:[%s6560_s1 + $0xd8] sm:$0xff]  ;;  %v489_v20 = vld [vmem:[%s6560_s1] sm:$0xff]  ;;  %v4585_v24 = vld [vmem:[%s6560_s1 + $0x68] sm:$0xff] }
  0x12   : > { %861 = vmatpush.msra.mxu3 %v4624_v5  ;;  %4590 = vmatmul.msk.f32.vlgmr.msra.gmra.mxu1 %vm499_vm0, %v4580_v0  ;;  %v4601_v17 = vld [vmem:[%s6560_s1 + $0x98] sm:$0xff]  ;;  %v4584_v21 = vld [vmem:[%s6560_s1 + $0x60] sm:$0xff]  ;;  %v4621_v25 = vld [vmem:[%s6560_s1 + $0xe8] sm:$0xff] }
  0x13   : > { %4626 = vmatmul.msk.f32.vlgmr.msra.gmra.mxu3 %vm499_vm0, %v4616_v6  ;;  %4608 = vmatmul.msk.f32.vlgmr.msra.gmra.mxu2 %vm499_vm0, %v4598_v8  ;;  %v4620_v22 = vld [vmem:[%s6560_s1 + $0xe0] sm:$0xff]  ;;  %v4603_v26 = vld [vmem:[%s6560_s1 + $0xa8] sm:$0xff]  ;;  %v4586_v27 = vld [vmem:[%s6560_s1 + $0x70] sm:$0xff] }
  0x14   : > { %538 = vmatpush.msra.mxu0 %v498_v18  ;;  %v4602_v23 = vld [vmem:[%s6560_s1 + $0xa0] sm:$0xff]  ;;  %v4622_v28 = vld [vmem:[%s6560_s1 + $0xf0] sm:$0xff]  ;;  %v4587_v30 = vld [vmem:[%s6560_s1 + $0x78] sm:$0xff] }
  0x15   : > { %v4604_v29 = vld [vmem:[%s6560_s1 + $0xb0] sm:$0xff]  ;;  %v4623_v31 = vld [vmem:[%s6560_s1 + $0xf8] sm:$0xff]  ;;  %v490_v33 = vld [vmem:[%s6560_s1 + $0x8] sm:$0xff] }
  0x16   : > { %539 = vmatpush.msra.mxu0 %v497_v19  ;;  %v4605_v32 = vld [vmem:[%s6560_s1 + $0xb8] sm:$0xff]  ;;  %v491_v34 = vld [vmem:[%s6560_s1 + $0x10] sm:$0xff]  ;;  %v493_v36 = vld [vmem:[%s6560_s1 + $0x20] sm:$0xff] }
  0x17   : > { %4572 = vmatmul.msk.f32.vlgmr.msra.gmra.mxu0 %vm499_vm0, %v489_v20  ;;  %v492_v35 = vld [vmem:[%s6560_s1 + $0x18] sm:$0xff]  ;;  %v494_v38 = vld [vmem:[%s6560_s1 + $0x28] sm:$0xff]  ;;  %v495_v42 = vld [vmem:[%s6560_s1 + $0x30] sm:$0xff] }
  0x18   : > { %v496_v46 = vld [vmem:[%s6560_s1 + $0x38] sm:$0xff]  ;;  %v937_v0 = vld [vmem:[%s6564_s5] sm:$0xff] }
  0x19   : > { %v936_v1 = vld [vmem:[%s5410_s18] sm:$0x1]  ;;  %v939_v3 = vmul.f32 %v937_v0, %v937_v0  ;;  %1024 = vmatpush.msrb.mxu1 %v937_v0 }
  0x1a   : > { %4591 = vmatmul.msk.f32.gmra.mxu1 %vm499_vm0, %v4581_v9  ;;  %v938_v4 = vmul.f32 %v936_v1, %v936_v1 }
  0x1b   : > { %4627 = vmatmul.msk.f32.gmra.mxu3 %vm499_vm0, %v4617_v10  ;;  %4609 = vmatmul.msk.f32.gmra.mxu2 %vm499_vm0, %v4599_v11 }
  0x1c   : > { %959 = vmatpush.msrb.mxu0 %v939_v3 }
  0x1f   : > { %4573 = vmatmul.msk.f32.gmra.mxu0 %vm499_vm0, %v490_v33 }
  0x22   : > { %4592 = vmatmul.msk.f32.gmra.mxu1 %vm499_vm0, %v4582_v12 }
  0x23   : > { %4628 = vmatmul.msk.f32.gmra.mxu3 %vm499_vm0, %v4618_v13  ;;  %4610 = vmatmul.msk.f32.gmra.mxu2 %vm499_vm0, %v4600_v14 }
  0x27   : > { %4574 = vmatmul.msk.f32.gmra.mxu0 %vm499_vm0, %v491_v34 }
  0x2a   : > { %4593 = vmatmul.msk.f32.gmra.mxu1 %vm499_vm0, %v4583_v15 }
  0x2b   : > { %4629 = vmatmul.msk.f32.gmra.mxu3 %vm499_vm0, %v4619_v16  ;;  %4611 = vmatmul.msk.f32.gmra.mxu2 %vm499_vm0, %v4601_v17  ;;  %v5428_v16 = vld [vmem:[%s5410_s18] ss:$0 sm:$0xff] }
  0x2f   : > { %4575 = vmatmul.msk.f32.gmra.mxu0 %vm499_vm0, %v492_v35 }
  0x32   : > { %4594 = vmatmul.msk.f32.gmra.mxu1 %vm499_vm0, %v4584_v21 }
  0x33   : > { %4630 = vmatmul.msk.f32.gmra.mxu3 %vm499_vm0, %v4620_v22  ;;  %4612 = vmatmul.msk.f32.gmra.mxu2 %vm499_vm0, %v4602_v23 }
  0x37   : > { %4576 = vmatmul.msk.f32.gmra.mxu0 %vm499_vm0, %v493_v36 }
  0x3a   : > { %4595 = vmatmul.msk.f32.gmra.mxu1 %vm499_vm0, %v4585_v24 }
  0x3b   : > { %4631 = vmatmul.msk.f32.gmra.mxu3 %vm499_vm0, %v4621_v25  ;;  %4613 = vmatmul.msk.f32.gmra.mxu2 %vm499_vm0, %v4603_v26 }
  0x3f   : > { %4577 = vmatmul.msk.f32.gmra.mxu0 %vm499_vm0, %v494_v38 }
  0x42   : > { %4596 = vmatmul.msk.f32.gmra.mxu1 %vm499_vm0, %v4586_v27 }
  0x43   : > { %4632 = vmatmul.msk.f32.gmra.mxu3 %vm499_vm0, %v4622_v28  ;;  %4614 = vmatmul.msk.f32.gmra.mxu2 %vm499_vm0, %v4604_v29 }
  0x47   : > { %4578 = vmatmul.msk.f32.gmra.mxu0 %vm499_vm0, %v495_v42 }
  0x4a   : > { %4597 = vmatmul.msk.f32.gmra.mxu1 %vm499_vm0, %v4587_v30 }
  0x4b   : > { %4633 = vmatmul.msk.f32.gmra.mxu3 %vm499_vm0, %v4623_v31  ;;  %4615 = vmatmul.msk.f32.gmra.mxu2 %vm499_vm0, %v4605_v32 }
  0x4f   : > { %4579 = vmatmul.msk.f32.gmra.mxu0 %vm499_vm0, %v496_v46 }
  0x57   : > { %4634 = vmatmul.msk.f32.vlgmr.msrb.gmra.mxu0 %vm940_vm1, %v938_v4 }
  0x8f   : > { %v627_v37 = vpop.f32.mrf.mxu1 }
  0x90   : > { %659 = vrot.lane.b32.xlu0 %v627_v37, %s5146_s20 }
  0x94   : > { %v541_v2 = vpop.f32.mrf.mxu0 }
  0x95   : > { %566 = vst.msk [vmem:[#allocation2] sm:$0xff] %vm565_vm2, %v541_v2 }
  0x96   : > { %v863_v39 = vpop.f32.mrf.mxu3  ;;  %v745_v40 = vpop.f32.mrf.mxu2 }
  0x97   : > { %895 = vrot.lane.b32.xlu1 %v863_v39, %s5147_s23  ;;  %v630_v41 = vpop.f32.mrf.mxu1 }
  0x98   : > { %777 = vrot.lane.b32.xlu0 %v745_v40, %s5148_s24 }
  0x9c   : > { %v544_v5 = vpop.f32.mrf.mxu0 }
  0x9d   : > { %567 = vst.msk [vmem:[#allocation2 + $0x8] sm:$0xff] %vm565_vm2, %v544_v5 }
  0x9e   : > { %v866_v43 = vpop.f32.mrf.mxu3  ;;  %v748_v44 = vpop.f32.mrf.mxu2 }
  0x9f   : > { %661 = vrot.lane.b32.xlu1 %v630_v41, %s5146_s20  ;;  %v633_v45 = vpop.f32.mrf.mxu1  ;;  %779 = vrot.lane.b32.xlu2 %v748_v44, %s5148_s24 }
  0xa0   : > { %663 = vrot.lane.b32.xlu0 %v633_v45, %s5146_s20 }
  0xa4   : > { %v547_v6 = vpop.f32.mrf.mxu0 }
  0xa5   : > { %568 = vst.msk [vmem:[#allocation2 + $0x10] sm:$0xff] %vm565_vm2, %v547_v6 }
  0xa6   : > { %v869_v47 = vpop.f32.mrf.mxu3  ;;  %v751_v48 = vpop.f32.mrf.mxu2 }
  0xa7   : > { %v636_v49 = vpop.f32.mrf.mxu1  ;;  %781 = vrot.lane.b32.xlu1 %v751_v48, %s5148_s24  ;;  %897 = vrot.lane.b32.xlu2 %v866_v43, %s5147_s23 }
  0xa8   : > { %665 = vrot.lane.b32.xlu0 %v636_v49, %s5146_s20 }
  0xac   : > { %v550_v8 = vpop.f32.mrf.mxu0 }
  0xad   : > { %569 = vst.msk [vmem:[#allocation2 + $0x18] sm:$0xff] %vm565_vm2, %v550_v8 }
  0xae   : > { %v872_v50 = vpop.f32.mrf.mxu3  ;;  %v754_v51 = vpop.f32.mrf.mxu2 }
  0xaf   : > { %v639_v52 = vpop.f32.mrf.mxu1  ;;  %783 = vrot.lane.b32.xlu1 %v754_v51, %s5148_s24  ;;  %899 = vrot.lane.b32.xlu2 %v869_v47, %s5147_s23 }
  0xb0   : > { %667 = vrot.lane.b32.xlu0 %v639_v52, %s5146_s20 }
  0xb4   : > { %v553_v11 = vpop.f32.mrf.mxu0 }
  0xb5   : > { %570 = vst.msk [vmem:[#allocation2 + $0x20] sm:$0xff] %vm565_vm2, %v553_v11 }
  0xb6   : > { %v757_v53 = vpop.f32.mrf.mxu2  ;;  %v875_v55 = vpop.f32.mrf.mxu3 }
  0xb7   : > { %v642_v54 = vpop.f32.mrf.mxu1  ;;  %785 = vrot.lane.b32.xlu1 %v757_v53, %s5148_s24  ;;  %901 = vrot.lane.b32.xlu2 %v872_v50, %s5147_s23 }
  0xb8   : > { %669 = vrot.lane.b32.xlu0 %v642_v54, %s5146_s20 }
  0xbc   : > { %v556_v14 = vpop.f32.mrf.mxu0 }
  0xbd   : > { %571 = vst.msk [vmem:[#allocation2 + $0x28] sm:$0xff] %vm565_vm2, %v556_v14 }
  0xbe   : > { %v760_v56 = vpop.f32.mrf.mxu2  ;;  %v878_v58 = vpop.f32.mrf.mxu3 }
  0xbf   : > { %v645_v57 = vpop.f32.mrf.mxu1  ;;  %787 = vrot.lane.b32.xlu1 %v760_v56, %s5148_s24  ;;  %903 = vrot.lane.b32.xlu2 %v875_v55, %s5147_s23 }
  0xc0   : > { %671 = vrot.lane.b32.xlu0 %v645_v57, %s5146_s20 }
  0xc4   : > { %v559_v21 = vpop.f32.mrf.mxu0 }
  0xc5   : > { %572 = vst.msk [vmem:[#allocation2 + $0x30] sm:$0xff] %vm565_vm2, %v559_v21 }
  0xc6   : > { %v763_v59 = vpop.f32.mrf.mxu2  ;;  %v881_v61 = vpop.f32.mrf.mxu3 }
  0xc7   : > { %v648_v60 = vpop.f32.mrf.mxu1  ;;  %789 = vrot.lane.b32.xlu1 %v763_v59, %s5148_s24  ;;  %905 = vrot.lane.b32.xlu2 %v878_v58, %s5147_s23 }
  0xc8   : > { %673 = vrot.lane.b32.xlu0 %v648_v60, %s5146_s20  ;;  %s5154_s20 = smov 122  }
  0xcc   : > { %v562_v27 = vpop.f32.mrf.mxu0 }
  0xcd   : > { %573 = vst.msk [vmem:[#allocation2 + $0x38] sm:$0xff] %vm565_vm2, %v562_v27 }
  0xce   : > { %v766_v62 = vpop.f32.mrf.mxu2  ;;  %v884_v63 = vpop.f32.mrf.mxu3 }
  0xcf   : > { %791 = vrot.lane.b32.xlu1 %v766_v62, %s5148_s24  ;;  %907 = vrot.lane.b32.xlu2 %v881_v61, %s5147_s23  ;;  %s5150_s24 = smov 8  }
  0xd4   : > { %v961_v53 = vpop.f32.mrf.mxu0 }
  0xd5   : > { %v962_v54 = vadd.f32 1e-08, %v961_v53 }
  0xd7   : > { %909 = vrot.lane.b32.xlu2 %v884_v63, %s5147_s23  ;;  %4995 = vrsqrt.f32 %v962_v54  ;;  %vm970_vm6 = vweird.f32 %v962_v54  ;;  %v4992_v63 = vld [vmem:[%s6565_s6] ss:$0 sm:$0xff]  ;;  %s5149_s23 = smov 120  }
  0xdd   : > { %v4996_v55 = vpop.eup %4995 }
  0xde   : > { %v965_v56 = vmul.f32 %v4996_v55, %v962_v54  ;;  %vm971_vm7 = vweird.f32 %v4996_v55 }
  0xdf   : > { %vm972_vm8 = vmor %vm970_vm6, %vm971_vm7 }
  0xe0   : > { %v966_v57 = vmul.f32 %v4996_v55, %v965_v56 }
  0xe2   : > { %v967_v58 = vmul.f32 0.5, %v966_v57 }
  0xe4   : > { %v968_v59 = vsub.f32 1.5, %v967_v58 }
  0xe6   : > { %v969_v60 = vmul.f32 %v4996_v55, %v968_v59 }
  0xe8   : > { %v973_v61 = vsel %vm972_vm8, %v4996_v55, %v969_v60 }
  0xe9   : > { %v1050_v62 = vperm.slane %v973_v61, 0 }
  0xf9   : > { %v780_v7 = vpop.permute.xlu2 %779 }
 0x101   : > { %v898_v10 = vpop.permute.xlu2 %897 }
 0x102   : > { %v660_v9 = vpop.permute.xlu0 %659 }
 0x103   : > { %684 = vst.msk [vmem:[#allocation2] sm:$0xff] %vm683_vm3, %v660_v9 }
 0x109   : > { %v896_v12 = vpop.permute.xlu1 %895  ;;  %v900_v15 = vpop.permute.xlu2 %899 }
 0x10a   : > { %v778_v13 = vpop.permute.xlu0 %777 }
 0x10b   : > { %802 = vst.msk [vmem:[#allocation2] sm:$0xff] %vm801_vm4, %v778_v13 }
 0x10c   : > { %920 = vst.msk [vmem:[#allocation2] sm:$0xff] %vm919_vm5, %v896_v12 }
 0x111   : > { %v662_v17 = vpop.permute.xlu1 %661  ;;  %v902_v22 = vpop.permute.xlu2 %901 }
 0x112   : > { %685 = vst.msk [vmem:[#allocation2 + $0x8] sm:$0xff] %vm683_vm3, %v662_v17  ;;  %v664_v18 = vpop.permute.xlu0 %663 }
 0x113   : > { %803 = vst.msk [vmem:[#allocation2 + $0x8] sm:$0xff] %vm801_vm4, %v780_v7  ;;  %v928_v19 = vld [vmem:[#allocation2] sm:$0xff] }
 0x114   : > { %921 = vst.msk [vmem:[#allocation2 + $0x8] sm:$0xff] %vm919_vm5, %v898_v10  ;;  %v977_v20 = vmul.f32 %v5428_v16, %v928_v19 }
 0x115   : > { %686 = vst.msk [vmem:[#allocation2 + $0x10] sm:$0xff] %vm683_vm3, %v664_v18 }
 0x116   : > { %4635 = vmatmul.msk.f32.vlgmr.msrb.gmra.mxu1 %vm940_vm1, %v977_v20 }
 0x119   : > { %v782_v23 = vpop.permute.xlu1 %781  ;;  %v904_v31 = vpop.permute.xlu2 %903 }
 0x11a   : > { %v666_v25 = vpop.permute.xlu0 %665  ;;  %804 = vst.msk [vmem:[#allocation2 + $0x10] sm:$0xff] %vm801_vm4, %v782_v23 }
 0x11b   : > { %v929_v24 = vld [vmem:[#allocation2 + $0x8] sm:$0xff]  ;;  %922 = vst.msk [vmem:[#allocation2 + $0x10] sm:$0xff] %vm919_vm5, %v900_v15 }
 0x11c   : > { %v978_v26 = vmul.f32 %v5428_v16, %v929_v24  ;;  %687 = vst.msk [vmem:[#allocation2 + $0x18] sm:$0xff] %vm683_vm3, %v666_v25 }
 0x11e   : > { %4636 = vmatmul.msk.f32.gmra.mxu1 %vm940_vm1, %v978_v26 }
 0x121   : > { %v784_v28 = vpop.permute.xlu1 %783  ;;  %v906_v37 = vpop.permute.xlu2 %905 }
 0x122   : > { %v668_v29 = vpop.permute.xlu0 %667  ;;  %805 = vst.msk [vmem:[#allocation2 + $0x18] sm:$0xff] %vm801_vm4, %v784_v28  ;;  %v930_v30 = vld [vmem:[#allocation2 + $0x10] sm:$0xff] }
 0x123   : > { %923 = vst.msk [vmem:[#allocation2 + $0x18] sm:$0xff] %vm919_vm5, %v902_v22  ;;  %v979_v32 = vmul.f32 %v5428_v16, %v930_v30 }
 0x124   : > { %688 = vst.msk [vmem:[#allocation2 + $0x20] sm:$0xff] %vm683_vm3, %v668_v29 }
 0x126   : > { %4637 = vmatmul.msk.f32.gmra.mxu1 %vm940_vm1, %v979_v32 }
 0x129   : > { %v786_v33 = vpop.permute.xlu1 %785  ;;  %v908_v42 = vpop.permute.xlu2 %907 }
 0x12a   : > { %v670_v34 = vpop.permute.xlu0 %669  ;;  %806 = vst.msk [vmem:[#allocation2 + $0x20] sm:$0xff] %vm801_vm4, %v786_v33  ;;  %v931_v35 = vld [vmem:[#allocation2 + $0x18] sm:$0xff] }
 0x12b   : > { %924 = vst.msk [vmem:[#allocation2 + $0x20] sm:$0xff] %vm919_vm5, %v904_v31  ;;  %v980_v36 = vmul.f32 %v5428_v16, %v931_v35 }
 0x12c   : > { %689 = vst.msk [vmem:[#allocation2 + $0x28] sm:$0xff] %vm683_vm3, %v670_v34 }
 0x12e   : > { %4638 = vmatmul.msk.f32.gmra.mxu1 %vm940_vm1, %v980_v36 }
 0x131   : > { %v788_v38 = vpop.permute.xlu1 %787  ;;  %v910_v47 = vpop.permute.xlu2 %909 }
 0x132   : > { %v672_v39 = vpop.permute.xlu0 %671  ;;  %807 = vst.msk [vmem:[#allocation2 + $0x28] sm:$0xff] %vm801_vm4, %v788_v38  ;;  %v932_v40 = vld [vmem:[#allocation2 + $0x20] sm:$0xff] }
 0x133   : > { %925 = vst.msk [vmem:[#allocation2 + $0x28] sm:$0xff] %vm919_vm5, %v906_v37  ;;  %v981_v41 = vmul.f32 %v5428_v16, %v932_v40 }
 0x134   : > { %690 = vst.msk [vmem:[#allocation2 + $0x30] sm:$0xff] %vm683_vm3, %v672_v39 }
 0x136   : > { %4639 = vmatmul.msk.f32.gmra.mxu1 %vm940_vm1, %v981_v41 }
 0x139   : > { %v790_v43 = vpop.permute.xlu1 %789 }
 0x13a   : > { %v674_v44 = vpop.permute.xlu0 %673  ;;  %808 = vst.msk [vmem:[#allocation2 + $0x30] sm:$0xff] %vm801_vm4, %v790_v43  ;;  %v5459_v45 = vld [vmem:[#allocation2 + $0x28] sm:$0xff] }
 0x13b   : > { %926 = vst.msk [vmem:[#allocation2 + $0x30] sm:$0xff] %vm919_vm5, %v908_v42  ;;  %v982_v46 = vmul.f32 %v5428_v16, %v5459_v45 }
 0x13c   : > { %691 = vst.msk [vmem:[#allocation2 + $0x38] sm:$0xff] %vm683_vm3, %v674_v44 }
 0x13e   : > { %4640 = vmatmul.msk.f32.gmra.mxu1 %vm940_vm1, %v982_v46 }
 0x141   : > { %v792_v48 = vpop.permute.xlu1 %791 }
 0x142   : > { %809 = vst.msk [vmem:[#allocation2 + $0x38] sm:$0xff] %vm801_vm4, %v792_v48  ;;  %v5467_v49 = vld [vmem:[#allocation2 + $0x30] sm:$0xff] }
 0x143   : > { %927 = vst.msk [vmem:[#allocation2 + $0x38] sm:$0xff] %vm919_vm5, %v910_v47  ;;  %v983_v50 = vmul.f32 %v5428_v16, %v5467_v49 }
 0x146   : > { %4641 = vmatmul.msk.f32.gmra.mxu1 %vm940_vm1, %v983_v50 }
 0x14a   : > { %v935_v51 = vld [vmem:[#allocation2 + $0x38] sm:$0xff] }
 0x14b   : > { %v984_v52 = vmul.f32 %v5428_v16, %v935_v51 }
 0x14e   : > { %4642 = vmatmul.msk.f32.gmra.mxu1 %vm940_vm1, %v984_v52 }
 0x193   : > { %v1026_v0 = vpop.f32.mrf.mxu1 }
 0x194   : > { %v1051_v1 = vmul.f32 %v1050_v62, %v1026_v0 }
 0x196   : > { %v1063_v2 = vadd.f32 %v4992_v63, %v1051_v1 }
 0x198   : > { %1071 = vst.msk [vmem:[#allocation3] sm:$0xff] %vm499_vm0, %v1063_v2 }
 0x19b   : > { %v1029_v3 = vpop.f32.mrf.mxu1 }
 0x19c   : > { %v1052_v4 = vmul.f32 %v1050_v62, %v1029_v3 }
 0x19e   : > { %v1064_v5 = vadd.f32 %v4992_v63, %v1052_v4 }
 0x19f   : > { %v1322_v30 = vld [vmem:[#allocation3] sm:$0xff] }
 0x1a0   : > { %1072 = vst.msk [vmem:[#allocation3 + $0x8] sm:$0xff] %vm499_vm0, %v1064_v5 }
 0x1a3   : > { %v1032_v6 = vpop.f32.mrf.mxu1 }
 0x1a4   : > { %v1053_v7 = vmul.f32 %v1050_v62, %v1032_v6 }
 0x1a6   : > { %v1065_v8 = vadd.f32 %v4992_v63, %v1053_v7 }
 0x1a7   : > { %v1080_v31 = vld [vmem:[#allocation3 + $0x8] sm:$0xff] }
 0x1a8   : > { %1073 = vst.msk [vmem:[#allocation3 + $0x10] sm:$0xff] %vm499_vm0, %v1065_v8 }
 0x1ab   : > { %v1035_v9 = vpop.f32.mrf.mxu1 }
 0x1ac   : > { %v1054_v10 = vmul.f32 %v1050_v62, %v1035_v9 }
 0x1ae   : > { %v1066_v11 = vadd.f32 %v4992_v63, %v1054_v10 }
 0x1af   : > { %v1324_v26 = vld [vmem:[#allocation3 + $0x10] sm:$0xff] }
 0x1b0   : > { %1074 = vst.msk [vmem:[#allocation3 + $0x18] sm:$0xff] %vm499_vm0, %v1066_v11 }
 0x1b3   : > { %v1038_v12 = vpop.f32.mrf.mxu1 }
 0x1b4   : > { %v1055_v13 = vmul.f32 %v1050_v62, %v1038_v12 }
 0x1b6   : > { %v1067_v14 = vadd.f32 %v4992_v63, %v1055_v13 }
 0x1b7   : > { %v1325_v27 = vld [vmem:[#allocation3 + $0x18] sm:$0xff] }
 0x1b8   : > { %1075 = vst.msk [vmem:[#allocation3 + $0x20] sm:$0xff] %vm499_vm0, %v1067_v14 }
 0x1bb   : > { %v1041_v15 = vpop.f32.mrf.mxu1 }
 0x1bc   : > { %v1056_v16 = vmul.f32 %v1050_v62, %v1041_v15 }
 0x1be   : > { %v1068_v17 = vadd.f32 %v4992_v63, %v1056_v16 }
 0x1bf   : > { %v1083_v29 = vld [vmem:[#allocation3 + $0x20] sm:$0xff] }
 0x1c0   : > { %1076 = vst.msk [vmem:[#allocation3 + $0x28] sm:$0xff] %vm499_vm0, %v1068_v17 }
 0x1c3   : > { %v1044_v18 = vpop.f32.mrf.mxu1 }
 0x1c4   : > { %v1057_v19 = vmul.f32 %v1050_v62, %v1044_v18 }
 0x1c6   : > { %v1069_v20 = vadd.f32 %v4992_v63, %v1057_v19 }
 0x1c7   : > { %v1327_v21 = vld [vmem:[#allocation3 + $0x28] sm:$0xff] }
 0x1c8   : > { %1077 = vst.msk [vmem:[#allocation3 + $0x30] sm:$0xff] %vm499_vm0, %v1069_v20  ;;  %1348 = vrot.lane.b32.xlu2 %v1327_v21, %s5149_s23 }
 0x1cb   : > { %v1047_v22 = vpop.f32.mrf.mxu1 }
 0x1cc   : > { %v1058_v23 = vmul.f32 %v1050_v62, %v1047_v22 }
 0x1ce   : > { %v1070_v24 = vadd.f32 %v4992_v63, %v1058_v23 }
 0x1cf   : > { %v1328_v25 = vld [vmem:[#allocation3 + $0x30] sm:$0xff] }
 0x1d0   : > { %1078 = vst.msk [vmem:[#allocation3 + $0x38] sm:$0xff] %vm499_vm0, %v1070_v24  ;;  %1350 = vrot.lane.b32.xlu1 %v1328_v25, %s5149_s23  ;;  %1342 = vrot.lane.b32.xlu2 %v1324_v26, %s5149_s23 }
 0x1d7   : > { %v1329_v28 = vld [vmem:[#allocation3 + $0x38] sm:$0xff] }
 0x1d8   : > { %1344 = vrot.lane.b32.xlu1 %v1325_v27, %s5149_s23  ;;  %1352 = vrot.lane.b32.xlu0 %v1329_v28, %s5149_s23 }
 0x1d9   : > { %4643 = vmatpush.xpose.msk.msrb.mxu2 %vm940_vm1, %v1329_v28  ;;  %1281 = vmatpush.msrb.mxu3 %v1329_v28 }
 0x1db   : > { %1282 = vmatpush.msrb.mxu3 %v1328_v25 }
 0x1dd   : > { %4644 = vmatpush.xpose.msk.msrb.mxu2 %vm940_vm1, %v1328_v25  ;;  %1283 = vmatpush.msrb.mxu3 %v1327_v21 }
 0x1df   : > { %1284 = vmatpush.msrb.mxu3 %v1083_v29 }
 0x1e0   : > { %1338 = vrot.lane.b32.xlu1 %v1322_v30, %s5149_s23  ;;  %1346 = vrot.lane.b32.xlu0 %v1083_v29, %s5149_s23 }
 0x1e1   : > { %4645 = vmatpush.xpose.msk.msrb.mxu2 %vm940_vm1, %v1327_v21  ;;  %1285 = vmatpush.msrb.mxu3 %v1325_v27 }
 0x1e3   : > { %1286 = vmatpush.msrb.mxu3 %v1324_v26 }
 0x1e5   : > { %4646 = vmatpush.xpose.msk.msrb.mxu2 %vm940_vm1, %v1083_v29  ;;  %1287 = vmatpush.msrb.mxu3 %v1080_v31 }
 0x1e7   : > { %1288 = vmatpush.msrb.mxu3 %v1322_v30 }
 0x1e8   : > { %1340 = vrot.lane.b32.xlu0 %v1080_v31, %s5149_s23 }
 0x1e9   : > { %4647 = vmatpush.xpose.msk.msrb.mxu2 %vm940_vm1, %v1325_v27 }
 0x1ed   : > { %4648 = vmatpush.xpose.msk.msrb.mxu2 %vm940_vm1, %v1324_v26 }
 0x1f1   : > { %4649 = vmatpush.xpose.msk.msrb.mxu2 %vm940_vm1, %v1080_v31 }
 0x1f5   : > { %4650 = vmatpush.xpose.msk.msrb.mxu2 %vm940_vm1, %v1322_v30 }
 0x1f8   : > { %4651 = vmatmul.msk.f32.vlgmr.msrb.gmra.mxu2 %vm940_vm1, %v1322_v30 }
 0x200   : > { %4652 = vmatmul.msk.f32.gmra.mxu2 %vm940_vm1, %v1080_v31 }
 0x208   : > { %4653 = vmatmul.msk.f32.gmra.mxu2 %vm940_vm1, %v1324_v26 }
 0x210   : > { %4654 = vmatmul.msk.f32.gmra.mxu2 %vm940_vm1, %v1325_v27 }
 0x218   : > { %4655 = vmatmul.msk.f32.gmra.mxu2 %vm940_vm1, %v1083_v29 }
 0x220   : > { %4656 = vmatmul.msk.f32.gmra.mxu2 %vm940_vm1, %v1327_v21 }
 0x222   : > { %v1349_v34 = vpop.permute.xlu2 %1348 }
 0x228   : > { %4657 = vmatmul.msk.f32.gmra.mxu2 %vm940_vm1, %v1328_v25 }
 0x22a   : > { %v1343_v37 = vpop.permute.xlu2 %1342 }
 0x230   : > { %4658 = vmatmul.msk.f32.gmra.mxu2 %vm940_vm1, %v1329_v28 }
 0x242   : > { %v1351_v32 = vpop.permute.xlu1 %1350 }
 0x24a   : > { %v1353_v33 = vpop.permute.xlu0 %1352  ;;  %v1345_v35 = vpop.permute.xlu1 %1344 }
 0x24b   : > { %4667 = vmatpush.xpose.msk.msra.mxu0 %vm940_vm1, %v1353_v33  ;;  %1547 = vmatpush.msra.mxu1 %v1353_v33 }
 0x24d   : > { %1548 = vmatpush.msra.mxu1 %v1351_v32 }
 0x24f   : > { %4668 = vmatpush.xpose.msk.msra.mxu0 %vm940_vm1, %v1351_v32  ;;  %1549 = vmatpush.msra.mxu1 %v1349_v34 }
 0x252   : > { %v1347_v36 = vpop.permute.xlu0 %1346  ;;  %v1339_v39 = vpop.permute.xlu1 %1338 }
 0x253   : > { %4669 = vmatpush.xpose.msk.msra.mxu0 %vm940_vm1, %v1349_v34  ;;  %1550 = vmatpush.msra.mxu1 %v1347_v36 }
 0x255   : > { %1551 = vmatpush.msra.mxu1 %v1345_v35 }
 0x257   : > { %4670 = vmatpush.xpose.msk.msra.mxu0 %vm940_vm1, %v1347_v36  ;;  %1552 = vmatpush.msra.mxu1 %v1343_v37 }
 0x25a   : > { %v1341_v38 = vpop.permute.xlu0 %1340 }
 0x25b   : > { %4671 = vmatpush.xpose.msk.msra.mxu0 %vm940_vm1, %v1345_v35  ;;  %1553 = vmatpush.msra.mxu1 %v1341_v38 }
 0x25d   : > { %1554 = vmatpush.msra.mxu1 %v1339_v39 }
 0x25f   : > { %4672 = vmatpush.xpose.msk.msra.mxu0 %vm940_vm1, %v1343_v37 }
 0x263   : > { %4673 = vmatpush.xpose.msk.msra.mxu0 %vm940_vm1, %v1341_v38 }
 0x267   : > { %4674 = vmatpush.xpose.msk.msra.mxu0 %vm940_vm1, %v1339_v39 }
 0x26a   : > { %4675 = vmatmul.msk.f32.vlgmr.msra.gmra.mxu0 %vm940_vm1, %v1339_v39 }
 0x272   : > { %4676 = vmatmul.msk.f32.gmra.mxu0 %vm940_vm1, %v1341_v38 }
 0x27a   : > { %4677 = vmatmul.msk.f32.gmra.mxu0 %vm940_vm1, %v1343_v37 }
 0x27b   : > { %v1128_v46 = vpop.f32.mrf.mxu2 }
 0x27c   : > { %v5534_v58 = vmul.f32 0.35355338, %v1128_v46 }
 0x27e   : > { %v1161_v63 = vsel %vm1160_vm9, %v5534_v58, -inf }
 0x282   : > { %4678 = vmatmul.msk.f32.gmra.mxu0 %vm940_vm1, %v1345_v35 }
 0x283   : > { %v1131_v52 = vpop.f32.mrf.mxu2 }
 0x284   : > { %v5529_v53 = vmul.f32 0.35355338, %v1131_v52 }
 0x286   : > { %v1164_v57 = vsel %vm1160_vm9, %v5529_v53, -inf }
 0x28a   : > { %4679 = vmatmul.msk.f32.gmra.mxu0 %vm940_vm1, %v1347_v36 }
 0x28b   : > { %v1134_v59 = vpop.f32.mrf.mxu2 }
 0x28c   : > { %v5542_v0 = vmul.f32 0.35355338, %v1134_v59 }
 0x28e   : > { %v1167_v5 = vsel %vm1160_vm9, %v5542_v0, -inf }
 0x292   : > { %4680 = vmatmul.msk.f32.gmra.mxu0 %vm940_vm1, %v1349_v34 }
 0x293   : > { %v1137_v3 = vpop.f32.mrf.mxu2 }
 0x294   : > { %v5550_v6 = vmul.f32 0.35355338, %v1137_v3 }
 0x296   : > { %v1170_v10 = vsel %vm1160_vm9, %v5550_v6, -inf }
 0x29a   : > { %4681 = vmatmul.msk.f32.gmra.mxu0 %vm940_vm1, %v1351_v32 }
 0x29b   : > { %v1140_v11 = vpop.f32.mrf.mxu2 }
 0x29c   : > { %v5558_v12 = vmul.f32 0.35355338, %v1140_v11 }
 0x29e   : > { %v1173_v16 = vsel %vm1160_vm9, %v5558_v12, -inf }
 0x2a2   : > { %4682 = vmatmul.msk.f32.gmra.mxu0 %vm940_vm1, %v1353_v33 }
 0x2a3   : > { %v1143_v26 = vpop.f32.mrf.mxu2 }
 0x2a4   : > { %v5574_v31 = vmul.f32 0.35355338, %v1143_v26 }
 0x2a6   : > { %v1176_v38 = vsel %vm1160_vm9, %v5574_v31, -inf }
 0x2ab   : > { %v1146_v35 = vpop.f32.mrf.mxu2 }
 0x2ac   : > { %v5582_v39 = vmul.f32 0.35355338, %v1146_v35 }
 0x2ae   : > { %v1179_v52 = vsel %vm1160_vm9, %v5582_v39, -inf }
 0x2e7   : > { %v1387_v40 = vpop.f32.mrf.mxu0 }
 0x2e8   : > { %v1411_v41 = vmul.f32 0.35355338, %v1387_v40 }
 0x2ea   : > { %v1419_v42 = vsel %vm1160_vm9, %v1411_v41, -inf }
 0x2eb   : > { %1420 = vmax.xlane.f32.xlu2 %v1419_v42 }
 0x2ef   : > { %v1390_v43 = vpop.f32.mrf.mxu0 }
 0x2f0   : > { %v1412_v44 = vmul.f32 0.35355338, %v1390_v43 }
 0x2f2   : > { %v1422_v47 = vsel %vm1160_vm9, %v1412_v44, -inf }
 0x2f3   : > { %1423 = vmax.xlane.f32.xlu0 %v1422_v47 }
 0x2f7   : > { %v1393_v48 = vpop.f32.mrf.mxu0 }
 0x2f8   : > { %v1413_v50 = vmul.f32 0.35355338, %v1393_v48 }
 0x2fa   : > { %v1425_v51 = vsel %vm1160_vm9, %v1413_v50, -inf }
 0x2fb   : > { %1426 = vmax.xlane.f32.xlu1 %v1425_v51 }
 0x2ff   : > { %v1396_v54 = vpop.f32.mrf.mxu0 }
 0x300   : > { %v1414_v55 = vmul.f32 0.35355338, %v1396_v54  ;;  %v1149_v54 = vpop.f32.mrf.mxu2 }
 0x302   : > { %v1428_v56 = vsel %vm1160_vm9, %v1414_v55, -inf }
 0x303   : > { %1429 = vmax.xlane.f32.xlu2 %v1428_v56  ;;  %1165 = vmax.xlane.f32.xlu1 %v1164_v57 }
 0x307   : > { %v1399_v60 = vpop.f32.mrf.mxu0 }
 0x308   : > { %v5536_v61 = vmul.f32 0.35355338, %v1399_v60 }
 0x30a   : > { %v1431_v62 = vsel %vm1160_vm9, %v5536_v61, -inf }
 0x30b   : > { %1432 = vmax.xlane.f32.xlu0 %v1431_v62  ;;  %1162 = vmax.xlane.f32.xlu2 %v1161_v63 }
 0x30f   : > { %v1402_v1 = vpop.f32.mrf.mxu0 }
 0x310   : > { %v5544_v2 = vmul.f32 0.35355338, %v1402_v1 }
 0x312   : > { %v1434_v4 = vsel %vm1160_vm9, %v5544_v2, -inf }
 0x313   : > { %1435 = vmax.xlane.f32.xlu2 %v1434_v4  ;;  %1168 = vmax.xlane.f32.xlu0 %v1167_v5 }
 0x317   : > { %v1405_v7 = vpop.f32.mrf.mxu0 }
 0x318   : > { %v5552_v8 = vmul.f32 0.35355338, %v1405_v7 }
 0x31a   : > { %v1437_v9 = vsel %vm1160_vm9, %v5552_v8, -inf }
 0x31b   : > { %1438 = vmax.xlane.f32.xlu1 %v1437_v9  ;;  %1171 = vmax.xlane.f32.xlu0 %v1170_v10 }
 0x31f   : > { %v1408_v13 = vpop.f32.mrf.mxu0 }
 0x320   : > { %v5560_v14 = vmul.f32 0.35355338, %v1408_v13 }
 0x322   : > { %v1440_v15 = vsel %vm1160_vm9, %v5560_v14, -inf }
 0x323   : > { %1441 = vmax.xlane.f32.xlu1 %v1440_v15  ;;  %1174 = vmax.xlane.f32.xlu0 %v1173_v16 }
 0x35e   : > { %v1421_v17 = vpop.xlane.xlu2 %1420 }
 0x35f   : > { %v1443_v18 = vsub.f32 %v1411_v41, %v1421_v17 }
 0x361   : > { %v1451_v19 = vmul.f32 1.442695, %v1443_v18 }
 0x363   : > { %4997 = vpow2.f32 %v1451_v19 }
 0x366   : > { %v1424_v20 = vpop.xlane.xlu0 %1423 }
 0x367   : > { %v1444_v21 = vsub.f32 %v1412_v44, %v1424_v20 }
 0x369   : > { %v5566_v22 = vpop.eup %4997  ;;  %v1453_v23 = vmul.f32 1.442695, %v1444_v21 }
 0x36a   : > { %v1467_v24 = vsel %vm1160_vm9, %v5566_v22, 0.0 }
 0x36b   : > { %4999 = vpow2.f32 %v1453_v23  ;;  %1468 = vadd.xlane.f32.xlu2 %v1467_v24 }
 0x36e   : > { %v1427_v25 = vpop.xlane.xlu1 %1426 }
 0x36f   : > { %v1445_v27 = vsub.f32 %v1413_v50, %v1427_v25 }
 0x371   : > { %v5570_v28 = vpop.eup %4999  ;;  %v1455_v29 = vmul.f32 1.442695, %v1445_v27 }
 0x372   : > { %v1470_v30 = vsel %vm1160_vm9, %v5570_v28, 0.0 }
 0x373   : > { %5001 = vpow2.f32 %v1455_v29  ;;  %1471 = vadd.xlane.f32.xlu2 %v1470_v30 }
 0x376   : > { %v1430_v32 = vpop.xlane.xlu2 %1429  ;;  %v1166_v42 = vpop.xlane.xlu1 %1165 }
 0x377   : > { %v1446_v33 = vsub.f32 %v1414_v55, %v1430_v32  ;;  %v1186_v50 = vsub.f32 %v5529_v53, %v1166_v42  ;;  %v5593_v55 = vmul.f32 0.35355338, %v1149_v54 }
 0x379   : > { %v5576_v34 = vpop.eup %5001  ;;  %v1457_v36 = vmul.f32 1.442695, %v1446_v33  ;;  %v1195_v56 = vmul.f32 1.442695, %v1186_v50  ;;  %v1182_v3 = vsel %vm1160_vm9, %v5593_v55, -inf }
 0x37a   : > { %v1473_v37 = vsel %vm1160_vm9, %v5576_v34, 0.0 }
 0x37b   : > { %5003 = vpow2.f32 %v1457_v36  ;;  %1474 = vadd.xlane.f32.xlu1 %v1473_v37  ;;  %1177 = vmax.xlane.f32.xlu2 %v1176_v38 }
 0x37e   : > { %v1433_v40 = vpop.xlane.xlu0 %1432  ;;  %v1163_v41 = vpop.xlane.xlu2 %1162 }
 0x37f   : > { %v1447_v43 = vsub.f32 %v5536_v61, %v1433_v40  ;;  %v1185_v44 = vsub.f32 %v5534_v58, %v1163_v41 }
 0x381   : > { %v5586_v46 = vpop.eup %5003  ;;  %v1459_v47 = vmul.f32 1.442695, %v1447_v43  ;;  %v1193_v48 = vmul.f32 1.442695, %v1185_v44 }
 0x382   : > { %v1476_v51 = vsel %vm1160_vm9, %v5586_v46, 0.0 }
 0x383   : > { %5005 = vpow2.f32 %v1459_v47  ;;  %1477 = vadd.xlane.f32.xlu0 %v1476_v51  ;;  %1180 = vmax.xlane.f32.xlu1 %v1179_v52 }
 0x384   : > { %5007 = vpow2.f32 %v1193_v48 }
 0x385   : > { %5009 = vpow2.f32 %v1195_v56 }
 0x386   : > { %v1436_v57 = vpop.xlane.xlu2 %1435  ;;  %v1169_v58 = vpop.xlane.xlu0 %1168 }
 0x387   : > { %v1448_v59 = vsub.f32 %v5544_v2, %v1436_v57  ;;  %v1187_v53 = vsub.f32 %v5542_v0, %v1169_v58 }
 0x389   : > { %v5597_v60 = vpop.eup %5005  ;;  %v1461_v61 = vmul.f32 1.442695, %v1448_v59  ;;  %v1197_v62 = vmul.f32 1.442695, %v1187_v53 }
 0x38a   : > { %v5599_v63 = vpop.eup %5007  ;;  %v1479_v1 = vsel %vm1160_vm9, %v5597_v60, 0.0 }
 0x38b   : > { %5011 = vpow2.f32 %v1461_v61  ;;  %1480 = vadd.xlane.f32.xlu0 %v1479_v1  ;;  %v1209_v2 = vsel %vm1160_vm9, %v5599_v63, 0.0  ;;  %1183 = vmax.xlane.f32.xlu1 %v1182_v3  ;;  %v5609_v9 = vpop.eup %5009 }
 0x38c   : > { %5013 = vpow2.f32 %v1197_v62  ;;  %1210 = vadd.xlane.f32.xlu2 %v1209_v2  ;;  %v1212_v17 = vsel %vm1160_vm9, %v5609_v9, 0.0 }
 0x38e   : > { %v1439_v0 = vpop.xlane.xlu1 %1438  ;;  %v1172_v4 = vpop.xlane.xlu0 %1171 }
 0x38f   : > { %v1449_v5 = vsub.f32 %v5552_v8, %v1439_v0  ;;  %v1188_v7 = vsub.f32 %v5550_v6, %v1172_v4 }
 0x391   : > { %v5611_v10 = vpop.eup %5011  ;;  %v1463_v11 = vmul.f32 1.442695, %v1449_v5  ;;  %v1199_v13 = vmul.f32 1.442695, %v1188_v7 }
 0x392   : > { %v5613_v15 = vpop.eup %5013  ;;  %v1482_v16 = vsel %vm1160_vm9, %v5611_v10, 0.0 }
 0x393   : > { %5015 = vpow2.f32 %v1463_v11  ;;  %1483 = vadd.xlane.f32.xlu0 %v1482_v16  ;;  %v1215_v8 = vsel %vm1160_vm9, %v5613_v15, 0.0 }
 0x394   : > { %5017 = vpow2.f32 %v1199_v13  ;;  %1213 = vadd.xlane.f32.xlu2 %v1212_v17  ;;  %1216 = vadd.xlane.f32.xlu1 %v1215_v8 }
 0x396   : > { %v1442_v6 = vpop.xlane.xlu1 %1441  ;;  %v1175_v18 = vpop.xlane.xlu0 %1174 }
 0x397   : > { %v1450_v19 = vsub.f32 %v5560_v14, %v1442_v6  ;;  %v1189_v20 = vsub.f32 %v5558_v12, %v1175_v18 }
 0x399   : > { %v5623_v21 = vpop.eup %5015  ;;  %v1465_v23 = vmul.f32 1.442695, %v1450_v19  ;;  %v1201_v24 = vmul.f32 1.442695, %v1189_v20 }
 0x39a   : > { %v5625_v25 = vpop.eup %5017  ;;  %v1485_v26 = vsel %vm1160_vm9, %v5623_v21, 0.0 }
 0x39b   : > { %5019 = vpow2.f32 %v1465_v23  ;;  %v1218_v27 = vsel %vm1160_vm9, %v5625_v25, 0.0 }
 0x39c   : > { %5021 = vpow2.f32 %v1201_v24  ;;  %1219 = vadd.xlane.f32.xlu0 %v1218_v27  ;;  %1486 = vadd.xlane.f32.xlu2 %v1485_v26 }
 0x3a1   : > { %v5631_v29 = vpop.eup %5019 }
 0x3a2   : > { %v5633_v14 = vpop.eup %5021  ;;  %v1488_v12 = vsel %vm1160_vm9, %v5631_v29, 0.0 }
 0x3a3   : > { %v1221_v30 = vsel %vm1160_vm9, %v5633_v14, 0.0  ;;  %1489 = vadd.xlane.f32.xlu1 %v1488_v12 }
 0x3a4   : > { %1222 = vadd.xlane.f32.xlu2 %v1221_v30 }
 0x3de   : > { %v1469_v32 = vpop.xlane.xlu2 %1468 }
 0x3df   : > { %5023 = vrcp.f32 %v1469_v32 }
 0x3e5   : > { %v5024_v33 = vpop.eup %5023 }
 0x3e6   : > { %v1499_v35 = vmul.f32 %v5024_v33, %v5566_v22  ;;  %v1472_v36 = vpop.xlane.xlu2 %1471 }
 0x3e7   : > { %5025 = vrcp.f32 %v1472_v36 }
 0x3e8   : > { %4683 = vmatmul.msk.f32.vlgmr.msra.gmra.mxu1 %vm1160_vm9, %v1499_v35 }
 0x3ed   : > { %v5026_v37 = vpop.eup %5025 }
 0x3ee   : > { %v1475_v38 = vpop.xlane.xlu1 %1474  ;;  %v1178_v40 = vpop.xlane.xlu2 %1177  ;;  %v1500_v41 = vmul.f32 %v5026_v37, %v5570_v28 }
 0x3ef   : > { %5027 = vrcp.f32 %v1475_v38  ;;  %v1190_v42 = vsub.f32 %v5574_v31, %v1178_v40 }
 0x3f0   : > { %4684 = vmatmul.msk.f32.gmra.mxu1 %vm1160_vm9, %v1500_v41 }
 0x3f1   : > { %v1203_v43 = vmul.f32 1.442695, %v1190_v42  ;;  %v1623_v42 = vld [vmem:[%s6567_s8 + $0x8] sm:$0xff] }
 0x3f2   : > { %1717 = vmatpush.msra.mxu3 %v1623_v42 }
 0x3f3   : > { %5029 = vpow2.f32 %v1203_v43  ;;  %v1622_v43 = vld [vmem:[%s6567_s8] sm:$0xff] }
 0x3f4   : > { %1718 = vmatpush.msra.mxu3 %v1622_v43 }
 0x3f5   : > { %v5028_v44 = vpop.eup %5027 }
 0x3f6   : > { %v1478_v47 = vpop.xlane.xlu0 %1477  ;;  %v1181_v48 = vpop.xlane.xlu1 %1180  ;;  %v1501_v22 = vmul.f32 %v5028_v44, %v5576_v34  ;;  %v1621_v44 = vld [vmem:[%s5691_s14] sm:$0x1] }
 0x3f7   : > { %5031 = vrcp.f32 %v1478_v47  ;;  %v1191_v50 = vsub.f32 %v5582_v39, %v1181_v48  ;;  %v1626_v47 = vmul.f32 %v1623_v42, %v1623_v42  ;;  %v1625_v48 = vmul.f32 %v1622_v43, %v1622_v43 }
 0x3f8   : > { %4685 = vmatmul.msk.f32.gmra.mxu1 %vm1160_vm9, %v1501_v22  ;;  %v1624_v22 = vmul.f32 %v1621_v44, %v1621_v44 }
 0x3f9   : > { %v5647_v51 = vpop.eup %5029  ;;  %v1205_v28 = vmul.f32 1.442695, %v1191_v50  ;;  %1644 = vmatpush.msra.mxu2 %v1626_v47 }
 0x3fa   : > { %v1224_v31 = vsel %vm1160_vm9, %v5647_v51, 0.0 }
 0x3fb   : > { %5033 = vpow2.f32 %v1205_v28  ;;  %1225 = vadd.xlane.f32.xlu0 %v1224_v31  ;;  %1645 = vmatpush.msra.mxu2 %v1625_v48 }
 0x3fc   : > { %4691 = vmatmul.msk.f32.vlgmr.msra.gmra.mxu2 %vm499_vm0, %v1624_v22  ;;  %v5129_v22 = vld [vmem:[#allocation2 + $0x10] sm:$0xff] }
 0x3fd   : > { %v5032_v52 = vpop.eup %5031 }
 0x3fe   : > { %v1481_v54 = vpop.xlane.xlu0 %1480  ;;  %v1184_v56 = vpop.xlane.xlu1 %1183  ;;  %v1502_v57 = vmul.f32 %v5032_v52, %v5586_v46 }
 0x3ff   : > { %5035 = vrcp.f32 %v1481_v54  ;;  %v1211_v34 = vpop.xlane.xlu2 %1210  ;;  %v1192_v58 = vsub.f32 %v5593_v55, %v1184_v56 }
 0x400   : > { %5037 = vrcp.f32 %v1211_v34  ;;  %4686 = vmatmul.msk.f32.gmra.mxu1 %vm1160_vm9, %v1502_v57  ;;  %v4993_v34 = vld [vmem:[%s5691_s14] ss:$0 sm:$0xff] }
 0x401   : > { %v5654_v39 = vpop.eup %5033  ;;  %v1207_v59 = vmul.f32 1.442695, %v1192_v58 }
 0x402   : > { %v1227_v53 = vsel %vm1160_vm9, %v5654_v39, 0.0 }
 0x403   : > { %5039 = vpow2.f32 %v1207_v59  ;;  %1228 = vadd.xlane.f32.xlu1 %v1227_v53 }
 0x405   : > { %v5036_v61 = vpop.eup %5035 }
 0x406   : > { %v5038_v62 = vpop.eup %5037  ;;  %v1484_v1 = vpop.xlane.xlu0 %1483  ;;  %v1503_v46 = vmul.f32 %v5036_v61, %v5597_v60 }
 0x407   : > { %5041 = vrcp.f32 %v1484_v1  ;;  %v1214_v3 = vpop.xlane.xlu2 %1213  ;;  %v1241_v55 = vmul.f32 %v5038_v62, %v5599_v63  ;;  %v1217_v4 = vpop.xlane.xlu1 %1216 }
 0x408   : > { %5043 = vrcp.f32 %v1214_v3  ;;  %4687 = vmatmul.msk.f32.gmra.mxu1 %vm1160_vm9, %v1503_v46 }
 0x409   : > { %v5040_v2 = vpop.eup %5039  ;;  %4659 = vmatmul.msk.f32.vlgmr.msrb.gmra.mxu3 %vm1160_vm9, %v1241_v55  ;;  %5045 = vrcp.f32 %v1217_v4 }
 0x40a   : > { %v1230_v0 = vsel %vm1160_vm9, %v5040_v2, 0.0 }
 0x40b   : > { %1231 = vadd.xlane.f32.xlu2 %v1230_v0 }
 0x40d   : > { %v5042_v5 = vpop.eup %5041 }
 0x40e   : > { %v5044_v7 = vpop.eup %5043  ;;  %v1504_v11 = vmul.f32 %v5042_v5, %v5611_v10 }
 0x40f   : > { %v1487_v60 = vpop.xlane.xlu2 %1486  ;;  %v1242_v13 = vmul.f32 %v5044_v7, %v5609_v9  ;;  %v1220_v63 = vpop.xlane.xlu0 %1219 }
 0x410   : > { %4688 = vmatmul.msk.f32.gmra.mxu1 %vm1160_vm9, %v1504_v11  ;;  %5047 = vrcp.f32 %v1487_v60  ;;  %v5046_v16 = vpop.eup %5045 }
 0x411   : > { %4660 = vmatmul.msk.f32.gmra.mxu3 %vm1160_vm9, %v1242_v13  ;;  %5049 = vrcp.f32 %v1220_v63  ;;  %v1243_v6 = vmul.f32 %v5046_v16, %v5613_v15 }
 0x416   : > { %v1490_v17 = vpop.xlane.xlu1 %1489  ;;  %v5048_v8 = vpop.eup %5047 }
 0x417   : > { %5051 = vrcp.f32 %v1490_v17  ;;  %v1505_v18 = vmul.f32 %v5048_v8, %v5623_v21  ;;  %v1223_v9 = vpop.xlane.xlu2 %1222  ;;  %v5050_v10 = vpop.eup %5049 }
 0x418   : > { %5053 = vrcp.f32 %v1223_v9  ;;  %v1244_v23 = vmul.f32 %v5050_v10, %v5625_v25 }
 0x419   : > { %4661 = vmatmul.msk.f32.gmra.mxu3 %vm1160_vm9, %v1243_v6  ;;  %4689 = vmatmul.msk.f32.gmra.mxu1 %vm1160_vm9, %v1505_v18 }
 0x41d   : > { %v5052_v19 = vpop.eup %5051 }
 0x41e   : > { %v1506_v20 = vmul.f32 %v5052_v19, %v5631_v29  ;;  %v5054_v24 = vpop.eup %5053 }
 0x41f   : > { %v1245_v15 = vmul.f32 %v5054_v24, %v5633_v14 }
 0x421   : > { %4662 = vmatmul.msk.f32.gmra.mxu3 %vm1160_vm9, %v1244_v23  ;;  %4690 = vmatmul.msk.f32.gmra.mxu1 %vm1160_vm9, %v1506_v20 }
 0x429   : > { %4663 = vmatmul.msk.f32.gmra.mxu3 %vm1160_vm9, %v1245_v15 }
 0x465   : > { %v1556_v21 = vpop.f32.mrf.mxu1 }
 0x466   : > { %1588 = vrot.lane.b32.xlu0 %v1556_v21, %s5150_s24 }
 0x46d   : > { %v1559_v26 = vpop.f32.mrf.mxu1 }
 0x46e   : > { %v1226_v27 = vpop.xlane.xlu0 %1225  ;;  %1590 = vrot.lane.b32.xlu1 %v1559_v26, %s5150_s24 }
 0x46f   : > { %5055 = vrcp.f32 %v1226_v27 }
 0x475   : > { %v5056_v29 = vpop.eup %5055  ;;  %v1562_v25 = vpop.f32.mrf.mxu1 }
 0x476   : > { %1592 = vrot.lane.b32.xlu2 %v1562_v25, %s5150_s24  ;;  %v1229_v12 = vpop.xlane.xlu1 %1228  ;;  %v1246_v30 = vmul.f32 %v5056_v29, %v5647_v51 }
 0x477   : > { %5057 = vrcp.f32 %v1229_v12 }
 0x478   : > { %4664 = vmatmul.msk.f32.gmra.mxu3 %vm1160_vm9, %v1246_v30 }
 0x47d   : > { %v5058_v14 = vpop.eup %5057  ;;  %v1565_v32 = vpop.f32.mrf.mxu1 }
 0x47e   : > { %1594 = vrot.lane.b32.xlu0 %v1565_v32, %s5150_s24  ;;  %v1232_v33 = vpop.xlane.xlu2 %1231  ;;  %v1247_v35 = vmul.f32 %v5058_v14, %v5654_v39 }
 0x47f   : > { %5059 = vrcp.f32 %v1232_v33  ;;  %v1647_v10 = vpop.f32.mrf.mxu2 }
 0x480   : > { %4665 = vmatmul.msk.f32.gmra.mxu3 %vm1160_vm9, %v1247_v35  ;;  %v1648_v20 = vadd.f32 1e-08, %v1647_v10  ;;  %v4994_v35 = vld [vmem:[%s6568_s9] ss:$0 sm:$0xff] }
 0x482   : > { %5061 = vrsqrt.f32 %v1648_v20  ;;  %vm1656_vm11 = vweird.f32 %v1648_v20 }
 0x485   : > { %v5060_v36 = vpop.eup %5059  ;;  %v1568_v37 = vpop.f32.mrf.mxu1 }
 0x486   : > { %1596 = vrot.lane.b32.xlu1 %v1568_v37, %s5150_s24  ;;  %v1248_v38 = vmul.f32 %v5060_v36, %v5040_v2 }
 0x488   : > { %4666 = vmatmul.msk.f32.gmra.mxu3 %vm1160_vm9, %v1248_v38  ;;  %v5062_v24 = vpop.eup %5061 }
 0x489   : > { %v1651_v15 = vmul.f32 %v5062_v24, %v1648_v20  ;;  %vm1657_vm12 = vweird.f32 %v5062_v24 }
 0x48a   : > { %vm1658_vm13 = vmor %vm1656_vm11, %vm1657_vm12 }
 0x48b   : > { %v1652_v26 = vmul.f32 %v5062_v24, %v1651_v15 }
 0x48c   : > { %v1290_v40 = vpop.f32.mrf.mxu3 }
 0x48d   : > { %1314 = vst.msk [vmem:[#allocation4] sm:$0xff] %vm940_vm1, %v1290_v40  ;;  %v1571_v41 = vpop.f32.mrf.mxu1  ;;  %v1653_v27 = vmul.f32 0.5, %v1652_v26 }
 0x48e   : > { %1598 = vrot.lane.b32.xlu0 %v1571_v41, %s5150_s24 }
 0x48f   : > { %v1654_v25 = vsub.f32 1.5, %v1653_v27 }
 0x491   : > { %v1655_v12 = vmul.f32 %v5062_v24, %v1654_v25 }
 0x493   : > { %v1659_v14 = vsel %vm1658_vm13, %v5062_v24, %v1655_v12 }
 0x494   : > { %v1293_v50 = vpop.f32.mrf.mxu3  ;;  %v1744_v32 = vperm.slane %v1659_v14, 0 }
 0x495   : > { %1315 = vst.msk [vmem:[#allocation4 + $0x8] sm:$0xff] %vm940_vm1, %v1293_v50 }
 0x496   : > { %v1574_v51 = vpop.f32.mrf.mxu1 }
 0x497   : > { %1600 = vrot.lane.b32.xlu2 %v1574_v51, %s5150_s24 }
 0x49c   : > { %v1296_v28 = vpop.f32.mrf.mxu3 }
 0x49d   : > { %1316 = vst.msk [vmem:[#allocation4 + $0x10] sm:$0xff] %vm940_vm1, %v1296_v28 }
 0x49e   : > { %v1577_v31 = vpop.f32.mrf.mxu1 }
 0x49f   : > { %1602 = vrot.lane.b32.xlu1 %v1577_v31, %s5150_s24 }
 0x4a4   : > { %v1299_v52 = vpop.f32.mrf.mxu3 }
 0x4a5   : > { %1317 = vst.msk [vmem:[#allocation4 + $0x18] sm:$0xff] %vm940_vm1, %v1299_v52 }
 0x4ac   : > { %v1302_v54 = vpop.f32.mrf.mxu3 }
 0x4ad   : > { %1318 = vst.msk [vmem:[#allocation4 + $0x20] sm:$0xff] %vm940_vm1, %v1302_v54 }
 0x4d0   : > { %v1593_v56 = vpop.permute.xlu2 %1592 }
 0x4d1   : > { %1615 = vst.msk [vmem:[#allocation4 + $0x10] sm:$0xff] %vm1612_vm10, %v1593_v56 }
 0x4d8   : > { %v1589_v57 = vpop.permute.xlu0 %1588  ;;  %v1662_v62 = vld [vmem:[#allocation4 + $0x10] sm:$0xff] }
 0x4d9   : > { %1613 = vst.msk [vmem:[#allocation4] sm:$0xff] %vm1612_vm10, %v1589_v57  ;;  %v1673_v46 = vmul.f32 %v4993_v34, %v1662_v62  ;;  %v5130_v57 = vld [vmem:[#allocation2 + $0x18] sm:$0xff] }
 0x4e0   : > { %v1591_v58 = vpop.permute.xlu1 %1590  ;;  %v1660_v39 = vld [vmem:[#allocation4] sm:$0xff] }
 0x4e1   : > { %1614 = vst.msk [vmem:[#allocation4 + $0x8] sm:$0xff] %vm1612_vm10, %v1591_v58  ;;  %v1671_v59 = vmul.f32 %v4993_v34, %v1660_v39 }
 0x4e3   : > { %4692 = vmatmul.msk.f32.vlgmr.msra.gmra.mxu3 %vm499_vm0, %v1671_v59 }
 0x4e8   : > { %v1661_v53 = vld [vmem:[#allocation4 + $0x8] sm:$0xff] }
 0x4e9   : > { %v1672_v61 = vmul.f32 %v4993_v34, %v1661_v53 }
 0x4eb   : > { %4693 = vmatmul.msk.f32.gmra.mxu3 %vm499_vm0, %v1672_v61  ;;  %v5131_v61 = vld [vmem:[#allocation2 + $0x38] sm:$0xff] }
 0x4f0   : > { %v1595_v1 = vpop.permute.xlu0 %1594 }
 0x4f1   : > { %1616 = vst.msk [vmem:[#allocation4 + $0x18] sm:$0xff] %vm1612_vm10, %v1595_v1  ;;  %v1601_v60 = vpop.permute.xlu2 %1600 }
 0x4f3   : > { %4694 = vmatmul.msk.f32.gmra.mxu3 %vm499_vm0, %v1673_v46  ;;  %v5132_v46 = vld [vmem:[#allocation2] sm:$0xff] }
 0x4f8   : > { %v1597_v3 = vpop.permute.xlu1 %1596  ;;  %v1663_v55 = vld [vmem:[#allocation4 + $0x18] sm:$0xff] }
 0x4f9   : > { %1617 = vst.msk [vmem:[#allocation4 + $0x20] sm:$0xff] %vm1612_vm10, %v1597_v3  ;;  %v1674_v2 = vmul.f32 %v4993_v34, %v1663_v55 }
 0x4fb   : > { %v1305_v0 = vpop.f32.mrf.mxu3  ;;  %4695 = vmatmul.msk.f32.gmra.mxu3 %vm499_vm0, %v1674_v2  ;;  %v5133_v2 = vld [vmem:[#allocation2 + $0x20] sm:$0xff] }
 0x4fc   : > { %1319 = vst.msk [vmem:[#allocation4 + $0x28] sm:$0xff] %vm940_vm1, %v1305_v0 }
 0x500   : > { %v1599_v4 = vpop.permute.xlu0 %1598  ;;  %v1664_v5 = vld [vmem:[#allocation4 + $0x20] sm:$0xff] }
 0x501   : > { %1618 = vst.msk [vmem:[#allocation4 + $0x28] sm:$0xff] %vm1612_vm10, %v1599_v4  ;;  %v1675_v7 = vmul.f32 %v4993_v34, %v1664_v5 }
 0x503   : > { %v1308_v11 = vpop.f32.mrf.mxu3  ;;  %4696 = vmatmul.msk.f32.gmra.mxu3 %vm499_vm0, %v1675_v7 }
 0x504   : > { %1320 = vst.msk [vmem:[#allocation4 + $0x30] sm:$0xff] %vm940_vm1, %v1308_v11  ;;  %v5134_v11 = vld [vmem:[#allocation2 + $0x8] sm:$0xff] }
 0x505   : > { %1619 = vst.msk [vmem:[#allocation4 + $0x30] sm:$0xff] %vm1612_vm10, %v1601_v60 }
 0x508   : > { %v1665_v13 = vld [vmem:[#allocation4 + $0x28] sm:$0xff] }
 0x509   : > { %v1676_v63 = vmul.f32 %v4993_v34, %v1665_v13 }
 0x50b   : > { %v1311_v16 = vpop.f32.mrf.mxu3  ;;  %4697 = vmatmul.msk.f32.gmra.mxu3 %vm499_vm0, %v1676_v63  ;;  %v5151_v63 = vmov 8.0  }
 0x50c   : > { %1321 = vst.msk [vmem:[#allocation4 + $0x38] sm:$0xff] %vm940_vm1, %v1311_v16  ;;  %v1666_v17 = vld [vmem:[#allocation4 + $0x30] sm:$0xff]  ;;  %5063 = vrcp.f32 %v5151_v63 }
 0x50d   : > { %v1677_v8 = vmul.f32 %v4993_v34, %v1666_v17 }
 0x511   : > { %v1603_v6 = vpop.permute.xlu1 %1602 }
 0x512   : > { %1620 = vst.msk [vmem:[#allocation4 + $0x38] sm:$0xff] %vm1612_vm10, %v1603_v6  ;;  %v5064_v16 = vpop.eup %5063 }
 0x513   : > { %4698 = vmatmul.msk.f32.gmra.mxu3 %vm499_vm0, %v1677_v8  ;;  %v1798_v17 = vmul.f32 8.0, %v5064_v16  ;;  %vm1802_vm14 = vweird.f32 %v5064_v16 }
 0x515   : > { %v1799_v8 = vsub.f32 1.0, %v1798_v17 }
 0x517   : > { %v1800_v6 = vmul.f32 %v5064_v16, %v1799_v8 }
 0x519   : > { %v1667_v18 = vld [vmem:[#allocation4 + $0x38] sm:$0xff] }
 0x51a   : > { %v1678_v9 = vmul.f32 %v4993_v34, %v1667_v18  ;;  %v1801_v18 = vadd.f32 %v5064_v16, %v1800_v6 }
 0x51c   : > { %4699 = vmatmul.msk.f32.gmra.mxu3 %vm499_vm0, %v1678_v9  ;;  %v5742_v9 = vsel %vm1802_vm14, %v5064_v16, %v1801_v18 }
 0x566   : > { %v1720_v19 = vpop.f32.mrf.mxu3 }
 0x567   : > { %v1745_v54 = vmul.f32 %v1744_v32, %v1720_v19 }
 0x569   : > { %v1757_v59 = vadd.f32 %v4994_v35, %v1745_v54 }
 0x56b   : > { %v1765_v3 = vadd.f32 %v5132_v46, %v1757_v59 }
 0x56d   : > { %v1773_v4 = vsel %vm940_vm1, %v1765_v3, 0.0 }
 0x56e   : > { %v1723_v23 = vpop.f32.mrf.mxu3 }
 0x56f   : > { %v1746_v55 = vmul.f32 %v1744_v32, %v1723_v23 }
 0x571   : > { %v1758_v5 = vadd.f32 %v4994_v35, %v1746_v55 }
 0x573   : > { %v1766_v60 = vadd.f32 %v5134_v11, %v1758_v5 }
 0x575   : > { %v1776_v13 = vsel %vm940_vm1, %v1766_v60, 0.0 }
 0x576   : > { %v1726_v21 = vpop.f32.mrf.mxu3 }
 0x577   : > { %v1747_v37 = vmul.f32 %v1744_v32, %v1726_v21 }
 0x579   : > { %v1759_v41 = vadd.f32 %v4994_v35, %v1747_v37 }
 0x57b   : > { %v1767_v50 = vadd.f32 %v5129_v22, %v1759_v41 }
 0x57d   : > { %v1779_v31 = vsel %vm940_vm1, %v1767_v50, 0.0 }
 0x57e   : > { %v1729_v29 = vpop.f32.mrf.mxu3 }
 0x57f   : > { %v1748_v47 = vmul.f32 %v1744_v32, %v1729_v29 }
 0x581   : > { %v1760_v28 = vadd.f32 %v4994_v35, %v1748_v47 }
 0x583   : > { %v1768_v34 = vadd.f32 %v5130_v57, %v1760_v28 }
 0x585   : > { %v1782_v53 = vsel %vm940_vm1, %v1768_v34, 0.0 }
 0x586   : > { %v1732_v30 = vpop.f32.mrf.mxu3 }
 0x587   : > { %v1749_v58 = vmul.f32 %v1744_v32, %v1732_v30 }
 0x58e   : > { %v1735_v33 = vpop.f32.mrf.mxu3 }
 0x58f   : > { %v1750_v36 = vmul.f32 %v1744_v32, %v1735_v33 }
 0x591   : > { %v1762_v38 = vadd.f32 %v4994_v35, %v1750_v36 }
 0x593   : > { %v1770_v40 = vadd.f32 %v1762_v38, %v5459_v45 }
 0x595   : > { %v1788_v42 = vsel %vm940_vm1, %v1770_v40, 0.0 }
 0x596   : > { %1789 = vadd.xlane.f32.xlu1 %v1788_v42  ;;  %v1738_v43 = vpop.f32.mrf.mxu3 }
 0x597   : > { %v1751_v44 = vmul.f32 %v1744_v32, %v1738_v43 }
 0x599   : > { %v1763_v48 = vadd.f32 %v4994_v35, %v1751_v44 }
 0x59b   : > { %v1771_v51 = vadd.f32 %v1763_v48, %v5467_v49  ;;  %v1761_v49 = vadd.f32 %v4994_v35, %v1749_v58 }
 0x59d   : > { %v1791_v52 = vsel %vm940_vm1, %v1771_v51, 0.0  ;;  %v1769_v0 = vadd.f32 %v5133_v2, %v1761_v49 }
 0x59e   : > { %1780 = vadd.xlane.f32.xlu1 %v1779_v31  ;;  %1792 = vadd.xlane.f32.xlu2 %v1791_v52 }
 0x59f   : > { %v1741_v45 = vpop.f32.mrf.mxu3  ;;  %v1785_v7 = vsel %vm940_vm1, %v1769_v0, 0.0 }
 0x5a0   : > { %v1752_v56 = vmul.f32 %v1744_v32, %v1741_v45 }
 0x5a2   : > { %v1764_v39 = vadd.f32 %v4994_v35, %v1752_v56 }
 0x5a4   : > { %v1772_v62 = vadd.f32 %v5131_v61, %v1764_v39 }
 0x5a6   : > { %1783 = vadd.xlane.f32.xlu2 %v1782_v53  ;;  %v1794_v1 = vsel %vm940_vm1, %v1772_v62, 0.0 }
 0x5a7   : > { %1795 = vadd.xlane.f32.xlu0 %v1794_v1 }
 0x5ae   : > { %1774 = vadd.xlane.f32.xlu2 %v1773_v4 }
 0x5af   : > { %1786 = vadd.xlane.f32.xlu0 %v1785_v7 }
 0x5b7   : > { %1777 = vadd.xlane.f32.xlu0 %v1776_v13 }
 0x609   : > { %v1790_v10 = vpop.xlane.xlu1 %1789 }
 0x60a   : > { %v1809_v19 = vmul.f32 %v5742_v9, %v1790_v10 }
 0x60c   : > { %v5745_v20 = vsub.f32 %v1770_v40, %v1809_v19  ;;  %v5152_v19 = vmov 0  }
 0x60d   : > { %4888 = vset.pattern.permute.xlu2 %v5152_v19  ;;  %4889 = vset.pattern.permute.xlu1 %v5152_v19 }
 0x60e   : > { %v1825_v23 = vmul.f32 %v5745_v20, %v5745_v20  ;;  %4910 = vset.pattern.permute.xlu0 %v5152_v19 }
 0x610   : > { %v1843_v24 = vsel %vm940_vm1, %v1825_v23, 0.0  ;;  %v2004_v23 = vld [vmem:[%s6562_s3 + $0x8] sm:$0xff] }
 0x611   : > { %v1793_v15 = vpop.xlane.xlu2 %1792  ;;  %1844 = vadd.xlane.f32.xlu2 %v1843_v24  ;;  %v1781_v21 = vpop.xlane.xlu1 %1780 }
 0x612   : > { %v1810_v26 = vmul.f32 %v5742_v9, %v1793_v15  ;;  %v1806_v27 = vmul.f32 %v5742_v9, %v1781_v21 }
 0x614   : > { %v5752_v29 = vsub.f32 %v1771_v51, %v1810_v26  ;;  %v5754_v25 = vsub.f32 %v1767_v50, %v1806_v27 }
 0x616   : > { %v1826_v12 = vmul.f32 %v5752_v29, %v5752_v29  ;;  %v1822_v30 = vmul.f32 %v5754_v25, %v5754_v25 }
 0x618   : > { %v1846_v14 = vsel %vm940_vm1, %v1826_v12, 0.0  ;;  %v1834_v32 = vsel %vm940_vm1, %v1822_v30, 0.0 }
 0x619   : > { %v1784_v33 = vpop.xlane.xlu2 %1783  ;;  %1847 = vadd.xlane.f32.xlu0 %v1846_v14  ;;  %1835 = vadd.xlane.f32.xlu2 %v1834_v32 }
 0x61a   : > { %v1807_v35 = vmul.f32 %v5742_v9, %v1784_v33  ;;  %v1796_v36 = vpop.xlane.xlu0 %1795 }
 0x61b   : > { %v1811_v38 = vmul.f32 %v5742_v9, %v1796_v36 }
 0x61c   : > { %v5763_v37 = vsub.f32 %v1768_v34, %v1807_v35 }
 0x61d   : > { %v5766_v40 = vsub.f32 %v1772_v62, %v1811_v38 }
 0x61e   : > { %v1823_v41 = vmul.f32 %v5763_v37, %v5763_v37 }
 0x61f   : > { %v1827_v43 = vmul.f32 %v5766_v40, %v5766_v40 }
 0x620   : > { %v1837_v42 = vsel %vm940_vm1, %v1823_v41, 0.0 }
 0x621   : > { %v1775_v44 = vpop.xlane.xlu2 %1774  ;;  %1838 = vadd.xlane.f32.xlu0 %v1837_v42  ;;  %v1849_v48 = vsel %vm940_vm1, %v1827_v43, 0.0 }
 0x622   : > { %v1804_v47 = vmul.f32 %v5742_v9, %v1775_v44  ;;  %1850 = vadd.xlane.f32.xlu1 %v1849_v48  ;;  %v1787_v22 = vpop.xlane.xlu0 %1786  ;;  %v2003_v44 = vld [vmem:[%s6562_s3] sm:$0xff] }
 0x623   : > { %v1808_v51 = vmul.f32 %v5742_v9, %v1787_v22 }
 0x624   : > { %v5775_v50 = vsub.f32 %v1765_v3, %v1804_v47 }
 0x625   : > { %v5778_v28 = vsub.f32 %v1769_v0, %v1808_v51 }
 0x626   : > { %v1820_v31 = vmul.f32 %v5775_v50, %v5775_v50 }
 0x627   : > { %v1824_v45 = vmul.f32 %v5778_v28, %v5778_v28 }
 0x628   : > { %v1828_v52 = vsel %vm940_vm1, %v1820_v31, 0.0 }
 0x629   : > { %1829 = vadd.xlane.f32.xlu0 %v1828_v52  ;;  %v1840_v54 = vsel %vm940_vm1, %v1824_v45, 0.0 }
 0x62a   : > { %1841 = vadd.xlane.f32.xlu1 %v1840_v54  ;;  %v1778_v56 = vpop.xlane.xlu0 %1777 }
 0x62b   : > { %v1805_v57 = vmul.f32 %v5742_v9, %v1778_v56 }
 0x62d   : > { %v5787_v34 = vsub.f32 %v1766_v60, %v1805_v57 }
 0x62f   : > { %v1821_v58 = vmul.f32 %v5787_v34, %v5787_v34 }
 0x631   : > { %v1831_v39 = vsel %vm940_vm1, %v1821_v58, 0.0  ;;  %2012 = vperm.xlu2 %4888, %v2004_v23  }
 0x632   : > { %1832 = vadd.xlane.f32.xlu1 %v1831_v39 }
 0x64b   : > { %2007 = vperm.xlu1 %4889, %v2003_v44   ;;  %v4719_v44 = vld [vmem:[%s6562_s3 + $0x28] sm:$0xff] }
 0x684   : > { %v1845_v59 = vpop.xlane.xlu2 %1844 }
 0x685   : > { %v1857_v53 = vmul.f32 %v1845_v59, %v5742_v9 }
 0x687   : > { %v1865_v61 = vadd.f32 1e-05, %v1857_v53 }
 0x689   : > { %5065 = vrsqrt.f32 %v1865_v61  ;;  %vm1924_vm3 = vweird.f32 %v1865_v61 }
 0x68c   : > { %v1848_v62 = vpop.xlane.xlu0 %1847  ;;  %v1836_v49 = vpop.xlane.xlu2 %1835 }
 0x68d   : > { %v1858_v1 = vmul.f32 %v1848_v62, %v5742_v9  ;;  %v1854_v46 = vmul.f32 %v1836_v49, %v5742_v9 }
 0x68f   : > { %v5066_v3 = vpop.eup %5065  ;;  %v1866_v55 = vadd.f32 1e-05, %v1858_v1  ;;  %v1862_v2 = vadd.f32 1e-05, %v1854_v46 }
 0x690   : > { %v1919_v0 = vmul.f32 %v5066_v3, %v1865_v61  ;;  %vm1925_vm15 = vweird.f32 %v5066_v3 }
 0x691   : > { %5067 = vrsqrt.f32 %v1866_v55  ;;  %vm1926_vm4 = vmor %vm1924_vm3, %vm1925_vm15  ;;  %vm1934_vm7 = vweird.f32 %v1866_v55  ;;  %vm1894_vm10 = vweird.f32 %v1862_v2 }
 0x692   : > { %v1920_v4 = vmul.f32 %v5066_v3, %v1919_v0  ;;  %5069 = vrsqrt.f32 %v1862_v2 }
 0x694   : > { %v1921_v5 = vmul.f32 0.5, %v1920_v4  ;;  %v1839_v7 = vpop.xlane.xlu0 %1838 }
 0x695   : > { %v1855_v11 = vmul.f32 %v1839_v7, %v5742_v9  ;;  %v1851_v13 = vpop.xlane.xlu1 %1850 }
 0x696   : > { %v1922_v60 = vsub.f32 1.5, %v1921_v5  ;;  %v1859_v17 = vmul.f32 %v1851_v13, %v5742_v9 }
 0x697   : > { %v5068_v63 = vpop.eup %5067  ;;  %v5796_v16 = vadd.f32 1e-05, %v1855_v11 }
 0x698   : > { %v5070_v8 = vpop.eup %5069  ;;  %v1923_v6 = vmul.f32 %v5066_v3, %v1922_v60  ;;  %v1929_v18 = vmul.f32 %v5068_v63, %v1866_v55  ;;  %v1867_v21 = vadd.f32 1e-05, %v1859_v17  ;;  %vm1935_vm5 = vweird.f32 %v5068_v63 }
 0x699   : > { %v1889_v10 = vmul.f32 %v5070_v8, %v1862_v2  ;;  %5071 = vrsqrt.f32 %v5796_v16  ;;  %vm1895_vm6 = vweird.f32 %v5070_v8  ;;  %vm1936_vm8 = vmor %vm1934_vm7, %vm1935_vm5  ;;  %vm1904_vm13 = vweird.f32 %v5796_v16 }
 0x69a   : > { %v1927_v24 = vsel %vm1926_vm4, %v5066_v3, %v1923_v6  ;;  %v1930_v15 = vmul.f32 %v5068_v63, %v1929_v18  ;;  %5073 = vrsqrt.f32 %v1867_v21  ;;  %vm1896_vm11 = vmor %vm1894_vm10, %vm1895_vm6  ;;  %vm1944_vm3 = vweird.f32 %v1867_v21 }
 0x69b   : > { %v1953_v26 = vmul.f32 %v1927_v24, %v5745_v20  ;;  %v1890_v27 = vmul.f32 %v5070_v8, %v1889_v10 }
 0x69c   : > { %v1931_v12 = vmul.f32 0.5, %v1930_v15  ;;  %v1830_v30 = vpop.xlane.xlu0 %1829 }
 0x69d   : > { %1961 = vst.msk [vmem:[#allocation5 + $0x28] sm:$0xff] %vm940_vm1, %v1953_v26  ;;  %v1891_v14 = vmul.f32 0.5, %v1890_v27  ;;  %v1852_v32 = vmul.f32 %v1830_v30, %v5742_v9  ;;  %v1842_v35 = vpop.xlane.xlu1 %1841 }
 0x69e   : > { %v1932_v33 = vsub.f32 1.5, %v1931_v12  ;;  %v1856_v42 = vmul.f32 %v1842_v35, %v5742_v9 }
 0x69f   : > { %v5072_v36 = vpop.eup %5071  ;;  %v1892_v38 = vsub.f32 1.5, %v1891_v14  ;;  %v1860_v41 = vadd.f32 1e-05, %v1852_v32 }
 0x6a0   : > { %v1933_v43 = vmul.f32 %v5068_v63, %v1932_v33  ;;  %v1899_v20 = vmul.f32 %v5072_v36, %v5796_v16  ;;  %v1864_v48 = vadd.f32 1e-05, %v1856_v42  ;;  %v5074_v22 = vpop.eup %5073  ;;  %vm1905_vm12 = vweird.f32 %v5072_v36 }
 0x6a1   : > { %v1893_v47 = vmul.f32 %v5070_v8, %v1892_v38  ;;  %5075 = vrsqrt.f32 %v1860_v41  ;;  %v1939_v54 = vmul.f32 %v5074_v22, %v1867_v21  ;;  %vm1906_vm14 = vmor %vm1904_vm13, %vm1905_vm12  ;;  %vm1945_vm15 = vweird.f32 %v5074_v22  ;;  %v4709_v38 = vld [vmem:[%s6562_s3 + $0x18] sm:$0xff] }
 0x6a2   : > { %v1937_v51 = vsel %vm1936_vm8, %v5068_v63, %v1933_v43  ;;  %v1900_v31 = vmul.f32 %v5072_v36, %v1899_v20  ;;  %5077 = vrsqrt.f32 %v1864_v48  ;;  %vm1946_vm4 = vmor %vm1944_vm3, %vm1945_vm15  ;;  %vm1874_vm6 = vweird.f32 %v1860_v41  ;;  %v4708_v43 = vld [vmem:[%s6562_s3 + $0x10] sm:$0xff]  ;;  %v1973_v20 = vld [vmem:[%s6561_s2 + $0x8] sm:$0xff] }
 0x6a3   : > { %v1954_v52 = vmul.f32 %v1937_v51, %v5752_v29  ;;  %v1897_v45 = vsel %vm1896_vm11, %v5070_v8, %v1893_v47  ;;  %v1940_v58 = vmul.f32 %v5074_v22, %v1939_v54  ;;  %vm1914_vm10 = vweird.f32 %v1864_v48  ;;  %v4718_v47 = vld [vmem:[%s6562_s3 + $0x20] sm:$0xff] }
 0x6a4   : > { %v1950_v56 = vmul.f32 %v1897_v45, %v5754_v25  ;;  %v1901_v57 = vmul.f32 0.5, %v1900_v31  ;;  %v1969_v27 = vld [vmem:[#allocation5 + $0x28] sm:$0xff] }
 0x6a5   : > { %1962 = vst.msk [vmem:[#allocation5 + $0x30] sm:$0xff] %vm940_vm1, %v1954_v52  ;;  %v1833_v59 = vpop.xlane.xlu1 %1832  ;;  %v1941_v61 = vmul.f32 0.5, %v1940_v58 }
 0x6a6   : > { %1958 = vst.msk [vmem:[#allocation5 + $0x10] sm:$0xff] %vm940_vm1, %v1950_v56  ;;  %v1902_v39 = vsub.f32 1.5, %v1901_v57  ;;  %v1853_v62 = vmul.f32 %v1833_v59, %v5742_v9 }
 0x6a7   : > { %v5076_v53 = vpop.eup %5075  ;;  %v1942_v25 = vsub.f32 1.5, %v1941_v61 }
 0x6a8   : > { %v1903_v49 = vmul.f32 %v5072_v36, %v1902_v39  ;;  %v1869_v29 = vmul.f32 %v5076_v53, %v1860_v41  ;;  %v1861_v1 = vadd.f32 1e-05, %v1853_v62  ;;  %v5078_v46 = vpop.eup %5077  ;;  %vm1875_vm5 = vweird.f32 %v5076_v53 }
 0x6a9   : > { %v1943_v0 = vmul.f32 %v5074_v22, %v1942_v25  ;;  %v1909_v4 = vmul.f32 %v5078_v46, %v1864_v48  ;;  %vm1876_vm7 = vmor %vm1874_vm6, %vm1875_vm5  ;;  %vm1915_vm8 = vweird.f32 %v5078_v46  ;;  %v4729_v48 = vld [vmem:[%s6562_s3 + $0x38] sm:$0xff] }
 0x6aa   : > { %v1907_v3 = vsel %vm1906_vm14, %v5072_v36, %v1903_v49  ;;  %v1870_v55 = vmul.f32 %v5076_v53, %v1869_v29  ;;  %5079 = vrsqrt.f32 %v1861_v1  ;;  %vm1916_vm11 = vmor %vm1914_vm10, %vm1915_vm8  ;;  %vm1884_vm13 = vweird.f32 %v1861_v1  ;;  %v2013_v49 = vpop.permute.xlu2 %2012 }
 0x6ab   : > { %v1951_v2 = vmul.f32 %v1907_v3, %v5763_v37  ;;  %v1947_v9 = vsel %vm1946_vm4, %v5074_v22, %v1943_v0  ;;  %v1910_v7 = vmul.f32 %v5078_v46, %v1909_v4  ;;  %v2017_v0 = vld [vmem:[%s5245_s30] sm:$0xff] }
 0x6ac   : > { %v1871_v5 = vmul.f32 0.5, %v1870_v55  ;;  %v1955_v11 = vmul.f32 %v1947_v9, %v5766_v40  ;;  %v2100_v15 = vld [vmem:[#allocation5 + $0x30] sm:$0xff] }
 0x6ad   : > { %1959 = vst.msk [vmem:[#allocation5 + $0x18] sm:$0xff] %vm940_vm1, %v1951_v2  ;;  %v1911_v13 = vmul.f32 0.5, %v1910_v7  ;;  %v2096_v32 = vld [vmem:[#allocation5 + $0x10] sm:$0xff] }
 0x6ae   : > { %v1872_v60 = vsub.f32 1.5, %v1871_v5  ;;  %1963 = vst.msk [vmem:[#allocation5 + $0x38] sm:$0xff] %vm940_vm1, %v1955_v11  ;;  %v5156_v11 = vmov 1.0  }
 0x6af   : > { %v1912_v37 = vsub.f32 1.5, %v1911_v13 }
 0x6b0   : > { %v1873_v63 = vmul.f32 %v5076_v53, %v1872_v60  ;;  %v5080_v16 = vpop.eup %5079 }
 0x6b1   : > { %v1913_v6 = vmul.f32 %v5078_v46, %v1912_v37  ;;  %v1879_v18 = vmul.f32 %v5080_v16, %v1861_v1  ;;  %vm1885_vm12 = vweird.f32 %v5080_v16 }
 0x6b2   : > { %v1877_v17 = vsel %vm1876_vm7, %v5076_v53, %v1873_v63  ;;  %vm1886_vm14 = vmor %vm1884_vm13, %vm1885_vm12 }
 0x6b3   : > { %v1948_v8 = vmul.f32 %v1877_v17, %v5775_v50  ;;  %v1917_v40 = vsel %vm1916_vm11, %v5078_v46, %v1913_v6  ;;  %v1880_v10 = vmul.f32 %v5080_v16, %v1879_v18  ;;  %v2018_v46 = vld [vmem:[%s5245_s30 + $0x8] sm:$0xff]  ;;  %v4704_v18 = vld [vmem:[%s6561_s2 + $0x10] sm:$0xff] }
 0x6b4   : > { %v1952_v19 = vmul.f32 %v1917_v40, %v5778_v28  ;;  %v2097_v30 = vld [vmem:[#allocation5 + $0x18] sm:$0xff] }
 0x6b5   : > { %1956 = vst.msk [vmem:[#allocation5] sm:$0xff] %vm940_vm1, %v1948_v8  ;;  %v1881_v23 = vmul.f32 0.5, %v1880_v10  ;;  %v1971_v24 = vld [vmem:[#allocation5 + $0x38] sm:$0xff]  ;;  %v4900_v33 = vpack.i.bf16 %v2096_v32, %v2097_v30 }
 0x6b6   : > { %1960 = vst.msk [vmem:[#allocation5 + $0x20] sm:$0xff] %vm940_vm1, %v1952_v19  ;;  %1988 = vmatpush.msrb.mxu2 %v1971_v24  ;;  %v4895_v21 = vpack.i.bf16 %v2100_v15, %v1971_v24 }
 0x6b7   : > { %v1882_v26 = vsub.f32 1.5, %v1881_v23 }
 0x6b8   : > { %4896 = vrot.lane.b32.xlu0 %v4895_v21, %s5153_s28  ;;  %1989 = vmatpush.msrb.mxu2 %v2100_v15  ;;  %v4705_v15 = vld [vmem:[%s6561_s2 + $0x18] sm:$0xff] }
 0x6b9   : > { %v1883_v50 = vmul.f32 %v5080_v16, %v1882_v26 }
 0x6ba   : > { %1990 = vmatpush.msrb.mxu2 %v1969_v27 }
 0x6bb   : > { %v1887_v12 = vsel %vm1886_vm14, %v5080_v16, %v1883_v50 }
 0x6bc   : > { %v1949_v28 = vmul.f32 %v1887_v12, %v5787_v34  ;;  %v2094_v41 = vld [vmem:[#allocation5] sm:$0xff] }
 0x6bd   : > { %v1968_v14 = vld [vmem:[#allocation5 + $0x20] sm:$0xff]  ;;  %v2008_v31 = vpop.permute.xlu1 %2007 }
 0x6be   : > { %1957 = vst.msk [vmem:[#allocation5 + $0x8] sm:$0xff] %vm940_vm1, %v1949_v28  ;;  %1991 = vmatpush.msrb.mxu2 %v1968_v14  ;;  %v4890_v35 = vpack.i.bf16 %v1968_v14, %v1969_v27  ;;  %v1972_v34 = vld [vmem:[%s6561_s2] sm:$0xff]  ;;  %v4715_v28 = vld [vmem:[%s6561_s2 + $0x28] sm:$0xff]  ;;  %vm2044_vm1 = vcmask 8192  }
 0x6c0   : > { %4901 = vrot.lane.b32.xlu0 %v4900_v33, %s5153_s28  ;;  %4891 = vrot.lane.b32.xlu2 %v4890_v35, %s5153_s28 }
 0x6c1   : > { %1992 = vmatpush.msrb.mxu2 %v2097_v30  ;;  %v4714_v30 = vld [vmem:[%s6561_s2 + $0x20] sm:$0xff] }
 0x6c3   : > { %1993 = vmatpush.msrb.mxu2 %v2096_v32 }
 0x6c5   : > { %v1965_v36 = vld [vmem:[#allocation5 + $0x8] sm:$0xff] }
 0x6c6   : > { %1994 = vmatpush.msrb.mxu2 %v1965_v36  ;;  %v5831_v42 = vpack.i.bf16 %v2094_v41, %v1965_v36 }
 0x6c8   : > { %2176 = vperm.xlu0 %4910, %v4709_v38   ;;  %4906 = vrot.lane.b32.xlu1 %v5831_v42, %s5153_s28 }
 0x6c9   : > { %1995 = vmatpush.msrb.mxu2 %v2094_v41 }
 0x6ca   : > { %4700 = vmatmul.msk.f32.vlgmr.msrb.gmra.mxu2 %vm1160_vm9, %v1972_v34 }
 0x6d0   : > { %4917 = vrot.lane.b32.xlu0 %v4895_v21, %s5154_s20  ;;  %2171 = vperm.xlu1 %4889, %v4708_v43  }
 0x6d2   : > { %4701 = vmatmul.msk.f32.gmra.mxu2 %vm1160_vm9, %v1973_v20 }
 0x6d8   : > { %4927 = vrot.lane.b32.xlu0 %v4890_v35, %s5154_s20  ;;  %4912 = vrot.lane.b32.xlu1 %v4895_v21, %s5155_s22 }
 0x6e0   : > { %4937 = vrot.lane.b32.xlu0 %v4900_v33, %s5154_s20  ;;  %4922 = vrot.lane.b32.xlu1 %v4890_v35, %s5155_s22 }
 0x6e8   : > { %4932 = vrot.lane.b32.xlu1 %v4900_v33, %s5155_s22  ;;  %v4728_v33 = vld [vmem:[%s6562_s3 + $0x30] sm:$0xff] }
 0x6f0   : > { %4942 = vrot.lane.b32.xlu1 %v5831_v42, %s5155_s22 }
 0x6f8   : > { %2337 = vperm.xlu1 %4889, %v4719_v44  }
 0x700   : > { %2332 = vperm.xlu1 %4889, %v4718_v47   ;;  %v4711_v47 = vld [vmem:[%s5245_s30 + $0x18] sm:$0xff] }
 0x708   : > { %2498 = vperm.xlu1 %4889, %v4729_v48  }
 0x71a   : > { %v4892_v7 = vpop.permute.xlu2 %4891 }
 0x71b   : > { %v4893_v13 = vunpack.i.l.bf16 %v4892_v7  ;;  %v4894_v37 = vunpack.i.h.bf16 %v4892_v7 }
 0x72a   : > { %v4897_v22 = vpop.permute.xlu0 %4896 }
 0x72b   : > { %v4898_v9 = vunpack.i.l.bf16 %v4897_v22  ;;  %v4899_v60 = vunpack.i.h.bf16 %v4897_v22 }
 0x732   : > { %v4902_v51 = vpop.permute.xlu0 %4901 }
 0x733   : > { %v4903_v16 = vunpack.i.l.bf16 %v4902_v51  ;;  %v4904_v17 = vunpack.i.h.bf16 %v4902_v51 }
 0x73a   : > { %v5858_v52 = vpop.permute.xlu0 %2176  ;;  %v4907_v54 = vpop.permute.xlu1 %4906 }
 0x73b   : > { %v4908_v8 = vunpack.i.l.bf16 %v4907_v54  ;;  %v4909_v6 = vunpack.i.h.bf16 %v4907_v54  ;;  %v4710_v54 = vld [vmem:[%s5245_s30 + $0x10] sm:$0xff] }
 0x742   : > { %v4918_v45 = vpop.permute.xlu0 %4917  ;;  %v5860_v59 = vpop.permute.xlu1 %2171 }
 0x743   : > { %v4919_v56 = vunpack.i.l.bf16 %v4918_v45  ;;  %v4920_v57 = vunpack.i.h.bf16 %v4918_v45 }
 0x745   : > { %2473 = vmatpush.msrb.mxu3 %v4919_v56  ;;  %v4724_v56 = vld [vmem:[%s6561_s2 + $0x30] sm:$0xff] }
 0x747   : > { %2474 = vmatpush.msrb.mxu3 %v4920_v57 }
 0x74a   : > { %v4928_v58 = vpop.permute.xlu0 %4927  ;;  %v4913_v2 = vpop.permute.xlu1 %4912 }
 0x74b   : > { %v4929_v39 = vunpack.i.l.bf16 %v4928_v58  ;;  %v4930_v53 = vunpack.i.h.bf16 %v4928_v58  ;;  %v4914_v10 = vunpack.i.l.bf16 %v4913_v2  ;;  %v4915_v19 = vunpack.i.h.bf16 %v4913_v2  ;;  %v4725_v58 = vld [vmem:[%s6561_s2 + $0x38] sm:$0xff] }
 0x74d   : > { %v1997_v61 = vpop.f32.mrf.mxu2  ;;  %2475 = vmatpush.msrb.mxu3 %v4929_v39 }
 0x74e   : > { %v2015_v3 = vmul.f32 %v2008_v31, %v1997_v61 }
 0x74f   : > { %2476 = vmatpush.msrb.mxu3 %v4930_v53 }
 0x750   : > { %v2019_v5 = vadd.f32 %v2017_v0, %v2015_v3 }
 0x752   : > { %v4938_v62 = vpop.permute.xlu0 %4937  ;;  %v4923_v63 = vpop.permute.xlu1 %4922 }
 0x753   : > { %v4939_v29 = vunpack.i.l.bf16 %v4938_v62  ;;  %v4940_v25 = vunpack.i.h.bf16 %v4938_v62  ;;  %v4924_v23 = vunpack.i.l.bf16 %v4923_v63  ;;  %v4925_v24 = vunpack.i.h.bf16 %v4923_v63 }
 0x755   : > { %v2000_v1 = vpop.f32.mrf.mxu2  ;;  %2477 = vmatpush.msrb.mxu3 %v4939_v29 }
 0x756   : > { %v2016_v55 = vmul.f32 %v2013_v49, %v2000_v1 }
 0x757   : > { %2478 = vmatpush.msrb.mxu3 %v4940_v25 }
 0x758   : > { %v5864_v4 = vadd.f32 %v2018_v46, %v2016_v55 }
 0x75a   : > { %2038 = vmatpush.msrb.mxu0 %v5864_v4  ;;  %v4933_v40 = vpop.permute.xlu1 %4932 }
 0x75b   : > { %v4934_v21 = vunpack.i.l.bf16 %v4933_v40  ;;  %v4935_v50 = vunpack.i.h.bf16 %v4933_v40 }
 0x75c   : > { %2039 = vmatpush.msrb.mxu0 %v2019_v5 }
 0x75d   : > { %4702 = vmatmul.msk.f32.vlgmr.msrb.gmra.mxu0 %vm499_vm0, %v5156_v11 }
 0x75e   : > { %2151 = vmatpush.msra.mxu0 %v4898_v9 }
 0x760   : > { %2152 = vmatpush.msra.mxu0 %v4899_v60 }
 0x762   : > { %2153 = vmatpush.msra.mxu0 %v4893_v13  ;;  %v4943_v26 = vpop.permute.xlu1 %4942 }
 0x763   : > { %v4944_v27 = vunpack.i.l.bf16 %v4943_v26  ;;  %v4945_v12 = vunpack.i.h.bf16 %v4943_v26 }
 0x764   : > { %2154 = vmatpush.msra.mxu0 %v4894_v37 }
 0x766   : > { %2155 = vmatpush.msra.mxu0 %v4903_v16 }
 0x768   : > { %2156 = vmatpush.msra.mxu0 %v4904_v17 }
 0x76a   : > { %2157 = vmatpush.msra.mxu0 %v4908_v8  ;;  %v2338_v62 = vpop.permute.xlu1 %2337  ;;  %v4721_v8 = vld [vmem:[%s5245_s30 + $0x28] sm:$0xff] }
 0x76c   : > { %2158 = vmatpush.msra.mxu0 %v4909_v6 }
 0x76d   : > { %4706 = vmatmul.msk.f32.vlgmr.msra.gmra.mxu0 %vm1160_vm9, %v4704_v18 }
 0x76e   : > { %2312 = vmatpush.msrb.mxu0 %v4914_v10  ;;  %v4720_v10 = vld [vmem:[%s5245_s30 + $0x20] sm:$0xff] }
 0x770   : > { %2313 = vmatpush.msrb.mxu0 %v4915_v19 }
 0x772   : > { %2314 = vmatpush.msrb.mxu0 %v4924_v23  ;;  %v2333_v49 = vpop.permute.xlu1 %2332 }
 0x774   : > { %2315 = vmatpush.msrb.mxu0 %v4925_v24 }
 0x775   : > { %4707 = vmatmul.msk.f32.gmra.mxu0 %vm1160_vm9, %v4705_v15 }
 0x776   : > { %2316 = vmatpush.msrb.mxu0 %v4934_v21  ;;  %v4731_v21 = vld [vmem:[%s5245_s30 + $0x38] sm:$0xff] }
 0x778   : > { %2317 = vmatpush.msrb.mxu0 %v4935_v50 }
 0x77a   : > { %2318 = vmatpush.msrb.mxu0 %v4944_v27  ;;  %v2499_v29 = vpop.permute.xlu1 %2498 }
 0x77c   : > { %2319 = vmatpush.msrb.mxu0 %v4945_v12  ;;  %v4730_v12 = vld [vmem:[%s5245_s30 + $0x30] sm:$0xff]  ;;  %s4865_s30 = sshll.u32 %s6574_s26, 4  ;;  %s5158_s26 = smov 1  }
 0x77d   : > { %4716 = vmatmul.msk.f32.vlgmr.msrb.gmra.mxu0 %vm1160_vm9, %v4714_v30  ;;  %s483_s19 = scalar_lea.vmem %s6569_s10, %s4865_s30  ;;  %s6281_s30 = scalar_lea.vmem %s6572_s13, %s4864_s27 }
 0x785   : > { %4717 = vmatmul.msk.f32.gmra.mxu0 %vm1160_vm9, %v4715_v28 }
 0x7da   : > { %v2041_v14 = vpop.f32.mrf.mxu0 }
 0x7db   : > { %v2045_v32 = vsel %vm2044_vm1, %v2041_v14, 0.0 }
 0x7dc   : > { %2046 = vadd.xlane.f32.xlu2 %v2045_v32 }
 0x7ea   : > { %v2160_v35 = vpop.f32.mrf.mxu0 }
 0x7eb   : > { %v2179_v22 = vmul.f32 %v5860_v59, %v2160_v35 }
 0x7ed   : > { %v2183_v57 = vadd.f32 %v4710_v54, %v2179_v22 }
 0x7f2   : > { %v2163_v34 = vpop.f32.mrf.mxu0 }
 0x7f3   : > { %v2180_v43 = vmul.f32 %v5858_v52, %v2163_v34 }
 0x7f4   : > { %4947 = vrot.lane.b32.xlu2 %v5831_v42, %s5154_s20 }
 0x7f5   : > { %v2184_v51 = vadd.f32 %v4711_v47, %v2180_v43 }
 0x7fa   : > { %v2321_v46 = vpop.f32.mrf.mxu0 }
 0x7fb   : > { %v2340_v18 = vmul.f32 %v2333_v49, %v2321_v46  ;;  %v4734_v46 = vld [vmem:[%s6570_s11 + $0x10] sm:$0xff] }
 0x7fc   : > { %2493 = vperm.xlu2 %4888, %v4728_v33  }
 0x7fd   : > { %v5933_v27 = vadd.f32 %v4720_v10, %v2340_v18 }
 0x802   : > { %v2324_v9 = vpop.f32.mrf.mxu0 }
 0x803   : > { %v2341_v37 = vmul.f32 %v2338_v62, %v2324_v9 }
 0x805   : > { %v5928_v24 = vadd.f32 %v4721_v8, %v2341_v37  ;;  %v4735_v8 = vld [vmem:[%s6570_s11 + $0x18] sm:$0xff] }
 0x84f   : > { %v2047_v36 = vpop.xlane.xlu2 %2046 }
 0x850   : > { %v2048_v38 = vmul.f32 0.03125, %v2047_v36  ;;  %v5954_v36 = vld [vmem:[%s483_s19] sm:$0xff] }
 0x852   : > { %v2049_v41 = vperm.slane %v2048_v38, 0  ;;  %v5956_v38 = vld [vmem:[%s483_s19 + $0x8] sm:$0xff] }
 0x853   : > { %v5971_v47 = vmul.f32 %v5956_v38, %v5956_v38 }
 0x854   : > { %v5892_v20 = vsub.f32 %v2019_v5, %v2049_v41  ;;  %v5895_v44 = vsub.f32 %v5864_v4, %v2049_v41 }
 0x856   : > { %v2053_v42 = vmul.f32 %v5895_v44, %v5895_v44  ;;  %v2052_v45 = vmul.f32 %v5892_v20, %v5892_v20 }
 0x857   : > { %v4948_v48 = vpop.permute.xlu2 %4947 }
 0x858   : > { %v4949_v31 = vunpack.i.l.bf16 %v4948_v48  ;;  %2068 = vmatpush.msra.mxu2 %v2053_v42  ;;  %v4950_v52 = vunpack.i.h.bf16 %v4948_v48  ;;  %v5975_v42 = vmul.f32 %v5954_v36, %v5954_v36 }
 0x85a   : > { %2069 = vmatpush.msra.mxu2 %v2052_v45  ;;  %2479 = vmatpush.msrb.mxu3 %v4949_v31 }
 0x85b   : > { %4703 = vmatmul.msk.f32.vlgmr.msra.gmra.mxu2 %vm499_vm0, %v5156_v11 }
 0x85c   : > { %2199 = vmatpush.msrb.mxu2 %v2184_v51  ;;  %2480 = vmatpush.msrb.mxu3 %v4950_v52 }
 0x85d   : > { %4726 = vmatmul.msk.f32.vlgmr.msrb.gmra.mxu3 %vm1160_vm9, %v4724_v56 }
 0x85e   : > { %2200 = vmatpush.msrb.mxu2 %v2183_v57  ;;  %2717 = vmatpush.msra.mxu3 %v5971_v47 }
 0x85f   : > { %v2494_v15 = vpop.permute.xlu2 %2493 }
 0x860   : > { %2718 = vmatpush.msra.mxu3 %v5975_v42 }
 0x862   : > { %2875 = vmatpush.msrb.mxu3 %v5971_v47 }
 0x863   : > { %4712 = vmatmul.msk.f32.vlgmr.msrb.gmra.mxu2 %vm499_vm0, %v5156_v11 }
 0x864   : > { %2876 = vmatpush.msrb.mxu3 %v5975_v42 }
 0x865   : > { %4727 = vmatmul.msk.f32.gmra.mxu3 %vm1160_vm9, %v4725_v58  ;;  %v5986_v58 = vpack.i.bf16 %v5975_v42, %v5971_v47 }
 0x8de   : > { %v2071_v39 = vpop.f32.mrf.mxu2 }
 0x8df   : > { %v2074_v59 = vsel %vm2044_vm1, %v2071_v39, 0.0  ;;  %v5993_v39 = vld [vmem:[%s6571_s12 + $0x8] sm:$0xff] }
 0x8e0   : > { %2075 = vadd.xlane.f32.xlu1 %v2074_v59  ;;  %v2482_v55 = vpop.f32.mrf.mxu3  ;;  %v6006_v59 = vld [vmem:[%s6571_s12 + $0x18] sm:$0xff] }
 0x8e1   : > { %v2501_v26 = vmul.f32 %v2494_v15, %v2482_v55  ;;  %v2586_v55 = vld [vmem:[%s6570_s11 + $0x8] sm:$0xff] }
 0x8e3   : > { %v5940_v32 = vadd.f32 %v4730_v12, %v2501_v26  ;;  %v4746_v12 = vld [vmem:[%s6570_s11 + $0x30] sm:$0xff] }
 0x8e6   : > { %v2202_v53 = vpop.f32.mrf.mxu2 }
 0x8e7   : > { %v2205_v61 = vsel %vm2044_vm1, %v2202_v53, 0.0  ;;  %v6011_v53 = vld [vmem:[%s6571_s12] sm:$0xff] }
 0x8e8   : > { %2206 = vadd.xlane.f32.xlu0 %v2205_v61  ;;  %v2485_v16 = vpop.f32.mrf.mxu3  ;;  %v2585_v61 = vld [vmem:[%s6570_s11] sm:$0xff] }
 0x8e9   : > { %v2502_v19 = vmul.f32 %v2499_v29, %v2485_v16  ;;  %v2656_v62 = vmul.f32 %v2585_v61, %v2585_v61 }
 0x8eb   : > { %v5937_v30 = vadd.f32 %v4731_v21, %v2502_v19  ;;  %4742 = vmatmul.msk.f32.vlgmr.msra.gmra.mxu3 %vm499_vm0, %v2656_v62 }
 0x953   : > { %v2076_v25 = vpop.xlane.xlu1 %2075 }
 0x954   : > { %v2077_v1 = vmul.f32 0.03125, %v2076_v25 }
 0x956   : > { %v2078_v3 = vadd.f32 1e-05, %v2077_v1 }
 0x958   : > { %5081 = vrsqrt.f32 %v2078_v3  ;;  %vm2085_vm15 = vweird.f32 %v2078_v3 }
 0x95b   : > { %v2207_v2 = vpop.xlane.xlu0 %2206 }
 0x95c   : > { %v2208_v0 = vmul.f32 0.03125, %v2207_v2  ;;  %v2657_v2 = vmul.f32 %v2586_v55, %v2586_v55 }
 0x95e   : > { %v5082_v4 = vpop.eup %5081  ;;  %v2209_v5 = vperm.slane %v2208_v0, 0  ;;  %4743 = vmatmul.msk.f32.gmra.mxu3 %vm499_vm0, %v2657_v2 }
 0x95f   : > { %v2080_v7 = vmul.f32 %v5082_v4, %v2078_v3  ;;  %vm2086_vm9 = vweird.f32 %v5082_v4 }
 0x960   : > { %v5918_v60 = vsub.f32 %v2183_v57, %v2209_v5  ;;  %v5920_v13 = vsub.f32 %v2184_v51, %v2209_v5  ;;  %vm2087_vm3 = vmor %vm2085_vm15, %vm2086_vm9 }
 0x961   : > { %v2081_v63 = vmul.f32 %v5082_v4, %v2080_v7 }
 0x962   : > { %v2213_v17 = vmul.f32 %v5920_v13, %v5920_v13  ;;  %v2212_v40 = vmul.f32 %v5918_v60, %v5918_v60 }
 0x963   : > { %v2082_v6 = vmul.f32 0.5, %v2081_v63 }
 0x964   : > { %2228 = vmatpush.msra.mxu2 %v2213_v17 }
 0x965   : > { %v2083_v23 = vsub.f32 1.5, %v2082_v6 }
 0x966   : > { %2229 = vmatpush.msra.mxu2 %v2212_v40  ;;  %v4744_v40 = vld [vmem:[%s6570_s11 + $0x20] sm:$0xff] }
 0x967   : > { %v2084_v50 = vmul.f32 %v5082_v4, %v2083_v23  ;;  %4713 = vmatmul.msk.f32.vlgmr.msra.gmra.mxu2 %vm499_vm0, %v5156_v11  ;;  %v2822_v19 = vmul.f32 %v4744_v40, %v4744_v40 }
 0x968   : > { %2360 = vmatpush.msrb.mxu2 %v5928_v24 }
 0x969   : > { %v2088_v28 = vsel %vm2087_vm3, %v5082_v4, %v2084_v50  ;;  %4754 = vmatmul.msk.f32.vlgmr.msrb.gmra.mxu3 %vm499_vm0, %v2822_v19 }
 0x96a   : > { %v2089_v14 = vperm.slane %v2088_v28, 0  ;;  %2361 = vmatpush.msrb.mxu2 %v5933_v27 }
 0x96c   : > { %2521 = vmatpush.msra.mxu2 %v5937_v30  ;;  %v2090_v33 = vmul.f32 %v2089_v14, %v5892_v20  ;;  %v2091_v35 = vmul.f32 %v2089_v14, %v5895_v44 }
 0x96e   : > { %2522 = vmatpush.msra.mxu2 %v5940_v32  ;;  %2092 = vst.msk [vmem:[#allocation6] sm:$0xff] %vm565_vm2, %v2090_v33 }
 0x96f   : > { %2093 = vst.msk [vmem:[#allocation6 + $0x8] sm:$0xff] %vm565_vm2, %v2091_v35  ;;  %4722 = vmatmul.msk.f32.vlgmr.msrb.gmra.mxu2 %vm499_vm0, %v5156_v11 }
 0x975   : > { %v5958_v41 = vld [vmem:[#allocation6] sm:$0xff] }
 0x976   : > { %v5960_v34 = vld [vmem:[#allocation6 + $0x8] sm:$0xff]  ;;  %v2581_v43 = vmul.f32 %v5954_v36, %v5958_v41 }
 0x977   : > { %4732 = vmatmul.msk.f32.vlgmr.msra.gmra.mxu2 %vm499_vm0, %v5156_v11  ;;  %v2582_v20 = vmul.f32 %v5956_v38, %v5960_v34 }
 0x979   : > { %2647 = vmatpush.msra.mxu0 %v2582_v20  ;;  %v4956_v44 = vpack.i.bf16 %v2581_v43, %v2582_v20 }
 0x97b   : > { %4957 = vrot.lane.b32.xlu1 %v4956_v44, %s5157_s21  ;;  %2648 = vmatpush.msra.mxu0 %v2581_v43 }
 0x97c   : > { %4738 = vmatmul.msk.f32.vlgmr.msra.gmra.mxu0 %vm499_vm0, %v2585_v61 }
 0x97d   : > { %2813 = vmatpush.msrb.mxu0 %v2582_v20 }
 0x97f   : > { %2814 = vmatpush.msrb.mxu0 %v2581_v43 }
 0x984   : > { %4739 = vmatmul.msk.f32.gmra.mxu0 %vm499_vm0, %v2586_v55 }
 0x98c   : > { %4750 = vmatmul.msk.f32.vlgmr.msrb.gmra.mxu0 %vm499_vm0, %v4744_v40 }
 0x9ea   : > { %v2231_v48 = vpop.f32.mrf.mxu2 }
 0x9eb   : > { %v2234_v22 = vsel %vm2044_vm1, %v2231_v48, 0.0 }
 0x9ec   : > { %2235 = vadd.xlane.f32.xlu1 %v2234_v22  ;;  %v2658_v22 = vmul.f32 %v4734_v46, %v4734_v46 }
 0x9ed   : > { %v4958_v51 = vpop.permute.xlu1 %4957 }
 0x9ee   : > { %v4959_v31 = vunpack.i.l.bf16 %v4958_v51  ;;  %v4960_v45 = vunpack.i.h.bf16 %v4958_v51 }
 0x9f0   : > { %2618 = vmatpush.msrb.mxu2 %v4959_v31 }
 0x9f2   : > { %2619 = vmatpush.msrb.mxu2 %v4960_v45  ;;  %v2363_v54 = vpop.f32.mrf.mxu2 }
 0x9f3   : > { %v2366_v52 = vsel %vm2044_vm1, %v2363_v54, 0.0  ;;  %4736 = vmatmul.msk.f32.vlgmr.msrb.gmra.mxu2 %vm499_vm0, %v4734_v46  ;;  %v2659_v54 = vmul.f32 %v4735_v8, %v4735_v8 }
 0x9f4   : > { %2784 = vmatpush.msra.mxu2 %v4959_v31  ;;  %2367 = vadd.xlane.f32.xlu2 %v2366_v52  ;;  %v2824_v52 = vmul.f32 %v4746_v12, %v4746_v12 }
 0x9f6   : > { %2785 = vmatpush.msra.mxu2 %v4960_v45  ;;  %v6102_v45 = vld [vmem:[%s6571_s12 + $0x10] sm:$0xff] }
 0x9fa   : > { %v2524_v56 = vpop.f32.mrf.mxu2 }
 0x9fb   : > { %v2527_v57 = vsel %vm2044_vm1, %v2524_v56, 0.0  ;;  %4737 = vmatmul.msk.f32.gmra.mxu2 %vm499_vm0, %v4735_v8 }
 0x9fc   : > { %2528 = vadd.xlane.f32.xlu0 %v2527_v57 }
 0xa03   : > { %4748 = vmatmul.msk.f32.vlgmr.msra.gmra.mxu2 %vm499_vm0, %v4746_v12 }
 0xa0c   : > { %2910 = vrot.lane.b32.xlu2 %v6011_v53, %s5157_s21 }
 0xa10   : > { %4952 = vrot.lane.b32.xlu0 %v5986_v58, %s5157_s21 }
 0xa18   : > { %2912 = vrot.lane.b32.xlu0 %v5993_v39, %s5157_s21 }
 0xa20   : > { %2924 = vrot.lane.b32.xlu0 %v5960_v34, %s5157_s21 }
 0xa28   : > { %2922 = vrot.lane.b32.xlu0 %v5958_v41, %s5157_s21 }
 0xa30   : > { %4962 = vrot.lane.b32.xlu0 %v5986_v58, %s5157_s21 }
 0xa38   : > { %3388 = vrot.lane.b32.xlu0 %v6006_v59, %s5157_s21 }
 0xa5f   : > { %v2236_v49 = vpop.xlane.xlu1 %2235 }
 0xa60   : > { %v2237_v29 = vmul.f32 0.03125, %v2236_v49 }
 0xa62   : > { %v2238_v25 = vadd.f32 1e-05, %v2237_v29 }
 0xa64   : > { %5083 = vrsqrt.f32 %v2238_v25  ;;  %vm2245_vm5 = vweird.f32 %v2238_v25 }
 0xa67   : > { %v2368_v1 = vpop.xlane.xlu2 %2367 }
 0xa68   : > { %v2369_v3 = vmul.f32 0.03125, %v2368_v1 }
 0xa6a   : > { %v5084_v0 = vpop.eup %5083  ;;  %v2370_v4 = vperm.slane %v2369_v3, 0  ;;  %v2720_v3 = vpop.f32.mrf.mxu3 }
 0xa6b   : > { %v2240_v5 = vmul.f32 %v5084_v0, %v2238_v25  ;;  %vm2246_vm4 = vweird.f32 %v5084_v0 }
 0xa6c   : > { %v6032_v9 = vsub.f32 %v5933_v27, %v2370_v4  ;;  %v6035_v7 = vsub.f32 %v5928_v24, %v2370_v4  ;;  %vm2247_vm6 = vmor %vm2245_vm5, %vm2246_vm4 }
 0xa6d   : > { %v2241_v63 = vmul.f32 %v5084_v0, %v2240_v5 }
 0xa6e   : > { %v2374_v37 = vmul.f32 %v6035_v7, %v6035_v7  ;;  %v2373_v18 = vmul.f32 %v6032_v9, %v6032_v9 }
 0xa6f   : > { %v2242_v16 = vmul.f32 0.5, %v2241_v63  ;;  %v2529_v17 = vpop.xlane.xlu0 %2528  ;;  %v6113_v57 = vpop.permute.xlu2 %2910 }
 0xa70   : > { %v2530_v6 = vmul.f32 0.03125, %v2529_v17  ;;  %2389 = vmatpush.msrb.mxu1 %v2374_v37 }
 0xa71   : > { %v2243_v10 = vsub.f32 1.5, %v2242_v16  ;;  %v2650_v16 = vpop.f32.mrf.mxu0 }
 0xa72   : > { %v2531_v23 = vperm.slane %v2530_v6, 0  ;;  %2390 = vmatpush.msrb.mxu1 %v2373_v18 }
 0xa73   : > { %v2244_v24 = vmul.f32 %v5084_v0, %v2243_v10  ;;  %4723 = vmatmul.msk.f32.vlgmr.msrb.gmra.mxu1 %vm499_vm0, %v5156_v11 }
 0xa74   : > { %v6053_v15 = vsub.f32 %v5940_v32, %v2531_v23  ;;  %v6056_v21 = vsub.f32 %v5937_v30, %v2531_v23  ;;  %v4745_v30 = vld [vmem:[%s6570_s11 + $0x28] sm:$0xff] }
 0xa75   : > { %v2248_v26 = vsel %vm2247_vm6, %v5084_v0, %v2244_v24  ;;  %v2823_v33 = vmul.f32 %v4745_v30, %v4745_v30  ;;  %4751 = vmatmul.msk.f32.gmra.mxu0 %vm499_vm0, %v4745_v30  ;;  %v2723_v0 = vpop.f32.mrf.mxu3 }
 0xa76   : > { %v2249_v50 = vperm.slane %v2248_v26, 0  ;;  %v2535_v27 = vmul.f32 %v6056_v21, %v6056_v21  ;;  %v2534_v32 = vmul.f32 %v6053_v15, %v6053_v15  ;;  %v2621_v37 = vpop.f32.mrf.mxu2 }
 0xa77   : > { %4755 = vmatmul.msk.f32.gmra.mxu3 %vm499_vm0, %v2823_v33  ;;  %v2651_v33 = vadd.f32 %v2650_v16, %v2621_v37 }
 0xa78   : > { %v2250_v28 = vmul.f32 %v2249_v50, %v5918_v60  ;;  %v2251_v14 = vmul.f32 %v2249_v50, %v5920_v13  ;;  %2550 = vmatpush.msra.mxu1 %v2535_v27  ;;  %v4747_v60 = vld [vmem:[%s6570_s11 + $0x38] sm:$0xff] }
 0xa79   : > { %4749 = vmatmul.msk.f32.gmra.mxu2 %vm499_vm0, %v4747_v60  ;;  %v2825_v56 = vmul.f32 %v4747_v60, %v4747_v60 }
 0xa7a   : > { %2253 = vst.msk [vmem:[#allocation6 + $0x10] sm:$0xff] %vm565_vm2, %v2250_v28  ;;  %2551 = vmatpush.msra.mxu1 %v2534_v32 }
 0xa7b   : > { %2254 = vst.msk [vmem:[#allocation6 + $0x18] sm:$0xff] %vm565_vm2, %v2251_v14  ;;  %4733 = vmatmul.msk.f32.vlgmr.msra.gmra.mxu1 %vm499_vm0, %v5156_v11  ;;  %v2653_v14 = vpop.f32.mrf.mxu0 }
 0xa7d   : > { %v2878_v18 = vpop.f32.mrf.mxu3 }
 0xa7e   : > { %v2624_v28 = vpop.f32.mrf.mxu2 }
 0xa81   : > { %v6081_v13 = vld [vmem:[#allocation6 + $0x10] sm:$0xff] }
 0xa82   : > { %v4953_v35 = vpop.permute.xlu0 %4952  ;;  %v6083_v43 = vld [vmem:[#allocation6 + $0x18] sm:$0xff]  ;;  %v6087_v20 = vmul.f32 %v6081_v13, %v5954_v36 }
 0xa83   : > { %v4954_v44 = vunpack.i.l.bf16 %v4953_v35  ;;  %3400 = vrot.lane.b32.xlu0 %v6083_v43, %s5157_s21  ;;  %v6093_v48 = vmul.f32 %v6083_v43, %v5956_v38  ;;  %v4955_v51 = vunpack.i.h.bf16 %v4953_v35 }
 0xa85   : > { %2688 = vmatpush.msrb.mxu1 %v4954_v44  ;;  %v4966_v31 = vpack.i.bf16 %v6087_v20, %v6093_v48 }
 0xa87   : > { %4967 = vrot.lane.b32.xlu2 %v4966_v31, %s5157_s21  ;;  %2689 = vmatpush.msrb.mxu1 %v4955_v51 }
 0xa88   : > { %4740 = vmatmul.msk.f32.vlgmr.msrb.gmra.mxu1 %vm499_vm0, %v2658_v22 }
 0xa89   : > { %2846 = vmatpush.msra.mxu1 %v4954_v44 }
 0xa8b   : > { %2847 = vmatpush.msra.mxu1 %v4955_v51 }
 0xa8f   : > { %3386 = vrot.lane.b32.xlu2 %v6102_v45, %s5157_s21 }
 0xa90   : > { %4741 = vmatmul.msk.f32.gmra.mxu1 %vm499_vm0, %v2659_v54 }
 0xa97   : > { %3398 = vrot.lane.b32.xlu2 %v6081_v13, %s5157_s21 }
 0xa98   : > { %4752 = vmatmul.msk.f32.vlgmr.msra.gmra.mxu1 %vm499_vm0, %v2824_v52 }
 0xa9f   : > { %4972 = vrot.lane.b32.xlu2 %v5986_v58, %s5157_s21 }
 0xaa0   : > { %4753 = vmatmul.msk.f32.gmra.mxu1 %vm499_vm0, %v2825_v56  ;;  %v2654_v56 = vadd.f32 %v2653_v14, %v2624_v28 }
 0xae1   : > { %v4968_v61 = vpop.permute.xlu2 %4967 }
 0xae2   : > { %v4969_v62 = vunpack.i.l.bf16 %v4968_v61  ;;  %v4970_v49 = vunpack.i.h.bf16 %v4968_v61 }
 0xae4   : > { %3093 = vmatpush.msra.mxu3 %v4969_v62 }
 0xae6   : > { %3094 = vmatpush.msra.mxu3 %v4970_v49 }
 0xae8   : > { %3260 = vmatpush.msrb.mxu3 %v4969_v62 }
 0xaea   : > { %3261 = vmatpush.msrb.mxu3 %v4970_v49 }
 0xaf0   : > { %v2392_v29 = vpop.f32.mrf.mxu1 }
 0xaf1   : > { %v2395_v25 = vsel %vm2044_vm1, %v2392_v29, 0.0 }
 0xaf2   : > { %2396 = vadd.xlane.f32.xlu0 %v2395_v25  ;;  %v2787_v25 = vpop.f32.mrf.mxu2 }
 0xaf8   : > { %v2553_v1 = vpop.f32.mrf.mxu1 }
 0xaf9   : > { %v2556_v46 = vsel %vm2044_vm1, %v2553_v1, 0.0  ;;  %v2816_v1 = vpop.f32.mrf.mxu0 }
 0xafa   : > { %2557 = vadd.xlane.f32.xlu0 %v2556_v46  ;;  %v2881_v30 = vpop.f32.mrf.mxu3 }
 0xb05   : > { %v2691_v55 = vpop.f32.mrf.mxu1 }
 0xb06   : > { %v2721_v2 = vadd.f32 %v2720_v3, %v2691_v55 }
 0xb08   : > { %v2726_v4 = vadd.f32 1e-08, %v2721_v2 }
 0xb0a   : > { %5085 = vrsqrt.f32 %v2726_v4  ;;  %vm2734_vm8 = vweird.f32 %v2726_v4 }
 0xb0d   : > { %v2694_v5 = vpop.f32.mrf.mxu1 }
 0xb0e   : > { %v2724_v63 = vadd.f32 %v2723_v0, %v2694_v5  ;;  %v2913_v0 = vpop.permute.xlu0 %2912 }
 0xb10   : > { %v5086_v17 = vpop.eup %5085  ;;  %v2727_v8 = vadd.f32 1e-08, %v2724_v63 }
 0xb11   : > { %v2729_v6 = vmul.f32 %v5086_v17, %v2726_v4  ;;  %vm2735_vm7 = vweird.f32 %v5086_v17 }
 0xb12   : > { %5087 = vrsqrt.f32 %v2727_v8  ;;  %vm2736_vm10 = vmor %vm2734_vm8, %vm2735_vm7  ;;  %vm2744_vm12 = vweird.f32 %v2727_v8 }
 0xb13   : > { %v2730_v40 = vmul.f32 %v5086_v17, %v2729_v6 }
 0xb15   : > { %v2731_v10 = vmul.f32 0.5, %v2730_v40  ;;  %v2849_v19 = vpop.f32.mrf.mxu1 }
 0xb16   : > { %v2879_v23 = vadd.f32 %v2878_v18, %v2849_v19  ;;  %v2817_v18 = vadd.f32 %v2816_v1, %v2787_v25  ;;  %v2819_v19 = vpop.f32.mrf.mxu0 }
 0xb17   : > { %v2732_v24 = vsub.f32 1.5, %v2731_v10  ;;  %v2790_v10 = vpop.f32.mrf.mxu2 }
 0xb18   : > { %v5088_v26 = vpop.eup %5087  ;;  %v2884_v50 = vadd.f32 1e-08, %v2879_v23 }
 0xb19   : > { %v2739_v27 = vmul.f32 %v5088_v26, %v2727_v8  ;;  %v2733_v12 = vmul.f32 %v5086_v17, %v2732_v24  ;;  %vm2745_vm11 = vweird.f32 %v5088_v26  ;;  %v2820_v24 = vadd.f32 %v2819_v19, %v2790_v10  ;;  %v6188_v10 = vld [vmem:[%s6571_s12 + $0x20] sm:$0xff] }
 0xb1a   : > { %5089 = vrsqrt.f32 %v2884_v50  ;;  %vm2746_vm13 = vmor %vm2744_vm12, %vm2745_vm11  ;;  %vm2892_vm1 = vweird.f32 %v2884_v50 }
 0xb1b   : > { %v2740_v32 = vmul.f32 %v5088_v26, %v2739_v27  ;;  %v2737_v35 = vsel %vm2736_vm10, %v5086_v17, %v2733_v12 }
 0xb1c   : > { %v2748_v54 = vmul.f32 %v2737_v35, %v2651_v33 }
 0xb1d   : > { %v2741_v60 = vmul.f32 0.5, %v2740_v32  ;;  %v2852_v44 = vpop.f32.mrf.mxu1 }
 0xb1e   : > { %v2882_v22 = vadd.f32 %v2881_v30, %v2852_v44  ;;  %v2752_v46 = vadd.f32 %v6011_v53, %v2748_v54 }
 0xb1f   : > { %v2742_v51 = vsub.f32 1.5, %v2741_v60 }
 0xb20   : > { %v5090_v31 = vpop.eup %5089  ;;  %v2885_v52 = vadd.f32 1e-08, %v2882_v22  ;;  %v2754_v63 = vmax.f32 %v2752_v46, 0.0 }
 0xb21   : > { %v2887_v61 = vmul.f32 %v5090_v31, %v2884_v50  ;;  %v2743_v62 = vmul.f32 %v5088_v26, %v2742_v51  ;;  %vm2893_vm14 = vweird.f32 %v5090_v31 }
 0xb22   : > { %5091 = vrsqrt.f32 %v2885_v52  ;;  %vm2894_vm9 = vmor %vm2892_vm1, %vm2893_vm14  ;;  %v6124_v53 = vadd.f32 %v2754_v63, %v5958_v41  ;;  %vm2902_vm3 = vweird.f32 %v2885_v52  ;;  %vm3035_vm14 = vcmask 7168  }
 0xb23   : > { %v2888_v49 = vmul.f32 %v5090_v31, %v2887_v61  ;;  %v2747_v29 = vsel %vm2746_vm13, %v5088_v26, %v2743_v62  ;;  %v2925_v26 = vpop.permute.xlu0 %2924 }
 0xb24   : > { %v2749_v3 = vmul.f32 %v2747_v29, %v2654_v56 }
 0xb25   : > { %v2889_v55 = vmul.f32 0.5, %v2888_v49 }
 0xb26   : > { %v2753_v2 = vadd.f32 %v5993_v39, %v2749_v3 }
 0xb27   : > { %v2890_v4 = vsub.f32 1.5, %v2889_v55 }
 0xb28   : > { %v5092_v5 = vpop.eup %5091  ;;  %v2755_v37 = vmax.f32 %v2753_v2, 0.0 }
 0xb29   : > { %v2897_v16 = vmul.f32 %v5092_v5, %v2885_v52  ;;  %v2891_v17 = vmul.f32 %v5090_v31, %v2890_v4  ;;  %vm2903_vm15 = vweird.f32 %v5092_v5 }
 0xb2a   : > { %v6120_v8 = vadd.f32 %v2755_v37, %v5960_v34  ;;  %vm2904_vm4 = vmor %vm2902_vm3, %vm2903_vm15 }
 0xb2b   : > { %v2898_v6 = vmul.f32 %v5092_v5, %v2897_v16  ;;  %v2895_v40 = vsel %vm2894_vm9, %v5090_v31, %v2891_v17  ;;  %v2923_v33 = vpop.permute.xlu0 %2922  ;;  %v4840_v31 = vld [vmem:[%s6571_s12 + $0x30] sm:$0xff] }
 0xb2c   : > { %2964 = vmatpush.msra.mxu0 %v6120_v8  ;;  %v2906_v34 = vmul.f32 %v2895_v40, %v2817_v18 }
 0xb2d   : > { %v2899_v39 = vmul.f32 0.5, %v2898_v6 }
 0xb2e   : > { %2965 = vmatpush.msra.mxu0 %v6124_v53  ;;  %v2916_v27 = vadd.f32 %v6113_v57, %v2906_v34 }
 0xb2f   : > { %v2900_v23 = vsub.f32 1.5, %v2899_v39  ;;  %4757 = vmatmul.msk.f32.vlgmr.msra.gmra.mxu0 %vm499_vm0, %v5156_v11 }
 0xb30   : > { %3122 = vmatpush.msrb.mxu0 %v6093_v48  ;;  %v2918_v14 = vmax.f32 %v2916_v27, 0.0 }
 0xb31   : > { %v2901_v50 = vmul.f32 %v5092_v5, %v2900_v23 }
 0xb32   : > { %3123 = vmatpush.msrb.mxu0 %v6087_v20  ;;  %v6137_v60 = vadd.f32 %v2923_v33, %v2918_v14  ;;  %v4776_v33 = vld [vmem:[%s6570_s11 + $0x70] sm:$0xff] }
 0xb33   : > { %v2905_v41 = vsel %vm2904_vm4, %v5092_v5, %v2901_v50 }
 0xb34   : > { %3289 = vmatpush.msra.mxu0 %v6093_v48  ;;  %v2907_v12 = vmul.f32 %v2905_v41, %v2820_v24  ;;  %v6142_v48 = vpop.permute.xlu0 %4962  ;;  %v4763_v41 = vld [vmem:[%s6570_s11 + $0x58] sm:$0xff] }
 0xb36   : > { %3290 = vmatpush.msra.mxu0 %v6087_v20  ;;  %v2917_v28 = vadd.f32 %v2913_v0, %v2907_v12  ;;  %v6149_v20 = vld [vmem:[%s6571_s12 + $0x28] sm:$0xff] }
 0xb37   : > { %3863 = vrot.lane.b32.xlu1 %v6149_v20, %s5157_s21 }
 0xb38   : > { %v2919_v32 = vmax.f32 %v2917_v28, 0.0 }
 0xb3a   : > { %v6134_v30 = vadd.f32 %v2925_v26, %v2919_v32  ;;  %v4760_v26 = vld [vmem:[%s6570_s11 + $0x40] sm:$0xff] }
 0xb3b   : > { %4766 = vmatmul.msk.f32.vlgmr.msrb.gmra.mxu0 %vm499_vm0, %v4760_v26  ;;  %v4774_v32 = vld [vmem:[%s6570_s11 + $0x60] sm:$0xff] }
 0xb3c   : > { %2944 = vmatpush.msrb.mxu2 %v6134_v30  ;;  %v6144_v57 = vpop.permute.xlu0 %3388 }
 0xb3e   : > { %2945 = vmatpush.msrb.mxu2 %v6137_v60 }
 0xb3f   : > { %4756 = vmatmul.msk.f32.vlgmr.msrb.gmra.mxu2 %vm499_vm0, %v5156_v11  ;;  %4982 = vrot.lane.b32.xlu1 %v5986_v58, %s5157_s21 }
 0xb44   : > { %v6153_v35 = vpop.permute.xlu0 %3400 }
 0xb47   : > { %4336 = vrot.lane.b32.xlu1 %v4840_v31, %s5157_s21 }
 0xb65   : > { %v2397_v44 = vpop.xlane.xlu0 %2396 }
 0xb66   : > { %v2398_v22 = vmul.f32 0.03125, %v2397_v44 }
 0xb68   : > { %v2399_v51 = vadd.f32 1e-05, %v2398_v22 }
 0xb6a   : > { %5093 = vrsqrt.f32 %v2399_v51  ;;  %vm2406_vm6 = vweird.f32 %v2399_v51 }
 0xb6d   : > { %v2558_v54 = vpop.xlane.xlu0 %2557 }
 0xb6e   : > { %v2559_v52 = vmul.f32 0.03125, %v2558_v54 }
 0xb70   : > { %v5094_v56 = vpop.eup %5093  ;;  %v2560_v61 = vadd.f32 1e-05, %v2559_v52 }
 0xb71   : > { %v2401_v62 = vmul.f32 %v5094_v56, %v2399_v51  ;;  %vm2407_vm5 = vweird.f32 %v5094_v56 }
 0xb72   : > { %5095 = vrsqrt.f32 %v2560_v61  ;;  %vm2408_vm7 = vmor %vm2406_vm6, %vm2407_vm5  ;;  %vm2567_vm10 = vweird.f32 %v2560_v61 }
 0xb73   : > { %v2402_v49 = vmul.f32 %v5094_v56, %v2401_v62 }
 0xb75   : > { %v2403_v29 = vmul.f32 0.5, %v2402_v49 }
 0xb77   : > { %v2404_v25 = vsub.f32 1.5, %v2403_v29  ;;  %v3134_v29 = vmul.f32 %v4763_v41, %v4763_v41 }
 0xb78   : > { %v5096_v58 = vpop.eup %5095 }
 0xb79   : > { %v2405_v1 = vmul.f32 %v5094_v56, %v2404_v25  ;;  %v2562_v46 = vmul.f32 %v5096_v58, %v2560_v61  ;;  %vm2568_vm8 = vweird.f32 %v5096_v58  ;;  %v4777_v61 = vld [vmem:[%s6570_s11 + $0x78] sm:$0xff]  ;;  %v3298_v25 = vmul.f32 %v4774_v32, %v4774_v32 }
 0xb7a   : > { %vm2569_vm11 = vmor %vm2567_vm10, %vm2568_vm8 }
 0xb7b   : > { %v2409_v3 = vsel %vm2408_vm7, %v5094_v56, %v2405_v1  ;;  %v2563_v55 = vmul.f32 %v5096_v58, %v2562_v46  ;;  %v4775_v56 = vld [vmem:[%s6570_s11 + $0x68] sm:$0xff]  ;;  %v3301_v46 = vmul.f32 %v4777_v61, %v4777_v61 }
 0xb7c   : > { %v2410_v2 = vperm.slane %v2409_v3, 0  ;;  %v3299_v1 = vmul.f32 %v4775_v56, %v4775_v56 }
 0xb7d   : > { %v2564_v0 = vmul.f32 0.5, %v2563_v55 }
 0xb7e   : > { %v2411_v4 = vmul.f32 %v2410_v2, %v6032_v9  ;;  %v2412_v5 = vmul.f32 %v2410_v2, %v6035_v7 }
 0xb7f   : > { %v2565_v63 = vsub.f32 1.5, %v2564_v0 }
 0xb80   : > { %2414 = vst.msk [vmem:[#allocation6 + $0x20] sm:$0xff] %vm565_vm2, %v2411_v4 }
 0xb81   : > { %2415 = vst.msk [vmem:[#allocation6 + $0x28] sm:$0xff] %vm565_vm2, %v2412_v5  ;;  %v2566_v37 = vmul.f32 %v5096_v58, %v2565_v63 }
 0xb83   : > { %v2570_v16 = vsel %vm2569_vm11, %v5096_v58, %v2566_v37  ;;  %v3300_v58 = vmul.f32 %v4776_v33, %v4776_v33 }
 0xb84   : > { %v2571_v17 = vperm.slane %v2570_v16, 0 }
 0xb86   : > { %v2572_v6 = vmul.f32 %v2571_v17, %v6053_v15  ;;  %v2573_v18 = vmul.f32 %v2571_v17, %v6056_v21 }
 0xb87   : > { %v6167_v39 = vld [vmem:[#allocation6 + $0x20] sm:$0xff] }
 0xb88   : > { %2575 = vst.msk [vmem:[#allocation6 + $0x30] sm:$0xff] %vm565_vm2, %v2572_v6  ;;  %v6170_v9 = vld [vmem:[#allocation6 + $0x28] sm:$0xff]  ;;  %v6174_v7 = vmul.f32 %v6167_v39, %v5954_v36 }
 0xb89   : > { %2576 = vst.msk [vmem:[#allocation6 + $0x38] sm:$0xff] %vm565_vm2, %v2573_v18  ;;  %v6179_v40 = vmul.f32 %v6170_v9, %v5956_v38 }
 0xb8b   : > { %v4976_v15 = vpack.i.bf16 %v6174_v7, %v6179_v40 }
 0xb8d   : > { %4977 = vrot.lane.b32.xlu2 %v4976_v15, %s5157_s21 }
 0xb8f   : > { %v4001_v21 = vld [vmem:[#allocation6 + $0x30] sm:$0xff] }
 0xb90   : > { %4348 = vrot.lane.b32.xlu1 %v4001_v21, %s5157_s21  ;;  %v4002_v19 = vld [vmem:[#allocation6 + $0x38] sm:$0xff]  ;;  %v6197_v23 = vmul.f32 %v4001_v21, %v5954_v36  ;;  %v4762_v36 = vld [vmem:[%s6570_s11 + $0x50] sm:$0xff] }
 0xb91   : > { %v6200_v34 = vmul.f32 %v4002_v19, %v5956_v38  ;;  %4764 = vmatmul.msk.f32.vlgmr.msra.gmra.mxu3 %vm499_vm0, %v4762_v36  ;;  %v4761_v38 = vld [vmem:[%s6570_s11 + $0x48] sm:$0xff]  ;;  %v3133_v62 = vmul.f32 %v4762_v36, %v4762_v36 }
 0xb92   : > { %4767 = vmatmul.msk.f32.gmra.mxu0 %vm499_vm0, %v4761_v38  ;;  %v3132_v49 = vmul.f32 %v4761_v38, %v4761_v38 }
 0xb93   : > { %v4986_v24 = vpack.i.bf16 %v6197_v23, %v6200_v34 }
 0xb95   : > { %3861 = vrot.lane.b32.xlu2 %v6188_v10, %s5157_s21 }
 0xb99   : > { %4765 = vmatmul.msk.f32.gmra.mxu3 %vm499_vm0, %v4763_v41 }
 0xb9a   : > { %4780 = vmatmul.msk.f32.vlgmr.msra.gmra.mxu0 %vm499_vm0, %v4774_v32 }
 0xb9d   : > { %3875 = vrot.lane.b32.xlu2 %v6170_v9, %s5157_s21 }
 0xba1   : > { %4778 = vmatmul.msk.f32.vlgmr.msrb.gmra.mxu3 %vm499_vm0, %v4776_v33 }
 0xba2   : > { %4781 = vmatmul.msk.f32.gmra.mxu0 %vm499_vm0, %v4775_v56 }
 0xba5   : > { %3873 = vrot.lane.b32.xlu2 %v6167_v39, %s5157_s21 }
 0xba9   : > { %4779 = vmatmul.msk.f32.gmra.mxu3 %vm499_vm0, %v4777_v61 }
 0xbac   : > { %v2967_v50 = vpop.f32.mrf.mxu0 }
 0xbad   : > { %4987 = vrot.lane.b32.xlu2 %v4986_v24, %s5157_s21 }
 0xbb5   : > { %4350 = vrot.lane.b32.xlu2 %v4002_v19, %s5157_s21 }
 0xbb8   : > { %v3125_v36 = vpop.f32.mrf.mxu0 }
 0xbc2   : > { %v2947_v27 = vpop.f32.mrf.mxu2 }
 0xbc3   : > { %v2968_v12 = vadd.f32 %v2967_v50, %v2947_v27 }
 0xbc5   : > { %v2970_v28 = vmul.f32 0.03125, %v2968_v12 }
 0xbc7   : > { %v2971_v14 = vperm.slane %v2970_v28, 0 }
 0xbc9   : > { %v6230_v44 = vsub.f32 %v6134_v30, %v2971_v14  ;;  %v6233_v22 = vsub.f32 %v6120_v8, %v2971_v14  ;;  %v6236_v51 = vsub.f32 %v6137_v60, %v2971_v14  ;;  %v6239_v31 = vsub.f32 %v6124_v53, %v2971_v14 }
 0xbca   : > { %v4964_v30 = vunpack.i.l.bf16 %v6142_v48  ;;  %v4965_v53 = vunpack.i.h.bf16 %v6142_v48  ;;  %v3131_v48 = vmul.f32 %v4760_v26, %v4760_v26 }
 0xbcb   : > { %v2979_v54 = vmul.f32 %v6230_v44, %v6230_v44  ;;  %v2977_v52 = vmul.f32 %v6233_v22, %v6233_v22  ;;  %v2978_v8 = vmul.f32 %v6236_v51, %v6236_v51  ;;  %v2976_v60 = vmul.f32 %v6239_v31, %v6239_v31 }
 0xbcd   : > { %2994 = vmatpush.msrb.mxu1 %v2979_v54  ;;  %3014 = vmatpush.msra.mxu2 %v2977_v52 }
 0xbcf   : > { %2995 = vmatpush.msrb.mxu1 %v2978_v8  ;;  %3015 = vmatpush.msra.mxu2 %v2976_v60 }
 0xbd0   : > { %4759 = vmatmul.msk.f32.vlgmr.msra.gmra.mxu2 %vm499_vm0, %v5156_v11  ;;  %4758 = vmatmul.msk.f32.vlgmr.msrb.gmra.mxu1 %vm499_vm0, %v5156_v11 }
 0xbd1   : > { %3192 = vmatpush.msrb.mxu2 %v5971_v47  ;;  %3163 = vmatpush.msra.mxu1 %v4964_v30 }
 0xbd3   : > { %3193 = vmatpush.msrb.mxu2 %v5975_v42  ;;  %3164 = vmatpush.msra.mxu1 %v4965_v53 }
 0xbd5   : > { %3351 = vmatpush.msra.mxu2 %v5971_v47  ;;  %3322 = vmatpush.msrb.mxu1 %v4964_v30 }
 0xbd7   : > { %3352 = vmatpush.msra.mxu2 %v5975_v42  ;;  %3323 = vmatpush.msrb.mxu1 %v4965_v53 }
 0xbd8   : > { %4770 = vmatmul.msk.f32.vlgmr.msrb.gmra.mxu2 %vm499_vm0, %v3131_v48  ;;  %4768 = vmatmul.msk.f32.vlgmr.msra.gmra.mxu1 %vm499_vm0, %v3133_v62 }
 0xbe0   : > { %4771 = vmatmul.msk.f32.gmra.mxu2 %vm499_vm0, %v3132_v49  ;;  %4769 = vmatmul.msk.f32.gmra.mxu1 %vm499_vm0, %v3134_v29 }
 0xbe8   : > { %4784 = vmatmul.msk.f32.vlgmr.msra.gmra.mxu2 %vm499_vm0, %v3298_v25  ;;  %4782 = vmatmul.msk.f32.vlgmr.msrb.gmra.mxu1 %vm499_vm0, %v3300_v58 }
 0xbf0   : > { %4785 = vmatmul.msk.f32.gmra.mxu2 %vm499_vm0, %v3299_v1  ;;  %4783 = vmatmul.msk.f32.gmra.mxu1 %vm499_vm0, %v3301_v46 }
 0xc0f   : > { %v3128_v25 = vpop.f32.mrf.mxu0 }
 0xc14   : > { %v3096_v26 = vpop.f32.mrf.mxu3 }
 0xc1c   : > { %v3099_v29 = vpop.f32.mrf.mxu3 }
 0xc4d   : > { %v2997_v3 = vpop.f32.mrf.mxu1 }
 0xc53   : > { %v3017_v55 = vpop.f32.mrf.mxu2 }
 0xc54   : > { %v3018_v2 = vadd.f32 %v3017_v55, %v2997_v3  ;;  %v3387_v55 = vpop.permute.xlu2 %3386 }
 0xc55   : > { %v3166_v0 = vpop.f32.mrf.mxu1 }
 0xc56   : > { %v3020_v4 = vmul.f32 0.03125, %v3018_v2 }
 0xc58   : > { %v3021_v5 = vadd.f32 1e-05, %v3020_v4 }
 0xc5a   : > { %5097 = vrsqrt.f32 %v3021_v5  ;;  %vm3028_vm12 = vweird.f32 %v3021_v5 }
 0xc5b   : > { %v3195_v63 = vpop.f32.mrf.mxu2 }
 0xc5c   : > { %v3196_v37 = vadd.f32 %v3195_v63, %v3166_v0  ;;  %v3129_v63 = vadd.f32 %v3128_v25, %v3099_v29 }
 0xc5d   : > { %v3169_v16 = vpop.f32.mrf.mxu1 }
 0xc5e   : > { %v3201_v17 = vadd.f32 1e-08, %v3196_v37 }
 0xc60   : > { %v5098_v6 = vpop.eup %5097  ;;  %5099 = vrsqrt.f32 %v3201_v17  ;;  %vm3209_vm9 = vweird.f32 %v3201_v17 }
 0xc61   : > { %v3023_v18 = vmul.f32 %v5098_v6, %v3021_v5  ;;  %vm3029_vm2 = vweird.f32 %v5098_v6 }
 0xc62   : > { %vm3030_vm13 = vmor %vm3028_vm12, %vm3029_vm2  ;;  %vm3048_vm12 = vcmask 15368  }
 0xc63   : > { %v3024_v15 = vmul.f32 %v5098_v6, %v3023_v18  ;;  %v3198_v21 = vpop.f32.mrf.mxu2  ;;  %v3263_v18 = vpop.f32.mrf.mxu3 }
 0xc64   : > { %v3199_v19 = vadd.f32 %v3198_v21, %v3169_v16 }
 0xc65   : > { %v3025_v24 = vmul.f32 0.5, %v3024_v15  ;;  %v3325_v12 = vpop.f32.mrf.mxu1  ;;  %v3292_v15 = vpop.f32.mrf.mxu0 }
 0xc66   : > { %v5100_v38 = vpop.eup %5099  ;;  %v3202_v50 = vadd.f32 1e-08, %v3199_v19 }
 0xc67   : > { %v3026_v41 = vsub.f32 1.5, %v3025_v24  ;;  %v3204_v27 = vmul.f32 %v5100_v38, %v3201_v17  ;;  %vm3210_vm1 = vweird.f32 %v5100_v38 }
 0xc68   : > { %5101 = vrsqrt.f32 %v3202_v50  ;;  %vm3211_vm15 = vmor %vm3209_vm9, %vm3210_vm1  ;;  %vm3219_vm4 = vweird.f32 %v3202_v50 }
 0xc69   : > { %v3027_v28 = vmul.f32 %v5098_v6, %v3026_v41  ;;  %v3205_v14 = vmul.f32 %v5100_v38, %v3204_v27  ;;  %v3399_v41 = vpop.permute.xlu2 %3398 }
 0xc6b   : > { %v3031_v32 = vsel %vm3030_vm13, %v5098_v6, %v3027_v28  ;;  %v3206_v33 = vmul.f32 0.5, %v3205_v14  ;;  %v3354_v54 = vpop.f32.mrf.mxu2 }
 0xc6c   : > { %v3032_v52 = vperm.slane %v3031_v32, 0  ;;  %v3355_v30 = vadd.f32 %v3354_v54, %v3325_v12 }
 0xc6d   : > { %v3207_v8 = vsub.f32 1.5, %v3206_v33  ;;  %v3293_v33 = vadd.f32 %v3292_v15, %v3263_v18  ;;  %v4808_v18 = vld [vmem:[%s6570_s11 + $0xa0] sm:$0xff] }
 0xc6e   : > { %v5102_v60 = vpop.eup %5101  ;;  %v3360_v53 = vadd.f32 1e-08, %v3355_v30  ;;  %v3039_v56 = vmul.f32 %v3032_v52, %v6230_v44  ;;  %v3038_v61 = vmul.f32 %v3032_v52, %v6236_v51  ;;  %v3033_v48 = vmul.f32 %v3032_v52, %v6239_v31  ;;  %v3328_v51 = vpop.f32.mrf.mxu1 }
 0xc6f   : > { %v3214_v62 = vmul.f32 %v5102_v60, %v3202_v50  ;;  %v3208_v49 = vmul.f32 %v5100_v38, %v3207_v8  ;;  %v3034_v58 = vmul.f32 %v3032_v52, %v6233_v22  ;;  %v3126_v31 = vadd.f32 %v3125_v36, %v3096_v26  ;;  %v3266_v52 = vpop.f32.mrf.mxu3  ;;  %v3295_v30 = vpop.f32.mrf.mxu0 }
 0xc70   : > { %5103 = vrsqrt.f32 %v3360_v53  ;;  %3044 = vrot.lane.b32.xlu1 %v3039_v56, %s5158_s26  ;;  %3042 = vrot.lane.b32.xlu2 %v3038_v61, %s5158_s26  ;;  %3036 = vst.msk [vmem:[%s6281_s30] sm:$0xff] %vm3035_vm14, %v3033_v48  ;;  %vm3220_vm3 = vweird.f32 %v5102_v60  ;;  %vm3368_vm7 = vweird.f32 %v3360_v53 }
 0xc71   : > { %v3215_v44 = vmul.f32 %v5102_v60, %v3214_v62  ;;  %3037 = vst.msk [vmem:[%s6281_s30 + $0x8] sm:$0xff] %vm3035_vm14, %v3034_v58  ;;  %v3212_v46 = vsel %vm3211_vm15, %v5100_v38, %v3208_v49  ;;  %vm3221_vm5 = vmor %vm3219_vm4, %vm3220_vm3 }
 0xc72   : > { %v3223_v4 = vmul.f32 %v3212_v46, %v3126_v31 }
 0xc73   : > { %v3216_v1 = vmul.f32 0.5, %v3215_v44  ;;  %v3357_v3 = vpop.f32.mrf.mxu2 }
 0xc74   : > { %v3358_v22 = vadd.f32 %v3357_v3, %v3328_v51  ;;  %v3228_v21 = vadd.f32 %v6102_v45, %v3223_v4  ;;  %v4794_v4 = vld [vmem:[%s6570_s11 + $0x80] sm:$0xff] }
 0xc75   : > { %v3217_v2 = vsub.f32 1.5, %v3216_v1  ;;  %v6323_v1 = vpop.permute.xlu1 %3863 }
 0xc76   : > { %v5104_v0 = vpop.eup %5103  ;;  %v3361_v5 = vadd.f32 1e-08, %v3358_v22  ;;  %v3230_v27 = vmax.f32 %v3228_v21, 0.0 }
 0xc77   : > { %v3363_v37 = vmul.f32 %v5104_v0, %v3360_v53  ;;  %v3218_v16 = vmul.f32 %v5102_v60, %v3217_v2  ;;  %vm3369_vm6 = vweird.f32 %v5104_v0  ;;  %v3296_v53 = vadd.f32 %v3295_v30, %v3266_v52 }
 0xc78   : > { %5105 = vrsqrt.f32 %v3361_v5  ;;  %vm3370_vm8 = vmor %vm3368_vm7, %vm3369_vm6  ;;  %v6300_v45 = vadd.f32 %v3230_v27, %v6081_v13  ;;  %vm3378_vm11 = vweird.f32 %v3361_v5  ;;  %v3773_v30 = vmul.f32 %v4808_v18, %v4808_v18 }
 0xc79   : > { %v3364_v17 = vmul.f32 %v5104_v0, %v3363_v37  ;;  %v3222_v6 = vsel %vm3221_vm5, %v5102_v60, %v3218_v16  ;;  %v4797_v16 = vld [vmem:[%s6570_s11 + $0x98] sm:$0xff] }
 0xc7a   : > { %v3224_v19 = vmul.f32 %v3222_v6, %v3129_v63  ;;  %v4795_v63 = vld [vmem:[%s6570_s11 + $0x88] sm:$0xff]  ;;  %v3609_v52 = vmul.f32 %v4797_v16, %v4797_v16 }
 0xc7b   : > { %v3365_v24 = vmul.f32 0.5, %v3364_v17 }
 0xc7c   : > { %v3229_v26 = vadd.f32 %v6006_v59, %v3224_v19  ;;  %v4810_v19 = vld [vmem:[%s6570_s11 + $0xb0] sm:$0xff] }
 0xc7d   : > { %v3366_v36 = vsub.f32 1.5, %v3365_v24  ;;  %v6327_v3 = vpop.permute.xlu1 %4982 }
 0xc7e   : > { %v5106_v38 = vpop.eup %5105  ;;  %v3231_v12 = vmax.f32 %v3229_v26, 0.0 }
 0xc7f   : > { %v3373_v50 = vmul.f32 %v5106_v38, %v3361_v5  ;;  %v3367_v28 = vmul.f32 %v5104_v0, %v3366_v36  ;;  %vm3379_vm10 = vweird.f32 %v5106_v38  ;;  %v4796_v5 = vld [vmem:[%s6570_s11 + $0x90] sm:$0xff] }
 0xc80   : > { %v6296_v14 = vadd.f32 %v3231_v12, %v6083_v43  ;;  %v6304_v43 = vpop.permute.xlu2 %4972  ;;  %vm3380_vm2 = vmor %vm3378_vm11, %vm3379_vm10  ;;  %v4809_v12 = vld [vmem:[%s6570_s11 + $0xa8] sm:$0xff] }
 0xc81   : > { %v3374_v32 = vmul.f32 %v5106_v38, %v3373_v50  ;;  %v3371_v54 = vsel %vm3370_vm8, %v5104_v0, %v3367_v28  ;;  %v4974_v50 = vunpack.i.l.bf16 %v6304_v43 }
 0xc82   : > { %3440 = vmatpush.msrb.mxu0 %v6296_v14  ;;  %v3382_v60 = vmul.f32 %v3371_v54, %v3293_v33  ;;  %v4811_v33 = vld [vmem:[%s6570_s11 + $0xb8] sm:$0xff]  ;;  %v3607_v54 = vmul.f32 %v4795_v63, %v4795_v63 }
 0xc83   : > { %v3375_v59 = vmul.f32 0.5, %v3374_v32  ;;  %v4975_v32 = vunpack.i.h.bf16 %v6304_v43  ;;  %v3774_v43 = vmul.f32 %v4809_v12, %v4809_v12 }
 0xc84   : > { %3441 = vmatpush.msrb.mxu0 %v6300_v45  ;;  %v3392_v61 = vadd.f32 %v3387_v55, %v3382_v60  ;;  %v3776_v60 = vmul.f32 %v4811_v33, %v4811_v33 }
 0xc85   : > { %v3376_v8 = vsub.f32 1.5, %v3375_v59  ;;  %4787 = vmatmul.msk.f32.vlgmr.msrb.gmra.mxu0 %vm499_vm0, %v5156_v11  ;;  %v6331_v22 = vpop.permute.xlu1 %4336  ;;  %v3608_v59 = vmul.f32 %v4796_v5, %v4796_v5 }
 0xc86   : > { %3597 = vmatpush.msra.mxu0 %v6179_v40  ;;  %v3394_v49 = vmax.f32 %v3392_v61, 0.0 }
 0xc87   : > { %v3377_v13 = vmul.f32 %v5106_v38, %v3376_v8  ;;  %v3775_v8 = vmul.f32 %v4810_v19, %v4810_v19 }
 0xc88   : > { %3598 = vmatpush.msra.mxu0 %v6174_v7  ;;  %v4978_v25 = vpop.permute.xlu2 %4977  ;;  %v3404_v44 = vadd.f32 %v3399_v41, %v3394_v49 }
 0xc89   : > { %v3381_v56 = vsel %vm3380_vm2, %v5106_v38, %v3377_v13  ;;  %v4979_v51 = vunpack.i.l.bf16 %v4978_v25 }
 0xc8a   : > { %3764 = vmatpush.msrb.mxu0 %v6179_v40  ;;  %v3383_v48 = vmul.f32 %v3381_v56, %v3296_v53  ;;  %v4980_v40 = vunpack.i.h.bf16 %v4978_v25  ;;  %v6408_v53 = vld [vmem:[%s6571_s12 + $0x38] sm:$0xff] }
 0xc8b   : > { %4338 = vrot.lane.b32.xlu0 %v6408_v53, %s5157_s21 }
 0xc8c   : > { %3765 = vmatpush.msrb.mxu0 %v6174_v7  ;;  %v3393_v62 = vadd.f32 %v6144_v57, %v3383_v48 }
 0xc8d   : > { %v6333_v2 = vpop.permute.xlu1 %4348  ;;  %4800 = vmatmul.msk.f32.vlgmr.msra.gmra.mxu0 %vm499_vm0, %v4794_v4 }
 0xc8e   : > { %v3395_v29 = vmax.f32 %v3393_v62, 0.0 }
 0xc90   : > { %v3405_v58 = vadd.f32 %v6153_v35, %v3395_v29  ;;  %v6315_v7 = vpop.permute.xlu2 %3861 }
 0xc92   : > { %3420 = vmatpush.msra.mxu3 %v3405_v58 }
 0xc94   : > { %3421 = vmatpush.msra.mxu3 %v3404_v44 }
 0xc95   : > { %4786 = vmatmul.msk.f32.vlgmr.msra.gmra.mxu3 %vm499_vm0, %v5156_v11  ;;  %4801 = vmatmul.msk.f32.gmra.mxu0 %vm499_vm0, %v4795_v63 }
 0xc96   : > { %3568 = vmatpush.msrb.mxu3 %v4979_v51 }
 0xc98   : > { %3569 = vmatpush.msrb.mxu3 %v4980_v40  ;;  %v6317_v57 = vpop.permute.xlu2 %3875 }
 0xc9a   : > { %3735 = vmatpush.msra.mxu3 %v4979_v51 }
 0xc9c   : > { %3736 = vmatpush.msra.mxu3 %v4980_v40 }
 0xc9d   : > { %4798 = vmatmul.msk.f32.vlgmr.msrb.gmra.mxu3 %vm499_vm0, %v4796_v5  ;;  %4814 = vmatmul.msk.f32.vlgmr.msrb.gmra.mxu0 %vm499_vm0, %v4808_v18 }
 0xca0   : > { %v6319_v31 = vpop.permute.xlu2 %3873 }
 0xca5   : > { %4799 = vmatmul.msk.f32.gmra.mxu3 %vm499_vm0, %v4797_v16  ;;  %4815 = vmatmul.msk.f32.gmra.mxu0 %vm499_vm0, %v4809_v12 }
 0xca8   : > { %v6321_v35 = vpop.permute.xlu2 %4987 }
 0xcad   : > { %4812 = vmatmul.msk.f32.vlgmr.msra.gmra.mxu3 %vm499_vm0, %v4810_v19 }
 0xcb0   : > { %v6325_v46 = vpop.permute.xlu2 %4350 }
 0xcb5   : > { %4813 = vmatmul.msk.f32.gmra.mxu3 %vm499_vm0, %v4811_v33 }
 0xcca   : > { %v3043_v55 = vpop.permute.xlu2 %3042 }
 0xccb   : > { %3049 = vst.msk [vmem:[%s6281_s30] sm:$0xff] %vm3048_vm12, %v3043_v55 }
 0xce2   : > { %v3045_v0 = vpop.permute.xlu1 %3044 }
 0xce3   : > { %3050 = vst.msk [vmem:[%s6281_s30 + $0x8] sm:$0xff] %vm3048_vm12, %v3045_v0 }
 0xd02   : > { %v3443_v37 = vpop.f32.mrf.mxu0 }
 0xd18   : > { %v3423_v17 = vpop.f32.mrf.mxu3 }
 0xd19   : > { %v3444_v6 = vadd.f32 %v3443_v37, %v3423_v17  ;;  %v3600_v37 = vpop.f32.mrf.mxu0 }
 0xd1b   : > { %v3446_v15 = vmul.f32 0.03125, %v3444_v6 }
 0xd1d   : > { %v3447_v21 = vperm.slane %v3446_v15, 0 }
 0xd1f   : > { %v6360_v24 = vsub.f32 %v3405_v58, %v3447_v21  ;;  %v6363_v26 = vsub.f32 %v6296_v14, %v3447_v21  ;;  %v6365_v36 = vsub.f32 %v3404_v44, %v3447_v21  ;;  %v6368_v38 = vsub.f32 %v6300_v45, %v3447_v21 }
 0xd20   : > { %v3606_v45 = vmul.f32 %v4794_v4, %v4794_v4  ;;  %v3571_v63 = vpop.f32.mrf.mxu3 }
 0xd21   : > { %v3455_v41 = vmul.f32 %v6360_v24, %v6360_v24  ;;  %v3453_v27 = vmul.f32 %v6363_v26, %v6363_v26  ;;  %v3454_v28 = vmul.f32 %v6365_v36, %v6365_v36  ;;  %v3452_v14 = vmul.f32 %v6368_v38, %v6368_v38 }
 0xd23   : > { %3470 = vmatpush.msra.mxu1 %v3455_v41  ;;  %3490 = vmatpush.msrb.mxu2 %v3453_v27 }
 0xd25   : > { %3471 = vmatpush.msra.mxu1 %v3454_v28  ;;  %3491 = vmatpush.msrb.mxu2 %v3452_v14 }
 0xd26   : > { %4789 = vmatmul.msk.f32.vlgmr.msrb.gmra.mxu2 %vm499_vm0, %v5156_v11  ;;  %4788 = vmatmul.msk.f32.vlgmr.msra.gmra.mxu1 %vm499_vm0, %v5156_v11 }
 0xd27   : > { %3667 = vmatpush.msra.mxu2 %v5971_v47  ;;  %3638 = vmatpush.msrb.mxu1 %v4974_v50 }
 0xd29   : > { %3668 = vmatpush.msra.mxu2 %v5975_v42  ;;  %3639 = vmatpush.msrb.mxu1 %v4975_v32 }
 0xd2b   : > { %3826 = vmatpush.msrb.mxu2 %v5971_v47  ;;  %3797 = vmatpush.msra.mxu1 %v4974_v50 }
 0xd2d   : > { %3827 = vmatpush.msrb.mxu2 %v5975_v42  ;;  %3798 = vmatpush.msra.mxu1 %v4975_v32 }
 0xd2e   : > { %4804 = vmatmul.msk.f32.vlgmr.msra.gmra.mxu2 %vm499_vm0, %v3606_v45  ;;  %4802 = vmatmul.msk.f32.vlgmr.msrb.gmra.mxu1 %vm499_vm0, %v3608_v59 }
 0xd36   : > { %4805 = vmatmul.msk.f32.gmra.mxu2 %vm499_vm0, %v3607_v54  ;;  %4803 = vmatmul.msk.f32.gmra.mxu1 %vm499_vm0, %v3609_v52 }
 0xd3e   : > { %4818 = vmatmul.msk.f32.vlgmr.msrb.gmra.mxu2 %vm499_vm0, %v3773_v30  ;;  %4816 = vmatmul.msk.f32.vlgmr.msra.gmra.mxu1 %vm499_vm0, %v3775_v8  ;;  %v3574_v8 = vpop.f32.mrf.mxu3 }
 0xd46   : > { %4819 = vmatmul.msk.f32.gmra.mxu2 %vm499_vm0, %v3774_v43  ;;  %4817 = vmatmul.msk.f32.gmra.mxu1 %vm499_vm0, %v3776_v60  ;;  %v3603_v43 = vpop.f32.mrf.mxu0 }
 0xda3   : > { %v3473_v13 = vpop.f32.mrf.mxu1 }
 0xda9   : > { %v3493_v56 = vpop.f32.mrf.mxu2 }
 0xdaa   : > { %v3494_v61 = vadd.f32 %v3493_v56, %v3473_v13 }
 0xdab   : > { %v3641_v48 = vpop.f32.mrf.mxu1 }
 0xdac   : > { %v3496_v62 = vmul.f32 0.03125, %v3494_v61 }
 0xdae   : > { %v3497_v49 = vadd.f32 1e-05, %v3496_v62 }
 0xdb0   : > { %5107 = vrsqrt.f32 %v3497_v49  ;;  %vm3504_vm1 = vweird.f32 %v3497_v49 }
 0xdb1   : > { %v3670_v29 = vpop.f32.mrf.mxu2 }
 0xdb2   : > { %v3671_v25 = vadd.f32 %v3670_v29, %v3641_v48 }
 0xdb3   : > { %v3644_v58 = vpop.f32.mrf.mxu1 }
 0xdb4   : > { %v3676_v44 = vadd.f32 1e-08, %v3671_v25  ;;  %v3604_v25 = vadd.f32 %v3603_v43, %v3574_v8 }
 0xdb6   : > { %v5108_v51 = vpop.eup %5107  ;;  %5109 = vrsqrt.f32 %v3676_v44  ;;  %vm3684_vm3 = vweird.f32 %v3676_v44 }
 0xdb7   : > { %v3499_v40 = vmul.f32 %v5108_v51, %v3497_v49  ;;  %vm3505_vm13 = vweird.f32 %v5108_v51 }
 0xdb8   : > { %vm3506_vm9 = vmor %vm3504_vm1, %vm3505_vm13 }
 0xdb9   : > { %v3500_v55 = vmul.f32 %v5108_v51, %v3499_v40  ;;  %v3673_v0 = vpop.f32.mrf.mxu2 }
 0xdba   : > { %v3674_v4 = vadd.f32 %v3673_v0, %v3644_v58  ;;  %v3767_v0 = vpop.f32.mrf.mxu0 }
 0xdbb   : > { %v3501_v5 = vmul.f32 0.5, %v3500_v55  ;;  %v3800_v15 = vpop.f32.mrf.mxu1  ;;  %v3738_v55 = vpop.f32.mrf.mxu3 }
 0xdbc   : > { %v5110_v16 = vpop.eup %5109  ;;  %v3677_v17 = vadd.f32 1e-08, %v3674_v4 }
 0xdbd   : > { %v3502_v6 = vsub.f32 1.5, %v3501_v5  ;;  %v3679_v18 = vmul.f32 %v5110_v16, %v3676_v44  ;;  %vm3685_vm15 = vweird.f32 %v5110_v16 }
 0xdbe   : > { %5111 = vrsqrt.f32 %v3677_v17  ;;  %vm3686_vm4 = vmor %vm3684_vm3, %vm3685_vm15  ;;  %vm3694_vm6 = vweird.f32 %v3677_v17 }
 0xdbf   : > { %v3503_v21 = vmul.f32 %v5108_v51, %v3502_v6  ;;  %v3680_v19 = vmul.f32 %v5110_v16, %v3679_v18 }
 0xdc1   : > { %v3507_v41 = vsel %vm3506_vm9, %v5108_v51, %v3503_v21  ;;  %v3681_v27 = vmul.f32 0.5, %v3680_v19  ;;  %v3829_v12 = vpop.f32.mrf.mxu2 }
 0xdc2   : > { %v3508_v50 = vperm.slane %v3507_v41, 0  ;;  %v3830_v28 = vadd.f32 %v3829_v12, %v3800_v15 }
 0xdc3   : > { %v3682_v14 = vsub.f32 1.5, %v3681_v27  ;;  %v3803_v13 = vpop.f32.mrf.mxu1  ;;  %v3768_v27 = vadd.f32 %v3767_v0, %v3738_v55 }
 0xdc4   : > { %v5112_v32 = vpop.eup %5111  ;;  %v3835_v33 = vadd.f32 1e-08, %v3830_v28  ;;  %v3515_v45 = vmul.f32 %v3508_v50, %v6360_v24  ;;  %v3514_v59 = vmul.f32 %v3508_v50, %v6365_v36  ;;  %v3509_v54 = vmul.f32 %v3508_v50, %v6368_v38  ;;  %v3770_v28 = vpop.f32.mrf.mxu0 }
 0xdc5   : > { %v3689_v52 = vmul.f32 %v5112_v32, %v3677_v17  ;;  %v3683_v30 = vmul.f32 %v5110_v16, %v3682_v14  ;;  %v3510_v60 = vmul.f32 %v3508_v50, %v6363_v26  ;;  %v3601_v36 = vadd.f32 %v3600_v37, %v3571_v63  ;;  %v3741_v50 = vpop.f32.mrf.mxu3 }
 0xdc6   : > { %5113 = vrsqrt.f32 %v3835_v33  ;;  %3520 = vrot.lane.b32.xlu0 %v3515_v45, %s5158_s26  ;;  %3518 = vrot.lane.b32.xlu2 %v3514_v59, %s5158_s26  ;;  %4790 = vst.msk [vmem:[%s6281_s30 + $0x10] sm:$0xff] %vm3035_vm14, %v3509_v54  ;;  %vm3695_vm5 = vweird.f32 %v5112_v32  ;;  %vm3843_vm10 = vweird.f32 %v3835_v33 }
 0xdc7   : > { %v3690_v24 = vmul.f32 %v5112_v32, %v3689_v52  ;;  %4791 = vst.msk [vmem:[%s6281_s30 + $0x18] sm:$0xff] %vm3035_vm14, %v3510_v60  ;;  %v3687_v56 = vsel %vm3686_vm4, %v5110_v16, %v3683_v30  ;;  %vm3696_vm7 = vmor %vm3694_vm6, %vm3695_vm5  ;;  %v4989_v60 = vunpack.i.l.bf16 %v6321_v35 }
 0xdc8   : > { %v3698_v49 = vmul.f32 %v3687_v56, %v3601_v36  ;;  %v4842_v56 = vld [vmem:[%s6570_s11 + $0xe0] sm:$0xff] }
 0xdc9   : > { %v3691_v38 = vmul.f32 0.5, %v3690_v24  ;;  %v3832_v61 = vpop.f32.mrf.mxu2 }
 0xdca   : > { %v3833_v48 = vadd.f32 %v3832_v61, %v3803_v13  ;;  %v3703_v4 = vadd.f32 %v6188_v10, %v3698_v49  ;;  %v4831_v13 = vld [vmem:[%s6570_s11 + $0xd8] sm:$0xff] }
 0xdcb   : > { %v3692_v62 = vsub.f32 1.5, %v3691_v38 }
 0xdcc   : > { %v5114_v26 = vpop.eup %5113  ;;  %v3836_v29 = vadd.f32 1e-08, %v3833_v48  ;;  %v3705_v18 = vmax.f32 %v3703_v4, 0.0  ;;  %v4985_v4 = vunpack.i.h.bf16 %v6327_v3 }
 0xdcd   : > { %v3838_v58 = vmul.f32 %v5114_v26, %v3835_v33  ;;  %v3693_v51 = vmul.f32 %v5112_v32, %v3692_v62  ;;  %vm3844_vm8 = vweird.f32 %v5114_v26  ;;  %v4844_v62 = vld [vmem:[%s6570_s11 + $0xf0] sm:$0xff] }
 0xdce   : > { %5115 = vrsqrt.f32 %v3836_v29  ;;  %vm3845_vm11 = vmor %vm3843_vm10, %vm3844_vm8  ;;  %v3707_v10 = vadd.f32 %v3705_v18, %v6167_v39  ;;  %vm3853_vm13 = vweird.f32 %v3836_v29  ;;  %v4250_v18 = vmul.f32 %v4844_v62, %v4844_v62 }
 0xdcf   : > { %v3839_v44 = vmul.f32 %v5114_v26, %v3838_v58  ;;  %v3697_v40 = vsel %vm3696_vm7, %v5112_v32, %v3693_v51 }
 0xdd0   : > { %v3699_v5 = vmul.f32 %v3697_v40, %v3604_v25  ;;  %v4984_v40 = vunpack.i.l.bf16 %v6327_v3 }
 0xdd1   : > { %v3840_v63 = vmul.f32 0.5, %v3839_v44  ;;  %v4843_v44 = vld [vmem:[%s6570_s11 + $0xe8] sm:$0xff] }
 0xdd2   : > { %v3704_v37 = vadd.f32 %v6149_v20, %v3699_v5  ;;  %v4845_v5 = vld [vmem:[%s6570_s11 + $0xf8] sm:$0xff] }
 0xdd3   : > { %v3841_v16 = vsub.f32 1.5, %v3840_v63 }
 0xdd4   : > { %v5116_v6 = vpop.eup %5115  ;;  %v3706_v15 = vmax.f32 %v3704_v37, 0.0 }
 0xdd5   : > { %v3848_v21 = vmul.f32 %v5116_v6, %v3836_v29  ;;  %v3842_v17 = vmul.f32 %v5114_v26, %v3841_v16  ;;  %vm3854_vm2 = vweird.f32 %v5116_v6  ;;  %v4084_v16 = vmul.f32 %v4831_v13, %v4831_v13 }
 0xdd6   : > { %v6425_v19 = vadd.f32 %v3706_v15, %v6170_v9  ;;  %v3771_v9 = vadd.f32 %v3770_v28, %v3741_v50  ;;  %vm3855_vm1 = vmor %vm3853_vm13, %vm3854_vm2  ;;  %v4251_v15 = vmul.f32 %v4845_v5, %v4845_v5 }
 0xdd7   : > { %v3849_v41 = vmul.f32 %v5116_v6, %v3848_v21  ;;  %v3846_v20 = vsel %vm3845_vm11, %v5114_v26, %v3842_v17 }
 0xdd8   : > { %3915 = vmatpush.msra.mxu0 %v6425_v19  ;;  %v3857_v32 = vmul.f32 %v3846_v20, %v3768_v27 }
 0xdd9   : > { %v3850_v12 = vmul.f32 0.5, %v3849_v41 }
 0xdda   : > { %3916 = vmatpush.msra.mxu0 %v3707_v10  ;;  %v3867_v45 = vadd.f32 %v6315_v7, %v3857_v32  ;;  %v6445_v7 = vpop.permute.xlu0 %4338 }
 0xddb   : > { %v3851_v14 = vsub.f32 1.5, %v3850_v12  ;;  %4821 = vmatmul.msk.f32.vlgmr.msra.gmra.mxu0 %vm499_vm0, %v5156_v11 }
 0xddc   : > { %4072 = vmatpush.msrb.mxu0 %v6200_v34  ;;  %v3869_v52 = vmax.f32 %v3867_v45, 0.0 }
 0xddd   : > { %v3852_v33 = vmul.f32 %v5116_v6, %v3851_v14 }
 0xdde   : > { %4073 = vmatpush.msrb.mxu0 %v6197_v23  ;;  %v3879_v43 = vadd.f32 %v6319_v31, %v3869_v52  ;;  %v4828_v31 = vld [vmem:[%s6570_s11 + $0xc0] sm:$0xff] }
 0xddf   : > { %v3856_v39 = vsel %vm3855_vm1, %v5116_v6, %v3852_v33  ;;  %v4081_v3 = vmul.f32 %v4828_v31, %v4828_v31  ;;  %v4248_v6 = vmul.f32 %v4842_v56, %v4842_v56 }
 0xde0   : > { %4239 = vmatpush.msra.mxu0 %v6200_v34  ;;  %v3858_v59 = vmul.f32 %v3856_v39, %v3771_v9  ;;  %v4990_v34 = vunpack.i.h.bf16 %v6321_v35  ;;  %v4830_v35 = vld [vmem:[%s6570_s11 + $0xd0] sm:$0xff] }
 0xde1   : > { %v4083_v63 = vmul.f32 %v4830_v35, %v4830_v35 }
 0xde2   : > { %4240 = vmatpush.msra.mxu0 %v6197_v23  ;;  %v3868_v54 = vadd.f32 %v6323_v1, %v3858_v59  ;;  %v4829_v1 = vld [vmem:[%s6570_s11 + $0xc8] sm:$0xff] }
 0xde3   : > { %4834 = vmatmul.msk.f32.vlgmr.msrb.gmra.mxu0 %vm499_vm0, %v4828_v31  ;;  %v4082_v37 = vmul.f32 %v4829_v1, %v4829_v1 }
 0xde4   : > { %v3870_v30 = vmax.f32 %v3868_v54, 0.0 }
 0xde6   : > { %v3880_v8 = vadd.f32 %v6317_v57, %v3870_v30 }
 0xde8   : > { %3895 = vmatpush.msrb.mxu3 %v3880_v8 }
 0xdea   : > { %3896 = vmatpush.msrb.mxu3 %v3879_v43 }
 0xdeb   : > { %4820 = vmatmul.msk.f32.vlgmr.msrb.gmra.mxu3 %vm499_vm0, %v5156_v11  ;;  %4835 = vmatmul.msk.f32.gmra.mxu0 %vm499_vm0, %v4829_v1 }
 0xdec   : > { %4043 = vmatpush.msra.mxu3 %v4989_v60 }
 0xdee   : > { %4044 = vmatpush.msra.mxu3 %v4990_v34 }
 0xdf0   : > { %4210 = vmatpush.msrb.mxu3 %v4989_v60 }
 0xdf2   : > { %4211 = vmatpush.msrb.mxu3 %v4990_v34 }
 0xdf3   : > { %4832 = vmatmul.msk.f32.vlgmr.msra.gmra.mxu3 %vm499_vm0, %v4830_v35  ;;  %4848 = vmatmul.msk.f32.vlgmr.msra.gmra.mxu0 %vm499_vm0, %v4842_v56 }
 0xdfb   : > { %4833 = vmatmul.msk.f32.gmra.mxu3 %vm499_vm0, %v4831_v13  ;;  %4849 = vmatmul.msk.f32.gmra.mxu0 %vm499_vm0, %v4843_v44 }
 0xe03   : > { %4846 = vmatmul.msk.f32.vlgmr.msrb.gmra.mxu3 %vm499_vm0, %v4844_v62 }
 0xe0b   : > { %4847 = vmatmul.msk.f32.gmra.mxu3 %vm499_vm0, %v4845_v5 }
 0xe20   : > { %v3519_v23 = vpop.permute.xlu2 %3518 }
 0xe21   : > { %4792 = vst.msk [vmem:[%s6281_s30 + $0x10] sm:$0xff] %vm3048_vm12, %v3519_v23 }
 0xe38   : > { %v3521_v57 = vpop.permute.xlu0 %3520 }
 0xe39   : > { %4793 = vst.msk [vmem:[%s6281_s30 + $0x18] sm:$0xff] %vm3048_vm12, %v3521_v57 }
 0xe58   : > { %v3918_v24 = vpop.f32.mrf.mxu0 }
 0xe60   : > { %v4075_v59 = vpop.f32.mrf.mxu0 }
 0xe6e   : > { %v3898_v36 = vpop.f32.mrf.mxu3 }
 0xe6f   : > { %v3919_v38 = vadd.f32 %v3918_v24, %v3898_v36 }
 0xe71   : > { %v3921_v61 = vmul.f32 0.03125, %v3919_v38 }
 0xe73   : > { %v3922_v48 = vperm.slane %v3921_v61, 0 }
 0xe75   : > { %v6472_v26 = vsub.f32 %v3880_v8, %v3922_v48  ;;  %v6475_v49 = vsub.f32 %v6425_v19, %v3922_v48  ;;  %v6477_v29 = vsub.f32 %v3879_v43, %v3922_v48  ;;  %v6479_v25 = vsub.f32 %v3707_v10, %v3922_v48 }
 0xe76   : > { %v4046_v45 = vpop.f32.mrf.mxu3 }
 0xe77   : > { %v3930_v58 = vmul.f32 %v6472_v26, %v6472_v26  ;;  %v3928_v51 = vmul.f32 %v6475_v49, %v6475_v49  ;;  %v3929_v55 = vmul.f32 %v6477_v29, %v6477_v29  ;;  %v3927_v0 = vmul.f32 %v6479_v25, %v6479_v25 }
 0xe79   : > { %3945 = vmatpush.msrb.mxu1 %v3930_v58  ;;  %3965 = vmatpush.msra.mxu2 %v3928_v51  ;;  %v4078_v51 = vpop.f32.mrf.mxu0 }
 0xe7b   : > { %3946 = vmatpush.msrb.mxu1 %v3929_v55  ;;  %3966 = vmatpush.msra.mxu2 %v3927_v0 }
 0xe7c   : > { %4823 = vmatmul.msk.f32.vlgmr.msra.gmra.mxu2 %vm499_vm0, %v5156_v11  ;;  %4822 = vmatmul.msk.f32.vlgmr.msrb.gmra.mxu1 %vm499_vm0, %v5156_v11 }
 0xe7d   : > { %4142 = vmatpush.msrb.mxu2 %v5971_v47  ;;  %4113 = vmatpush.msra.mxu1 %v4984_v40 }
 0xe7e   : > { %v4049_v58 = vpop.f32.mrf.mxu3 }
 0xe7f   : > { %4143 = vmatpush.msrb.mxu2 %v5975_v42  ;;  %4114 = vmatpush.msra.mxu1 %v4985_v4 }
 0xe81   : > { %4301 = vmatpush.msra.mxu2 %v5971_v47  ;;  %4272 = vmatpush.msrb.mxu1 %v4984_v40  ;;  %v4249_v47 = vmul.f32 %v4843_v44, %v4843_v44 }
 0xe83   : > { %4302 = vmatpush.msra.mxu2 %v5975_v42  ;;  %4273 = vmatpush.msrb.mxu1 %v4985_v4 }
 0xe84   : > { %4838 = vmatmul.msk.f32.vlgmr.msrb.gmra.mxu2 %vm499_vm0, %v4081_v3  ;;  %4836 = vmatmul.msk.f32.vlgmr.msra.gmra.mxu1 %vm499_vm0, %v4083_v63 }
 0xe8c   : > { %4839 = vmatmul.msk.f32.gmra.mxu2 %vm499_vm0, %v4082_v37  ;;  %4837 = vmatmul.msk.f32.gmra.mxu1 %vm499_vm0, %v4084_v16  ;;  %v4079_v37 = vadd.f32 %v4078_v51, %v4049_v58 }
 0xe94   : > { %4852 = vmatmul.msk.f32.vlgmr.msra.gmra.mxu2 %vm499_vm0, %v4248_v6  ;;  %4850 = vmatmul.msk.f32.vlgmr.msrb.gmra.mxu1 %vm499_vm0, %v4250_v18 }
 0xe9c   : > { %4853 = vmatmul.msk.f32.gmra.mxu2 %vm499_vm0, %v4249_v47  ;;  %4851 = vmatmul.msk.f32.gmra.mxu1 %vm499_vm0, %v4251_v15  ;;  %v4213_v15 = vpop.f32.mrf.mxu3 }
 0xef9   : > { %v3948_v42 = vpop.f32.mrf.mxu1 }
 0xeff   : > { %v3968_v21 = vpop.f32.mrf.mxu2 }
 0xf00   : > { %v3969_v17 = vadd.f32 %v3968_v21, %v3948_v42  ;;  %v4242_v42 = vpop.f32.mrf.mxu0  ;;  %v5135_v21 = vld [vmem:[%s6571_s12 + $0x30] sm:$0xff] }
 0xf01   : > { %v4116_v19 = vpop.f32.mrf.mxu1 }
 0xf02   : > { %v3971_v41 = vmul.f32 0.03125, %v3969_v17 }
 0xf04   : > { %v3972_v27 = vadd.f32 1e-05, %v3971_v41 }
 0xf06   : > { %5117 = vrsqrt.f32 %v3972_v27  ;;  %vm3979_vm15 = vweird.f32 %v3972_v27 }
 0xf07   : > { %v4145_v10 = vpop.f32.mrf.mxu2 }
 0xf08   : > { %v4146_v12 = vadd.f32 %v4145_v10, %v4116_v19 }
 0xf09   : > { %v4119_v20 = vpop.f32.mrf.mxu1 }
 0xf0a   : > { %v4151_v50 = vadd.f32 1e-08, %v4146_v12 }
 0xf0c   : > { %v5118_v28 = vpop.eup %5117  ;;  %5119 = vrsqrt.f32 %v4151_v50  ;;  %vm4159_vm5 = vweird.f32 %v4151_v50 }
 0xf0d   : > { %v3974_v14 = vmul.f32 %v5118_v28, %v3972_v27  ;;  %vm3980_vm9 = vweird.f32 %v5118_v28 }
 0xf0e   : > { %vm3981_vm3 = vmor %vm3979_vm15, %vm3980_vm9 }
 0xf0f   : > { %v3975_v32 = vmul.f32 %v5118_v28, %v3974_v14  ;;  %v4148_v9 = vpop.f32.mrf.mxu2 }
 0xf10   : > { %v4149_v33 = vadd.f32 %v4148_v9, %v4119_v20 }
 0xf11   : > { %v3976_v39 = vmul.f32 0.5, %v3975_v32  ;;  %v4275_v43 = vpop.f32.mrf.mxu1  ;;  %v5136_v32 = vld [vmem:[#allocation6 + $0x38] sm:$0xff] }
 0xf12   : > { %v5120_v54 = vpop.eup %5119  ;;  %v4152_v52 = vadd.f32 1e-08, %v4149_v33 }
 0xf13   : > { %v3977_v30 = vsub.f32 1.5, %v3976_v39  ;;  %v4154_v8 = vmul.f32 %v5120_v54, %v4151_v50  ;;  %vm4160_vm4 = vweird.f32 %v5120_v54  ;;  %v4243_v39 = vadd.f32 %v4242_v42, %v4213_v15 }
 0xf14   : > { %5121 = vrsqrt.f32 %v4152_v52  ;;  %vm4161_vm6 = vmor %vm4159_vm5, %vm4160_vm4  ;;  %vm4169_vm8 = vweird.f32 %v4152_v52 }
 0xf15   : > { %v3978_v60 = vmul.f32 %v5118_v28, %v3977_v30  ;;  %v4155_v34 = vmul.f32 %v5120_v54, %v4154_v8  ;;  %v4216_v30 = vpop.f32.mrf.mxu3 }
 0xf17   : > { %v3982_v23 = vsel %vm3981_vm3, %v5118_v28, %v3978_v60  ;;  %v4156_v57 = vmul.f32 0.5, %v4155_v34  ;;  %v4304_v31 = vpop.f32.mrf.mxu2 }
 0xf18   : > { %v3983_v35 = vperm.slane %v3982_v23, 0  ;;  %v4305_v1 = vadd.f32 %v4304_v31, %v4275_v43 }
 0xf19   : > { %v4157_v24 = vsub.f32 1.5, %v4156_v57  ;;  %v4278_v40 = vpop.f32.mrf.mxu1 }
 0xf1a   : > { %v5122_v13 = vpop.eup %5121  ;;  %v4310_v36 = vadd.f32 1e-08, %v4305_v1  ;;  %v3990_v38 = vmul.f32 %v3983_v35, %v6472_v26  ;;  %v3989_v56 = vmul.f32 %v3983_v35, %v6477_v29  ;;  %v3985_v61 = vmul.f32 %v3983_v35, %v6475_v49 }
 0xf1b   : > { %v4164_v48 = vmul.f32 %v5122_v13, %v4152_v52  ;;  %v4158_v62 = vmul.f32 %v5120_v54, %v4157_v24  ;;  %v3984_v44 = vmul.f32 %v3983_v35, %v6479_v25  ;;  %v4076_v49 = vadd.f32 %v4075_v59, %v4046_v45  ;;  %v5137_v45 = vld [vmem:[#allocation6 + $0x30] sm:$0xff] }
 0xf1c   : > { %5123 = vrsqrt.f32 %v4310_v36  ;;  %3995 = vrot.lane.b32.xlu2 %v3990_v38, %s5158_s26  ;;  %3993 = vrot.lane.b32.xlu1 %v3989_v56, %s5158_s26  ;;  %4825 = vst.msk [vmem:[%s6281_s30 + $0x28] sm:$0xff] %vm3035_vm14, %v3985_v61  ;;  %vm4170_vm7 = vweird.f32 %v5122_v13  ;;  %vm4318_vm2 = vweird.f32 %v4310_v36 }
 0xf1d   : > { %v4165_v26 = vmul.f32 %v5122_v13, %v4164_v48  ;;  %4824 = vst.msk [vmem:[%s6281_s30 + $0x20] sm:$0xff] %vm3035_vm14, %v3984_v44  ;;  %v4162_v55 = vsel %vm4161_vm6, %v5120_v54, %v4158_v62  ;;  %vm4171_vm10 = vmor %vm4169_vm8, %vm4170_vm7 }
 0xf1e   : > { %v4173_v3 = vmul.f32 %v4162_v55, %v4076_v49 }
 0xf1f   : > { %v4166_v29 = vmul.f32 0.5, %v4165_v26  ;;  %v4307_v0 = vpop.f32.mrf.mxu2 }
 0xf20   : > { %v4308_v4 = vadd.f32 %v4307_v0, %v4278_v40  ;;  %v4178_v17 = vadd.f32 %v5135_v21, %v4173_v3 }
 0xf21   : > { %v4167_v5 = vsub.f32 1.5, %v4166_v29 }
 0xf22   : > { %v5124_v25 = vpop.eup %5123  ;;  %v4311_v63 = vadd.f32 1e-08, %v4308_v4  ;;  %v4180_v20 = vmax.f32 %v4178_v17, 0.0 }
 0xf23   : > { %v4313_v16 = vmul.f32 %v5124_v25, %v4310_v36  ;;  %v4168_v6 = vmul.f32 %v5122_v13, %v4167_v5  ;;  %vm4319_vm11 = vweird.f32 %v5124_v25 }
 0xf24   : > { %5125 = vrsqrt.f32 %v4311_v63  ;;  %vm4320_vm13 = vmor %vm4318_vm2, %vm4319_vm11  ;;  %v4182_v59 = vadd.f32 %v5137_v45, %v4180_v20  ;;  %vm4328_vm9 = vweird.f32 %v4311_v63 }
 0xf25   : > { %v4314_v18 = vmul.f32 %v5124_v25, %v4313_v16  ;;  %v4172_v47 = vsel %vm4171_vm10, %v5122_v13, %v4168_v6 }
 0xf26   : > { %v4174_v19 = vmul.f32 %v4172_v47, %v4079_v37 }
 0xf27   : > { %v4315_v41 = vmul.f32 0.5, %v4314_v18 }
 0xf28   : > { %v4179_v27 = vadd.f32 %v6408_v53, %v4174_v19  ;;  %v4245_v53 = vpop.f32.mrf.mxu0 }
 0xf29   : > { %v4316_v10 = vsub.f32 1.5, %v4315_v41  ;;  %v4246_v60 = vadd.f32 %v4245_v53, %v4216_v30 }
 0xf2a   : > { %v5126_v12 = vpop.eup %5125  ;;  %v4181_v50 = vmax.f32 %v4179_v27, 0.0 }
 0xf2b   : > { %v4323_v28 = vmul.f32 %v5126_v12, %v4311_v63  ;;  %v4317_v14 = vmul.f32 %v5124_v25, %v4316_v10  ;;  %vm4329_vm1 = vweird.f32 %v5126_v12 }
 0xf2c   : > { %v4183_v9 = vadd.f32 %v5136_v32, %v4181_v50  ;;  %vm4330_vm15 = vmor %vm4328_vm9, %vm4329_vm1 }
 0xf2d   : > { %v4324_v33 = vmul.f32 %v5126_v12, %v4323_v28  ;;  %v4321_v52 = vsel %vm4320_vm13, %v5124_v25, %v4317_v14 }
 0xf2e   : > { %4390 = vmatpush.msrb.mxu0 %v4183_v9  ;;  %v4332_v43 = vmul.f32 %v4321_v52, %v4243_v39 }
 0xf2f   : > { %v4325_v54 = vmul.f32 0.5, %v4324_v33 }
 0xf30   : > { %4391 = vmatpush.msrb.mxu0 %v4182_v59  ;;  %v4342_v57 = vadd.f32 %v6331_v22, %v4332_v43 }
 0xf31   : > { %v4326_v8 = vsub.f32 1.5, %v4325_v54  ;;  %4855 = vmatmul.msk.f32.vlgmr.msrb.gmra.mxu0 %vm499_vm0, %v5156_v11 }
 0xf32   : > { %v4344_v1 = vmax.f32 %v4342_v57, 0.0 }
 0xf33   : > { %v4327_v34 = vmul.f32 %v5126_v12, %v4326_v8 }
 0xf34   : > { %v4354_v36 = vadd.f32 %v6333_v2, %v4344_v1 }
 0xf35   : > { %v4331_v23 = vsel %vm4330_vm15, %v5126_v12, %v4327_v34 }
 0xf36   : > { %v4333_v31 = vmul.f32 %v4331_v23, %v4246_v60 }
 0xf38   : > { %v4343_v35 = vadd.f32 %v6445_v7, %v4333_v31 }
 0xf3a   : > { %v4345_v24 = vmax.f32 %v4343_v35, 0.0 }
 0xf3c   : > { %v4355_v13 = vadd.f32 %v6325_v46, %v4345_v24 }
 0xf3e   : > { %4370 = vmatpush.msra.mxu3 %v4355_v13 }
 0xf40   : > { %4371 = vmatpush.msra.mxu3 %v4354_v36 }
 0xf41   : > { %4854 = vmatmul.msk.f32.vlgmr.msra.gmra.mxu3 %vm499_vm0, %v5156_v11 }
 0xf76   : > { %v3996_v38 = vpop.permute.xlu2 %3995 }
 0xf77   : > { %4827 = vst.msk [vmem:[%s6281_s30 + $0x28] sm:$0xff] %vm3048_vm12, %v3996_v38 }
 0xf8e   : > { %v3994_v56 = vpop.permute.xlu1 %3993 }
 0xf8f   : > { %4826 = vst.msk [vmem:[%s6281_s30 + $0x20] sm:$0xff] %vm3048_vm12, %v3994_v56 }
 0xfae   : > { %v4393_v22 = vpop.f32.mrf.mxu0 }
 0xfc4   : > { %v4373_v61 = vpop.f32.mrf.mxu3 }
 0xfc5   : > { %v4394_v7 = vadd.f32 %v4393_v22, %v4373_v61 }
 0xfc7   : > { %v4396_v48 = vmul.f32 0.03125, %v4394_v7 }
 0xfc9   : > { %v4397_v62 = vperm.slane %v4396_v48, 0 }
 0xfcb   : > { %v4401_v58 = vsub.f32 %v4355_v13, %v4397_v62  ;;  %v4399_v46 = vsub.f32 %v4183_v9, %v4397_v62  ;;  %v4400_v51 = vsub.f32 %v4354_v36, %v4397_v62  ;;  %v4398_v44 = vsub.f32 %v4182_v59, %v4397_v62 }
 0xfcd   : > { %v4405_v2 = vmul.f32 %v4401_v58, %v4401_v58  ;;  %v4403_v26 = vmul.f32 %v4399_v46, %v4399_v46  ;;  %v4404_v40 = vmul.f32 %v4400_v51, %v4400_v51  ;;  %v4402_v49 = vmul.f32 %v4398_v44, %v4398_v44 }
 0xfcf   : > { %4420 = vmatpush.msra.mxu1 %v4405_v2  ;;  %4440 = vmatpush.msrb.mxu2 %v4403_v26 }
 0xfd1   : > { %4421 = vmatpush.msra.mxu1 %v4404_v40  ;;  %4441 = vmatpush.msrb.mxu2 %v4402_v49 }
 0xfd2   : > { %4857 = vmatmul.msk.f32.vlgmr.msrb.gmra.mxu2 %vm499_vm0, %v5156_v11  ;;  %4856 = vmatmul.msk.f32.vlgmr.msra.gmra.mxu1 %vm499_vm0, %v5156_v11 }
0x104f   : > { %v4423_v29 = vpop.f32.mrf.mxu1 }
0x1055   : > { %v4443_v55 = vpop.f32.mrf.mxu2 }
0x1056   : > { %v4444_v0 = vadd.f32 %v4443_v55, %v4423_v29 }
0x1058   : > { %v4446_v4 = vmul.f32 0.03125, %v4444_v0 }
0x105a   : > { %v4447_v5 = vadd.f32 1e-05, %v4446_v4 }
0x105c   : > { %5127 = vrsqrt.f32 %v4447_v5  ;;  %vm4454_vm4 = vweird.f32 %v4447_v5 }
0x1062   : > { %v5128_v25 = vpop.eup %5127 }
0x1063   : > { %v4449_v3 = vmul.f32 %v5128_v25, %v4447_v5  ;;  %vm4455_vm3 = vweird.f32 %v5128_v25 }
0x1064   : > { %vm4456_vm5 = vmor %vm4454_vm4, %vm4455_vm3 }
0x1065   : > { %v4450_v63 = vmul.f32 %v5128_v25, %v4449_v3 }
0x1067   : > { %v4451_v37 = vmul.f32 0.5, %v4450_v63 }
0x1069   : > { %v4452_v16 = vsub.f32 1.5, %v4451_v37 }
0x106b   : > { %v4453_v6 = vmul.f32 %v5128_v25, %v4452_v16 }
0x106d   : > { %v4457_v11 = vsel %vm4456_vm5, %v5128_v25, %v4453_v6 }
0x106e   : > { %v4458_v18 = vperm.slane %v4457_v11, 0 }
0x1070   : > { %v4465_v47 = vmul.f32 %v4458_v18, %v4401_v58  ;;  %v4464_v15 = vmul.f32 %v4458_v18, %v4400_v51  ;;  %v4460_v42 = vmul.f32 %v4458_v18, %v4399_v46  ;;  %v4459_v21 = vmul.f32 %v4458_v18, %v4398_v44 }
0x1072   : > { %4470 = vrot.lane.b32.xlu1 %v4465_v47, %s5158_s26  ;;  %4468 = vrot.lane.b32.xlu0 %v4464_v15, %s5158_s26  ;;  %4859 = vst.msk [vmem:[%s6281_s30 + $0x38] sm:$0xff] %vm3035_vm14, %v4460_v42 }
0x1073   : > { %4858 = vst.msk [vmem:[%s6281_s30 + $0x30] sm:$0xff] %vm3035_vm14, %v4459_v21 }
0x10e4   : > { %v4471_v17 = vpop.permute.xlu1 %4470  ;;  %v4469_v19 = vpop.permute.xlu0 %4468 }
0x10e5   : > { %4861 = vst.msk [vmem:[%s6281_s30 + $0x38] sm:$0xff] %vm3048_vm12, %v4471_v17 }
0x10e6   : > { %4860 = vst.msk [vmem:[%s6281_s30 + $0x30] sm:$0xff] %vm3048_vm12, %v4469_v19 }
0x10e7 PF: > { %s23_s25 = sadd.s32 1, %s5144_s25  }
0x10e8   : > { %p20_p4 = scmp.ge.s32.totalorder %s23_s25, 4  }
0x10ea   :  { %22 = sbr.rel (!%p20_p4) target bundleno = 1 (0x1), region = 147 }

</bundles_post_ra>
